<compile_context>
chip_gen: v7x
topology: tpu7x:2x2x1
jax: 0.10.0
libtpu: 0.0.40
codegen_flags: <defaults>
</compile_context>

<pallas_src>
import functools

import jax
import jax.numpy as jnp
from jax import lax
from jax.experimental import pallas as pl
from jax.experimental.pallas import tpu as pltpu
import numpy as np

INPUT_SIZE = 28
HIDDEN = 64
NUM_CLASSES = 10


def lstm_head_kernel(x_ref, wih_ref, whh2_ref, b_ref, wout2_ref, bout_ref,
                     out_ref, *, seq_len, batch, hidden):
    """Single-layer LSTM over all timesteps + final linear head.

    x_ref     : (T*B, D_in) f32  time-major, flattened over (T, B)
    wih_ref   : (D_in, 4H)  f32  (transposed PyTorch weight_ih_l0)
    whh2_ref  : (2H, 4H)    f32  rows [0,H)=0, rows [H,2H)=weight_hh_l0^T
    b_ref     : (1, 4H)     f32  (bias_ih + bias_hh)
    wout2_ref : (2H, C)     f32  rows [0,H)=0, rows [H,2H)=Linear.weight^T
    bout_ref  : (1, C)      f32
    out_ref   : (B, C)      f32
    """
    T, B, H = seq_len, batch, hidden

    # --- hoisted out of the serial recurrence -------------------------------
    # One-shot input projection for all T timesteps: (T*B, D) @ (D, 4H).
    gx = jnp.dot(x_ref[...], wih_ref[...],
                 preferred_element_type=jnp.float32) + b_ref[...]   # (T*B, 4H)

    whh2 = whh2_ref[...]                                            # (2H, 4H)

    # Lane mask selecting the first H lanes of a 2H-wide (one-vreg) slab.
    lane = lax.broadcasted_iota(jnp.int32, (B, 2 * H), 1)
    first_half = lane < H

    # Doubled state: cc = [c | c], hh = [garbage | h]; each (B, 2H) = 1 vreg.
    cc = jnp.zeros((B, 2 * H), jnp.float32)
    hh = jnp.zeros((B, 2 * H), jnp.float32)

    # --- fully-unrolled recurrence ------------------------------------------
    for t in range(T):
        gates = gx[t * B:(t + 1) * B, :] + jnp.dot(
            hh, whh2, preferred_element_type=jnp.float32)           # (B, 4H)

        # PyTorch gate order i,f,g,o -> slab0 = [i|f], slab1 = [g|o].
        s0 = gates[:, :2 * H]                                       # aligned
        s1 = gates[:, 2 * H:]                                       # aligned
        a0 = jax.nn.sigmoid(s0)                                     # [i_g|f_g]
        a1 = jnp.where(first_half, jnp.tanh(s1), jax.nn.sigmoid(s1))  # [g_g|o_g]

        m = a0 * jnp.where(first_half, a1, cc)      # [i_g*g_g | f_g*c]
        cc = m + pltpu.roll(m, H, axis=1)           # [c_new   | c_new]
        hh = a1 * jnp.tanh(cc)                      # [garbage | h_new]

    # Final linear head; zero rows of wout2 drop the garbage half of hh.
    out_ref[...] = jnp.dot(hh, wout2_ref[...],
                           preferred_element_type=jnp.float32) + bout_ref[...]


def rnn_forward(x_btd, params):
    """x_btd: (B, T, D_in) float32 (batch_first, like the PyTorch module)."""
    w_ih, w_hh, b_ih, b_hh, w_out, b_out = params
    B, T, D = x_btd.shape
    H = w_hh.shape[1]          # PyTorch weight_hh_l0 is (4H, H)
    C = w_out.shape[0]

    # Time-major, flattened over (T, B) so the kernel runs ONE input projection.
    x_tb_d = jnp.transpose(x_btd, (1, 0, 2)).reshape(T * B, D).astype(jnp.float32)
    wih_t = jnp.transpose(w_ih).astype(jnp.float32)                  # (D, 4H)
    whh_t = jnp.transpose(w_hh).astype(jnp.float32)                  # (H, 4H)
    whh2 = jnp.concatenate([jnp.zeros_like(whh_t), whh_t], axis=0)   # (2H, 4H)
    b_all = (b_ih + b_hh).reshape(1, 4 * H).astype(jnp.float32)      # (1, 4H)
    wout_t = jnp.transpose(w_out).astype(jnp.float32)                # (H, C)
    wout2 = jnp.concatenate([jnp.zeros_like(wout_t), wout_t], axis=0)  # (2H, C)
    bout = b_out.reshape(1, C).astype(jnp.float32)                   # (1, C)

    kernel = functools.partial(lstm_head_kernel, seq_len=T, batch=B, hidden=H)
    vmem = pl.BlockSpec(memory_space=pltpu.MemorySpace.VMEM)
    return pl.pallas_call(
        kernel,
        out_shape=jax.ShapeDtypeStruct((B, C), jnp.float32),
        in_specs=[vmem] * 6,
        out_specs=vmem,
    )(x_tb_d, wih_t, whh2, b_all, wout2, bout)


def rnn_forward_ref(x_btd, params):
    """Pure-JAX reference matching PyTorch LSTM semantics."""
    w_ih, w_hh, b_ih, b_hh, w_out, b_out = params
    B, T, D = x_btd.shape
    H = w_hh.shape[1]

    def step(carry, x_t):
        h, c = carry
        gates = x_t @ w_ih.T + b_ih + h @ w_hh.T + b_hh
        i_g, f_g, g_g, o_g = jnp.split(gates, 4, axis=-1)
        i_g = jax.nn.sigmoid(i_g)
        f_g = jax.nn.sigmoid(f_g)
        g_g = jnp.tanh(g_g)
        o_g = jax.nn.sigmoid(o_g)
        c = f_g * c + i_g * g_g
        h = o_g * jnp.tanh(c)
        return (h, c), None

    (h_last, _), _ = lax.scan(
        step,
        (jnp.zeros((B, H), jnp.float32), jnp.zeros((B, H), jnp.float32)),
        jnp.transpose(x_btd, (1, 0, 2)),
    )
    return h_last @ w_out.T + b_out


def init_params(key):
    """Deterministic init matching the PyTorch module's parameter shapes."""
    ks = jax.random.split(key, 6)
    k = 1.0 / jnp.sqrt(HIDDEN)
    w_ih = jax.random.uniform(ks[0], (4 * HIDDEN, INPUT_SIZE), jnp.float32, -k, k)
    w_hh = jax.random.uniform(ks[1], (4 * HIDDEN, HIDDEN), jnp.float32, -k, k)
    b_ih = jax.random.uniform(ks[2], (4 * HIDDEN,), jnp.float32, -k, k)
    b_hh = jax.random.uniform(ks[3], (4 * HIDDEN,), jnp.float32, -k, k)
    kl = 1.0 / jnp.sqrt(HIDDEN)
    w_out = jax.random.uniform(ks[4], (NUM_CLASSES, HIDDEN), jnp.float32, -kl, kl)
    b_out = jax.random.uniform(ks[5], (NUM_CLASSES,), jnp.float32, -kl, kl)
    return (w_ih, w_hh, b_ih, b_hh, w_out, b_out)


if __name__ == "__main__":
    key = jax.random.PRNGKey(0)
    k_x, k_p = jax.random.split(key)

    B, T = 8, 28  # MNIST-row style sequence: (B, 28, 28)
    x = jax.random.normal(k_x, (B, T, INPUT_SIZE), jnp.float32)
    params = init_params(k_p)

    out = rnn_forward(x, params)
    out = jax.block_until_ready(out)

    ref = jax.block_until_ready(rnn_forward_ref(x, params))
    np.testing.assert_allclose(np.asarray(out), np.asarray(ref), rtol=1e-4, atol=1e-4)
    assert out.shape == (B, NUM_CLASSES)

    print("KERNEL_OK")
</pallas_src>

<mosaic_0001>
module attributes {stable_mosaic.version = 11 : i64} {
  func.func @lstm_head_kernel(%arg0: memref<224x28xf32, #tpu.memory_space<vmem>>, %arg1: memref<28x256xf32, #tpu.memory_space<vmem>>, %arg2: memref<128x256xf32, #tpu.memory_space<vmem>>, %arg3: memref<1x256xf32, #tpu.memory_space<vmem>>, %arg4: memref<128x10xf32, #tpu.memory_space<vmem>>, %arg5: memref<1x10xf32, #tpu.memory_space<vmem>>, %arg6: memref<8x10xf32, #tpu.memory_space<vmem>>) attributes {dimension_semantics = [], scalar_prefetch = 0 : i64, scratch_operands = 0 : i64, tpu.core_type = #tpu.core_type<tc>} {
    %c0 = arith.constant 0 : index
    %c0_0 = arith.constant 0 : index
    %0 = vector.load %arg0[%c0, %c0_0] : memref<224x28xf32, #tpu.memory_space<vmem>>, vector<224x28xf32>
    %c0_1 = arith.constant 0 : index
    %c0_2 = arith.constant 0 : index
    %1 = vector.load %arg1[%c0_1, %c0_2] : memref<28x256xf32, #tpu.memory_space<vmem>>, vector<28x256xf32>
    %cst = arith.constant dense<0.000000e+00> : vector<224x256xf32>
    %2 = tpu.matmul %0, %1, %cst {dimension_numbers = #tpu.dot_dimension_numbers<[1], [0], [0], [1], [0, 0, 1, 1], [], []>} : vector<224x28xf32>, vector<28x256xf32>, vector<224x256xf32> -> vector<224x256xf32>
    %c0_3 = arith.constant 0 : index
    %c0_4 = arith.constant 0 : index
    %3 = vector.load %arg3[%c0_3, %c0_4] : memref<1x256xf32, #tpu.memory_space<vmem>>, vector<1x256xf32>
    %4 = vector.broadcast %3 : vector<1x256xf32> to vector<224x256xf32>
    %5 = arith.addf %2, %4 : vector<224x256xf32>
    %c0_5 = arith.constant 0 : index
    %c0_6 = arith.constant 0 : index
    %6 = vector.load %arg2[%c0_5, %c0_6] : memref<128x256xf32, #tpu.memory_space<vmem>>, vector<128x256xf32>
    %7 = tpu.iota {dimensions = array<i32: 1>} : vector<8x128xi32>
    %c64_i32 = arith.constant 64 : i32
    %8 = vector.broadcast %c64_i32 : i32 to vector<8x128xi32>
    %9 = arith.cmpi slt, %7, %8 : vector<8x128xi32>
    %cst_7 = arith.constant 0.000000e+00 : f32
    %10 = vector.broadcast %cst_7 : f32 to vector<8x128xf32>
    %cst_8 = arith.constant 0.000000e+00 : f32
    %11 = vector.broadcast %cst_8 : f32 to vector<8x128xf32>
    %12 = vector.extract_strided_slice %5 {offsets = [0, 0], sizes = [8, 256], strides = [1, 1]} : vector<224x256xf32> to vector<8x256xf32>
    %cst_9 = arith.constant dense<0.000000e+00> : vector<8x256xf32>
    %13 = tpu.matmul %11, %6, %cst_9 {dimension_numbers = #tpu.dot_dimension_numbers<[1], [0], [0], [1], [0, 0, 1, 1], [], []>} : vector<8x128xf32>, vector<128x256xf32>, vector<8x256xf32> -> vector<8x256xf32>
    %14 = arith.addf %12, %13 : vector<8x256xf32>
    %15 = vector.extract_strided_slice %14 {offsets = [0, 0], sizes = [8, 128], strides = [1, 1]} : vector<8x256xf32> to vector<8x128xf32>
    %16 = vector.extract_strided_slice %14 {offsets = [0, 128], sizes = [8, 128], strides = [1, 1]} : vector<8x256xf32> to vector<8x128xf32>
    %17 = arith.negf %15 : vector<8x128xf32>
    %18 = math.exp %17 : vector<8x128xf32>
    %cst_10 = arith.constant 1.000000e+00 : f32
    %19 = vector.broadcast %cst_10 : f32 to vector<8x128xf32>
    %20 = arith.addf %19, %18 : vector<8x128xf32>
    %21 = arith.divf %19, %20 : vector<8x128xf32>
    %22 = math.tanh %16 : vector<8x128xf32>
    %23 = arith.negf %16 : vector<8x128xf32>
    %24 = math.exp %23 : vector<8x128xf32>
    %cst_11 = arith.constant 1.000000e+00 : f32
    %25 = vector.broadcast %cst_11 : f32 to vector<8x128xf32>
    %26 = arith.addf %25, %24 : vector<8x128xf32>
    %27 = arith.divf %25, %26 : vector<8x128xf32>
    %28 = arith.select %9, %22, %27 : vector<8x128xi1>, vector<8x128xf32>
    %29 = arith.select %9, %28, %10 : vector<8x128xi1>, vector<8x128xf32>
    %30 = arith.mulf %21, %29 : vector<8x128xf32>
    %c64_i32_12 = arith.constant 64 : i32
    %31 = tpu.dynamic_rotate %30 by %c64_i32_12 dim 1 : vector<8x128xf32>, i32 -> vector<8x128xf32>
    %32 = arith.addf %30, %31 : vector<8x128xf32>
    %33 = math.tanh %32 : vector<8x128xf32>
    %34 = arith.mulf %28, %33 : vector<8x128xf32>
    %35 = vector.extract_strided_slice %5 {offsets = [8, 0], sizes = [8, 256], strides = [1, 1]} : vector<224x256xf32> to vector<8x256xf32>
    %cst_13 = arith.constant dense<0.000000e+00> : vector<8x256xf32>
    %36 = tpu.matmul %34, %6, %cst_13 {dimension_numbers = #tpu.dot_dimension_numbers<[1], [0], [0], [1], [0, 0, 1, 1], [], []>} : vector<8x128xf32>, vector<128x256xf32>, vector<8x256xf32> -> vector<8x256xf32>
    %37 = arith.addf %35, %36 : vector<8x256xf32>
    %38 = vector.extract_strided_slice %37 {offsets = [0, 0], sizes = [8, 128], strides = [1, 1]} : vector<8x256xf32> to vector<8x128xf32>
    %39 = vector.extract_strided_slice %37 {offsets = [0, 128], sizes = [8, 128], strides = [1, 1]} : vector<8x256xf32> to vector<8x128xf32>
    %40 = arith.negf %38 : vector<8x128xf32>
    %41 = math.exp %40 : vector<8x128xf32>
    %cst_14 = arith.constant 1.000000e+00 : f32
    %42 = vector.broadcast %cst_14 : f32 to vector<8x128xf32>
    %43 = arith.addf %42, %41 : vector<8x128xf32>
    %44 = arith.divf %42, %43 : vector<8x128xf32>
    %45 = math.tanh %39 : vector<8x128xf32>
    %46 = arith.negf %39 : vector<8x128xf32>
    %47 = math.exp %46 : vector<8x128xf32>
    %cst_15 = arith.constant 1.000000e+00 : f32
    %48 = vector.broadcast %cst_15 : f32 to vector<8x128xf32>
    %49 = arith.addf %48, %47 : vector<8x128xf32>
    %50 = arith.divf %48, %49 : vector<8x128xf32>
    %51 = arith.select %9, %45, %50 : vector<8x128xi1>, vector<8x128xf32>
    %52 = arith.select %9, %51, %32 : vector<8x128xi1>, vector<8x128xf32>
    %53 = arith.mulf %44, %52 : vector<8x128xf32>
    %c64_i32_16 = arith.constant 64 : i32
    %54 = tpu.dynamic_rotate %53 by %c64_i32_16 dim 1 : vector<8x128xf32>, i32 -> vector<8x128xf32>
    %55 = arith.addf %53, %54 : vector<8x128xf32>
    %56 = math.tanh %55 : vector<8x128xf32>
    %57 = arith.mulf %51, %56 : vector<8x128xf32>
    %58 = vector.extract_strided_slice %5 {offsets = [16, 0], sizes = [8, 256], strides = [1, 1]} : vector<224x256xf32> to vector<8x256xf32>
    %cst_17 = arith.constant dense<0.000000e+00> : vector<8x256xf32>
    %59 = tpu.matmul %57, %6, %cst_17 {dimension_numbers = #tpu.dot_dimension_numbers<[1], [0], [0], [1], [0, 0, 1, 1], [], []>} : vector<8x128xf32>, vector<128x256xf32>, vector<8x256xf32> -> vector<8x256xf32>
    %60 = arith.addf %58, %59 : vector<8x256xf32>
    %61 = vector.extract_strided_slice %60 {offsets = [0, 0], sizes = [8, 128], strides = [1, 1]} : vector<8x256xf32> to vector<8x128xf32>
    %62 = vector.extract_strided_slice %60 {offsets = [0, 128], sizes = [8, 128], strides = [1, 1]} : vector<8x256xf32> to vector<8x128xf32>
    %63 = arith.negf %61 : vector<8x128xf32>
    %64 = math.exp %63 : vector<8x128xf32>
    %cst_18 = arith.constant 1.000000e+00 : f32
    %65 = vector.broadcast %cst_18 : f32 to vector<8x128xf32>
    %66 = arith.addf %65, %64 : vector<8x128xf32>
    %67 = arith.divf %65, %66 : vector<8x128xf32>
    %68 = math.tanh %62 : vector<8x128xf32>
    %69 = arith.negf %62 : vector<8x128xf32>
    %70 = math.exp %69 : vector<8x128xf32>
    %cst_19 = arith.constant 1.000000e+00 : f32
    %71 = vector.broadcast %cst_19 : f32 to vector<8x128xf32>
    %72 = arith.addf %71, %70 : vector<8x128xf32>
    %73 = arith.divf %71, %72 : vector<8x128xf32>
    %74 = arith.select %9, %68, %73 : vector<8x128xi1>, vector<8x128xf32>
    %75 = arith.select %9, %74, %55 : vector<8x128xi1>, vector<8x128xf32>
    %76 = arith.mulf %67, %75 : vector<8x128xf32>
    %c64_i32_20 = arith.constant 64 : i32
    %77 = tpu.dynamic_rotate %76 by %c64_i32_20 dim 1 : vector<8x128xf32>, i32 -> vector<8x128xf32>
    %78 = arith.addf %76, %77 : vector<8x128xf32>
    %79 = math.tanh %78 : vector<8x128xf32>
    %80 = arith.mulf %74, %79 : vector<8x128xf32>
    %81 = vector.extract_strided_slice %5 {offsets = [24, 0], sizes = [8, 256], strides = [1, 1]} : vector<224x256xf32> to vector<8x256xf32>
    %cst_21 = arith.constant dense<0.000000e+00> : vector<8x256xf32>
    %82 = tpu.matmul %80, %6, %cst_21 {dimension_numbers = #tpu.dot_dimension_numbers<[1], [0], [0], [1], [0, 0, 1, 1], [], []>} : vector<8x128xf32>, vector<128x256xf32>, vector<8x256xf32> -> vector<8x256xf32>
    %83 = arith.addf %81, %82 : vector<8x256xf32>
    %84 = vector.extract_strided_slice %83 {offsets = [0, 0], sizes = [8, 128], strides = [1, 1]} : vector<8x256xf32> to vector<8x128xf32>
    %85 = vector.extract_strided_slice %83 {offsets = [0, 128], sizes = [8, 128], strides = [1, 1]} : vector<8x256xf32> to vector<8x128xf32>
    %86 = arith.negf %84 : vector<8x128xf32>
    %87 = math.exp %86 : vector<8x128xf32>
    %cst_22 = arith.constant 1.000000e+00 : f32
    %88 = vector.broadcast %cst_22 : f32 to vector<8x128xf32>
    %89 = arith.addf %88, %87 : vector<8x128xf32>
    %90 = arith.divf %88, %89 : vector<8x128xf32>
    %91 = math.tanh %85 : vector<8x128xf32>
    %92 = arith.negf %85 : vector<8x128xf32>
    %93 = math.exp %92 : vector<8x128xf32>
    %cst_23 = arith.constant 1.000000e+00 : f32
    %94 = vector.broadcast %cst_23 : f32 to vector<8x128xf32>
    %95 = arith.addf %94, %93 : vector<8x128xf32>
    %96 = arith.divf %94, %95 : vector<8x128xf32>
    %97 = arith.select %9, %91, %96 : vector<8x128xi1>, vector<8x128xf32>
    %98 = arith.select %9, %97, %78 : vector<8x128xi1>, vector<8x128xf32>
    %99 = arith.mulf %90, %98 : vector<8x128xf32>
    %c64_i32_24 = arith.constant 64 : i32
    %100 = tpu.dynamic_rotate %99 by %c64_i32_24 dim 1 : vector<8x128xf32>, i32 -> vector<8x128xf32>
    %101 = arith.addf %99, %100 : vector<8x128xf32>
    %102 = math.tanh %101 : vector<8x128xf32>
    %103 = arith.mulf %97, %102 : vector<8x128xf32>
    %104 = vector.extract_strided_slice %5 {offsets = [32, 0], sizes = [8, 256], strides = [1, 1]} : vector<224x256xf32> to vector<8x256xf32>
    %cst_25 = arith.constant dense<0.000000e+00> : vector<8x256xf32>
    %105 = tpu.matmul %103, %6, %cst_25 {dimension_numbers = #tpu.dot_dimension_numbers<[1], [0], [0], [1], [0, 0, 1, 1], [], []>} : vector<8x128xf32>, vector<128x256xf32>, vector<8x256xf32> -> vector<8x256xf32>
    %106 = arith.addf %104, %105 : vector<8x256xf32>
    %107 = vector.extract_strided_slice %106 {offsets = [0, 0], sizes = [8, 128], strides = [1, 1]} : vector<8x256xf32> to vector<8x128xf32>
    %108 = vector.extract_strided_slice %106 {offsets = [0, 128], sizes = [8, 128], strides = [1, 1]} : vector<8x256xf32> to vector<8x128xf32>
    %109 = arith.negf %107 : vector<8x128xf32>
    %110 = math.exp %109 : vector<8x128xf32>
    %cst_26 = arith.constant 1.000000e+00 : f32
    %111 = vector.broadcast %cst_26 : f32 to vector<8x128xf32>
    %112 = arith.addf %111, %110 : vector<8x128xf32>
    %113 = arith.divf %111, %112 : vector<8x128xf32>
    %114 = math.tanh %108 : vector<8x128xf32>
    %115 = arith.negf %108 : vector<8x128xf32>
    %116 = math.exp %115 : vector<8x128xf32>
    %cst_27 = arith.constant 1.000000e+00 : f32
    %117 = vector.broadcast %cst_27 : f32 to vector<8x128xf32>
    %118 = arith.addf %117, %116 : vector<8x128xf32>
    %119 = arith.divf %117, %118 : vector<8x128xf32>
    %120 = arith.select %9, %114, %119 : vector<8x128xi1>, vector<8x128xf32>
    %121 = arith.select %9, %120, %101 : vector<8x128xi1>, vector<8x128xf32>
    %122 = arith.mulf %113, %121 : vector<8x128xf32>
    %c64_i32_28 = arith.constant 64 : i32
    %123 = tpu.dynamic_rotate %122 by %c64_i32_28 dim 1 : vector<8x128xf32>, i32 -> vector<8x128xf32>
    %124 = arith.addf %122, %123 : vector<8x128xf32>
    %125 = math.tanh %124 : vector<8x128xf32>
    %126 = arith.mulf %120, %125 : vector<8x128xf32>
    %127 = vector.extract_strided_slice %5 {offsets = [40, 0], sizes = [8, 256], strides = [1, 1]} : vector<224x256xf32> to vector<8x256xf32>
    %cst_29 = arith.constant dense<0.000000e+00> : vector<8x256xf32>
    %128 = tpu.matmul %126, %6, %cst_29 {dimension_numbers = #tpu.dot_dimension_numbers<[1], [0], [0], [1], [0, 0, 1, 1], [], []>} : vector<8x128xf32>, vector<128x256xf32>, vector<8x256xf32> -> vector<8x256xf32>
    %129 = arith.addf %127, %128 : vector<8x256xf32>
    %130 = vector.extract_strided_slice %129 {offsets = [0, 0], sizes = [8, 128], strides = [1, 1]} : vector<8x256xf32> to vector<8x128xf32>
    %131 = vector.extract_strided_slice %129 {offsets = [0, 128], sizes = [8, 128], strides = [1, 1]} : vector<8x256xf32> to vector<8x128xf32>
    %132 = arith.negf %130 : vector<8x128xf32>
    %133 = math.exp %132 : vector<8x128xf32>
    %cst_30 = arith.constant 1.000000e+00 : f32
    %134 = vector.broadcast %cst_30 : f32 to vector<8x128xf32>
    %135 = arith.addf %134, %133 : vector<8x128xf32>
    %136 = arith.divf %134, %135 : vector<8x128xf32>
    %137 = math.tanh %131 : vector<8x128xf32>
    %138 = arith.negf %131 : vector<8x128xf32>
    %139 = math.exp %138 : vector<8x128xf32>
    %cst_31 = arith.constant 1.000000e+00 : f32
    %140 = vector.broadcast %cst_31 : f32 to vector<8x128xf32>
    %141 = arith.addf %140, %139 : vector<8x128xf32>
    %142 = arith.divf %140, %141 : vector<8x128xf32>
    %143 = arith.select %9, %137, %142 : vector<8x128xi1>, vector<8x128xf32>
    %144 = arith.select %9, %143, %124 : vector<8x128xi1>, vector<8x128xf32>
    %145 = arith.mulf %136, %144 : vector<8x128xf32>
    %c64_i32_32 = arith.constant 64 : i32
    %146 = tpu.dynamic_rotate %145 by %c64_i32_32 dim 1 : vector<8x128xf32>, i32 -> vector<8x128xf32>
    %147 = arith.addf %145, %146 : vector<8x128xf32>
    %148 = math.tanh %147 : vector<8x128xf32>
    %149 = arith.mulf %143, %148 : vector<8x128xf32>
    %150 = vector.extract_strided_slice %5 {offsets = [48, 0], sizes = [8, 256], strides = [1, 1]} : vector<224x256xf32> to vector<8x256xf32>
    %cst_33 = arith.constant dense<0.000000e+00> : vector<8x256xf32>
    %151 = tpu.matmul %149, %6, %cst_33 {dimension_numbers = #tpu.dot_dimension_numbers<[1], [0], [0], [1], [0, 0, 1, 1], [], []>} : vector<8x128xf32>, vector<128x256xf32>, vector<8x256xf32> -> vector<8x256xf32>
    %152 = arith.addf %150, %151 : vector<8x256xf32>
    %153 = vector.extract_strided_slice %152 {offsets = [0, 0], sizes = [8, 128], strides = [1, 1]} : vector<8x256xf32> to vector<8x128xf32>
    %154 = vector.extract_strided_slice %152 {offsets = [0, 128], sizes = [8, 128], strides = [1, 1]} : vector<8x256xf32> to vector<8x128xf32>
    %155 = arith.negf %153 : vector<8x128xf32>
    %156 = math.exp %155 : vector<8x128xf32>
    %cst_34 = arith.constant 1.000000e+00 : f32
    %157 = vector.broadcast %cst_34 : f32 to vector<8x128xf32>
    %158 = arith.addf %157, %156 : vector<8x128xf32>
    %159 = arith.divf %157, %158 : vector<8x128xf32>
    %160 = math.tanh %154 : vector<8x128xf32>
    %161 = arith.negf %154 : vector<8x128xf32>
    %162 = math.exp %161 : vector<8x128xf32>
    %cst_35 = arith.constant 1.000000e+00 : f32
    %163 = vector.broadcast %cst_35 : f32 to vector<8x128xf32>
    %164 = arith.addf %163, %162 : vector<8x128xf32>
    %165 = arith.divf %163, %164 : vector<8x128xf32>
    %166 = arith.select %9, %160, %165 : vector<8x128xi1>, vector<8x128xf32>
    %167 = arith.select %9, %166, %147 : vector<8x128xi1>, vector<8x128xf32>
    %168 = arith.mulf %159, %167 : vector<8x128xf32>
    %c64_i32_36 = arith.constant 64 : i32
    %169 = tpu.dynamic_rotate %168 by %c64_i32_36 dim 1 : vector<8x128xf32>, i32 -> vector<8x128xf32>
    %170 = arith.addf %168, %169 : vector<8x128xf32>
    %171 = math.tanh %170 : vector<8x128xf32>
    %172 = arith.mulf %166, %171 : vector<8x128xf32>
    %173 = vector.extract_strided_slice %5 {offsets = [56, 0], sizes = [8, 256], strides = [1, 1]} : vector<224x256xf32> to vector<8x256xf32>
    %cst_37 = arith.constant dense<0.000000e+00> : vector<8x256xf32>
    %174 = tpu.matmul %172, %6, %cst_37 {dimension_numbers = #tpu.dot_dimension_numbers<[1], [0], [0], [1], [0, 0, 1, 1], [], []>} : vector<8x128xf32>, vector<128x256xf32>, vector<8x256xf32> -> vector<8x256xf32>
    %175 = arith.addf %173, %174 : vector<8x256xf32>
    %176 = vector.extract_strided_slice %175 {offsets = [0, 0], sizes = [8, 128], strides = [1, 1]} : vector<8x256xf32> to vector<8x128xf32>
    %177 = vector.extract_strided_slice %175 {offsets = [0, 128], sizes = [8, 128], strides = [1, 1]} : vector<8x256xf32> to vector<8x128xf32>
    %178 = arith.negf %176 : vector<8x128xf32>
    %179 = math.exp %178 : vector<8x128xf32>
    %cst_38 = arith.constant 1.000000e+00 : f32
    %180 = vector.broadcast %cst_38 : f32 to vector<8x128xf32>
    %181 = arith.addf %180, %179 : vector<8x128xf32>
    %182 = arith.divf %180, %181 : vector<8x128xf32>
    %183 = math.tanh %177 : vector<8x128xf32>
    %184 = arith.negf %177 : vector<8x128xf32>
    %185 = math.exp %184 : vector<8x128xf32>
    %cst_39 = arith.constant 1.000000e+00 : f32
    %186 = vector.broadcast %cst_39 : f32 to vector<8x128xf32>
    %187 = arith.addf %186, %185 : vector<8x128xf32>
    %188 = arith.divf %186, %187 : vector<8x128xf32>
    %189 = arith.select %9, %183, %188 : vector<8x128xi1>, vector<8x128xf32>
    %190 = arith.select %9, %189, %170 : vector<8x128xi1>, vector<8x128xf32>
    %191 = arith.mulf %182, %190 : vector<8x128xf32>
    %c64_i32_40 = arith.constant 64 : i32
    %192 = tpu.dynamic_rotate %191 by %c64_i32_40 dim 1 : vector<8x128xf32>, i32 -> vector<8x128xf32>
    %193 = arith.addf %191, %192 : vector<8x128xf32>
    %194 = math.tanh %193 : vector<8x128xf32>
    %195 = arith.mulf %189, %194 : vector<8x128xf32>
    %196 = vector.extract_strided_slice %5 {offsets = [64, 0], sizes = [8, 256], strides = [1, 1]} : vector<224x256xf32> to vector<8x256xf32>
    %cst_41 = arith.constant dense<0.000000e+00> : vector<8x256xf32>
    %197 = tpu.matmul %195, %6, %cst_41 {dimension_numbers = #tpu.dot_dimension_numbers<[1], [0], [0], [1], [0, 0, 1, 1], [], []>} : vector<8x128xf32>, vector<128x256xf32>, vector<8x256xf32> -> vector<8x256xf32>
    %198 = arith.addf %196, %197 : vector<8x256xf32>
    %199 = vector.extract_strided_slice %198 {offsets = [0, 0], sizes = [8, 128], strides = [1, 1]} : vector<8x256xf32> to vector<8x128xf32>
    %200 = vector.extract_strided_slice %198 {offsets = [0, 128], sizes = [8, 128], strides = [1, 1]} : vector<8x256xf32> to vector<8x128xf32>
    %201 = arith.negf %199 : vector<8x128xf32>
    %202 = math.exp %201 : vector<8x128xf32>
    %cst_42 = arith.constant 1.000000e+00 : f32
    %203 = vector.broadcast %cst_42 : f32 to vector<8x128xf32>
    %204 = arith.addf %203, %202 : vector<8x128xf32>
    %205 = arith.divf %203, %204 : vector<8x128xf32>
    %206 = math.tanh %200 : vector<8x128xf32>
    %207 = arith.negf %200 : vector<8x128xf32>
    %208 = math.exp %207 : vector<8x128xf32>
    %cst_43 = arith.constant 1.000000e+00 : f32
    %209 = vector.broadcast %cst_43 : f32 to vector<8x128xf32>
    %210 = arith.addf %209, %208 : vector<8x128xf32>
    %211 = arith.divf %209, %210 : vector<8x128xf32>
    %212 = arith.select %9, %206, %211 : vector<8x128xi1>, vector<8x128xf32>
    %213 = arith.select %9, %212, %193 : vector<8x128xi1>, vector<8x128xf32>
    %214 = arith.mulf %205, %213 : vector<8x128xf32>
    %c64_i32_44 = arith.constant 64 : i32
    %215 = tpu.dynamic_rotate %214 by %c64_i32_44 dim 1 : vector<8x128xf32>, i32 -> vector<8x128xf32>
    %216 = arith.addf %214, %215 : vector<8x128xf32>
    %217 = math.tanh %216 : vector<8x128xf32>
    %218 = arith.mulf %212, %217 : vector<8x128xf32>
    %219 = vector.extract_strided_slice %5 {offsets = [72, 0], sizes = [8, 256], strides = [1, 1]} : vector<224x256xf32> to vector<8x256xf32>
    %cst_45 = arith.constant dense<0.000000e+00> : vector<8x256xf32>
    %220 = tpu.matmul %218, %6, %cst_45 {dimension_numbers = #tpu.dot_dimension_numbers<[1], [0], [0], [1], [0, 0, 1, 1], [], []>} : vector<8x128xf32>, vector<128x256xf32>, vector<8x256xf32> -> vector<8x256xf32>
    %221 = arith.addf %219, %220 : vector<8x256xf32>
    %222 = vector.extract_strided_slice %221 {offsets = [0, 0], sizes = [8, 128], strides = [1, 1]} : vector<8x256xf32> to vector<8x128xf32>
    %223 = vector.extract_strided_slice %221 {offsets = [0, 128], sizes = [8, 128], strides = [1, 1]} : vector<8x256xf32> to vector<8x128xf32>
    %224 = arith.negf %222 : vector<8x128xf32>
    %225 = math.exp %224 : vector<8x128xf32>
    %cst_46 = arith.constant 1.000000e+00 : f32
    %226 = vector.broadcast %cst_46 : f32 to vector<8x128xf32>
    %227 = arith.addf %226, %225 : vector<8x128xf32>
    %228 = arith.divf %226, %227 : vector<8x128xf32>
    %229 = math.tanh %223 : vector<8x128xf32>
    %230 = arith.negf %223 : vector<8x128xf32>
    %231 = math.exp %230 : vector<8x128xf32>
    %cst_47 = arith.constant 1.000000e+00 : f32
    %232 = vector.broadcast %cst_47 : f32 to vector<8x128xf32>
    %233 = arith.addf %232, %231 : vector<8x128xf32>
    %234 = arith.divf %232, %233 : vector<8x128xf32>
    %235 = arith.select %9, %229, %234 : vector<8x128xi1>, vector<8x128xf32>
    %236 = arith.select %9, %235, %216 : vector<8x128xi1>, vector<8x128xf32>
    %237 = arith.mulf %228, %236 : vector<8x128xf32>
    %c64_i32_48 = arith.constant 64 : i32
    %238 = tpu.dynamic_rotate %237 by %c64_i32_48 dim 1 : vector<8x128xf32>, i32 -> vector<8x128xf32>
    %239 = arith.addf %237, %238 : vector<8x128xf32>
    %240 = math.tanh %239 : vector<8x128xf32>
    %241 = arith.mulf %235, %240 : vector<8x128xf32>
    %242 = vector.extract_strided_slice %5 {offsets = [80, 0], sizes = [8, 256], strides = [1, 1]} : vector<224x256xf32> to vector<8x256xf32>
    %cst_49 = arith.constant dense<0.000000e+00> : vector<8x256xf32>
    %243 = tpu.matmul %241, %6, %cst_49 {dimension_numbers = #tpu.dot_dimension_numbers<[1], [0], [0], [1], [0, 0, 1, 1], [], []>} : vector<8x128xf32>, vector<128x256xf32>, vector<8x256xf32> -> vector<8x256xf32>
    %244 = arith.addf %242, %243 : vector<8x256xf32>
    %245 = vector.extract_strided_slice %244 {offsets = [0, 0], sizes = [8, 128], strides = [1, 1]} : vector<8x256xf32> to vector<8x128xf32>
    %246 = vector.extract_strided_slice %244 {offsets = [0, 128], sizes = [8, 128], strides = [1, 1]} : vector<8x256xf32> to vector<8x128xf32>
    %247 = arith.negf %245 : vector<8x128xf32>
    %248 = math.exp %247 : vector<8x128xf32>
    %cst_50 = arith.constant 1.000000e+00 : f32
    %249 = vector.broadcast %cst_50 : f32 to vector<8x128xf32>
    %250 = arith.addf %249, %248 : vector<8x128xf32>
    %251 = arith.divf %249, %250 : vector<8x128xf32>
    %252 = math.tanh %246 : vector<8x128xf32>
    %253 = arith.negf %246 : vector<8x128xf32>
    %254 = math.exp %253 : vector<8x128xf32>
    %cst_51 = arith.constant 1.000000e+00 : f32
    %255 = vector.broadcast %cst_51 : f32 to vector<8x128xf32>
    %256 = arith.addf %255, %254 : vector<8x128xf32>
    %257 = arith.divf %255, %256 : vector<8x128xf32>
    %258 = arith.select %9, %252, %257 : vector<8x128xi1>, vector<8x128xf32>
    %259 = arith.select %9, %258, %239 : vector<8x128xi1>, vector<8x128xf32>
    %260 = arith.mulf %251, %259 : vector<8x128xf32>
    %c64_i32_52 = arith.constant 64 : i32
    %261 = tpu.dynamic_rotate %260 by %c64_i32_52 dim 1 : vector<8x128xf32>, i32 -> vector<8x128xf32>
    %262 = arith.addf %260, %261 : vector<8x128xf32>
    %263 = math.tanh %262 : vector<8x128xf32>
    %264 = arith.mulf %258, %263 : vector<8x128xf32>
    %265 = vector.extract_strided_slice %5 {offsets = [88, 0], sizes = [8, 256], strides = [1, 1]} : vector<224x256xf32> to vector<8x256xf32>
    %cst_53 = arith.constant dense<0.000000e+00> : vector<8x256xf32>
    %266 = tpu.matmul %264, %6, %cst_53 {dimension_numbers = #tpu.dot_dimension_numbers<[1], [0], [0], [1], [0, 0, 1, 1], [], []>} : vector<8x128xf32>, vector<128x256xf32>, vector<8x256xf32> -> vector<8x256xf32>
    %267 = arith.addf %265, %266 : vector<8x256xf32>
    %268 = vector.extract_strided_slice %267 {offsets = [0, 0], sizes = [8, 128], strides = [1, 1]} : vector<8x256xf32> to vector<8x128xf32>
    %269 = vector.extract_strided_slice %267 {offsets = [0, 128], sizes = [8, 128], strides = [1, 1]} : vector<8x256xf32> to vector<8x128xf32>
    %270 = arith.negf %268 : vector<8x128xf32>
    %271 = math.exp %270 : vector<8x128xf32>
    %cst_54 = arith.constant 1.000000e+00 : f32
    %272 = vector.broadcast %cst_54 : f32 to vector<8x128xf32>
    %273 = arith.addf %272, %271 : vector<8x128xf32>
    %274 = arith.divf %272, %273 : vector<8x128xf32>
    %275 = math.tanh %269 : vector<8x128xf32>
    %276 = arith.negf %269 : vector<8x128xf32>
    %277 = math.exp %276 : vector<8x128xf32>
    %cst_55 = arith.constant 1.000000e+00 : f32
    %278 = vector.broadcast %cst_55 : f32 to vector<8x128xf32>
    %279 = arith.addf %278, %277 : vector<8x128xf32>
    %280 = arith.divf %278, %279 : vector<8x128xf32>
    %281 = arith.select %9, %275, %280 : vector<8x128xi1>, vector<8x128xf32>
    %282 = arith.select %9, %281, %262 : vector<8x128xi1>, vector<8x128xf32>
    %283 = arith.mulf %274, %282 : vector<8x128xf32>
    %c64_i32_56 = arith.constant 64 : i32
    %284 = tpu.dynamic_rotate %283 by %c64_i32_56 dim 1 : vector<8x128xf32>, i32 -> vector<8x128xf32>
    %285 = arith.addf %283, %284 : vector<8x128xf32>
    %286 = math.tanh %285 : vector<8x128xf32>
    %287 = arith.mulf %281, %286 : vector<8x128xf32>
    %288 = vector.extract_strided_slice %5 {offsets = [96, 0], sizes = [8, 256], strides = [1, 1]} : vector<224x256xf32> to vector<8x256xf32>
    %cst_57 = arith.constant dense<0.000000e+00> : vector<8x256xf32>
    %289 = tpu.matmul %287, %6, %cst_57 {dimension_numbers = #tpu.dot_dimension_numbers<[1], [0], [0], [1], [0, 0, 1, 1], [], []>} : vector<8x128xf32>, vector<128x256xf32>, vector<8x256xf32> -> vector<8x256xf32>
    %290 = arith.addf %288, %289 : vector<8x256xf32>
    %291 = vector.extract_strided_slice %290 {offsets = [0, 0], sizes = [8, 128], strides = [1, 1]} : vector<8x256xf32> to vector<8x128xf32>
    %292 = vector.extract_strided_slice %290 {offsets = [0, 128], sizes = [8, 128], strides = [1, 1]} : vector<8x256xf32> to vector<8x128xf32>
    %293 = arith.negf %291 : vector<8x128xf32>
    %294 = math.exp %293 : vector<8x128xf32>
    %cst_58 = arith.constant 1.000000e+00 : f32
    %295 = vector.broadcast %cst_58 : f32 to vector<8x128xf32>
    %296 = arith.addf %295, %294 : vector<8x128xf32>
    %297 = arith.divf %295, %296 : vector<8x128xf32>
    %298 = math.tanh %292 : vector<8x128xf32>
    %299 = arith.negf %292 : vector<8x128xf32>
    %300 = math.exp %299 : vector<8x128xf32>
    %cst_59 = arith.constant 1.000000e+00 : f32
    %301 = vector.broadcast %cst_59 : f32 to vector<8x128xf32>
    %302 = arith.addf %301, %300 : vector<8x128xf32>
    %303 = arith.divf %301, %302 : vector<8x128xf32>
    %304 = arith.select %9, %298, %303 : vector<8x128xi1>, vector<8x128xf32>
    %305 = arith.select %9, %304, %285 : vector<8x128xi1>, vector<8x128xf32>
    %306 = arith.mulf %297, %305 : vector<8x128xf32>
    %c64_i32_60 = arith.constant 64 : i32
    %307 = tpu.dynamic_rotate %306 by %c64_i32_60 dim 1 : vector<8x128xf32>, i32 -> vector<8x128xf32>
    %308 = arith.addf %306, %307 : vector<8x128xf32>
    %309 = math.tanh %308 : vector<8x128xf32>
    %310 = arith.mulf %304, %309 : vector<8x128xf32>
    %311 = vector.extract_strided_slice %5 {offsets = [104, 0], sizes = [8, 256], strides = [1, 1]} : vector<224x256xf32> to vector<8x256xf32>
    %cst_61 = arith.constant dense<0.000000e+00> : vector<8x256xf32>
    %312 = tpu.matmul %310, %6, %cst_61 {dimension_numbers = #tpu.dot_dimension_numbers<[1], [0], [0], [1], [0, 0, 1, 1], [], []>} : vector<8x128xf32>, vector<128x256xf32>, vector<8x256xf32> -> vector<8x256xf32>
    %313 = arith.addf %311, %312 : vector<8x256xf32>
    %314 = vector.extract_strided_slice %313 {offsets = [0, 0], sizes = [8, 128], strides = [1, 1]} : vector<8x256xf32> to vector<8x128xf32>
    %315 = vector.extract_strided_slice %313 {offsets = [0, 128], sizes = [8, 128], strides = [1, 1]} : vector<8x256xf32> to vector<8x128xf32>
    %316 = arith.negf %314 : vector<8x128xf32>
    %317 = math.exp %316 : vector<8x128xf32>
    %cst_62 = arith.constant 1.000000e+00 : f32
    %318 = vector.broadcast %cst_62 : f32 to vector<8x128xf32>
    %319 = arith.addf %318, %317 : vector<8x128xf32>
    %320 = arith.divf %318, %319 : vector<8x128xf32>
    %321 = math.tanh %315 : vector<8x128xf32>
    %322 = arith.negf %315 : vector<8x128xf32>
    %323 = math.exp %322 : vector<8x128xf32>
    %cst_63 = arith.constant 1.000000e+00 : f32
    %324 = vector.broadcast %cst_63 : f32 to vector<8x128xf32>
    %325 = arith.addf %324, %323 : vector<8x128xf32>
    %326 = arith.divf %324, %325 : vector<8x128xf32>
    %327 = arith.select %9, %321, %326 : vector<8x128xi1>, vector<8x128xf32>
    %328 = arith.select %9, %327, %308 : vector<8x128xi1>, vector<8x128xf32>
    %329 = arith.mulf %320, %328 : vector<8x128xf32>
    %c64_i32_64 = arith.constant 64 : i32
    %330 = tpu.dynamic_rotate %329 by %c64_i32_64 dim 1 : vector<8x128xf32>, i32 -> vector<8x128xf32>
    %331 = arith.addf %329, %330 : vector<8x128xf32>
    %332 = math.tanh %331 : vector<8x128xf32>
    %333 = arith.mulf %327, %332 : vector<8x128xf32>
    %334 = vector.extract_strided_slice %5 {offsets = [112, 0], sizes = [8, 256], strides = [1, 1]} : vector<224x256xf32> to vector<8x256xf32>
    %cst_65 = arith.constant dense<0.000000e+00> : vector<8x256xf32>
    %335 = tpu.matmul %333, %6, %cst_65 {dimension_numbers = #tpu.dot_dimension_numbers<[1], [0], [0], [1], [0, 0, 1, 1], [], []>} : vector<8x128xf32>, vector<128x256xf32>, vector<8x256xf32> -> vector<8x256xf32>
    %336 = arith.addf %334, %335 : vector<8x256xf32>
    %337 = vector.extract_strided_slice %336 {offsets = [0, 0], sizes = [8, 128], strides = [1, 1]} : vector<8x256xf32> to vector<8x128xf32>
    %338 = vector.extract_strided_slice %336 {offsets = [0, 128], sizes = [8, 128], strides = [1, 1]} : vector<8x256xf32> to vector<8x128xf32>
    %339 = arith.negf %337 : vector<8x128xf32>
    %340 = math.exp %339 : vector<8x128xf32>
    %cst_66 = arith.constant 1.000000e+00 : f32
    %341 = vector.broadcast %cst_66 : f32 to vector<8x128xf32>
    %342 = arith.addf %341, %340 : vector<8x128xf32>
    %343 = arith.divf %341, %342 : vector<8x128xf32>
    %344 = math.tanh %338 : vector<8x128xf32>
    %345 = arith.negf %338 : vector<8x128xf32>
    %346 = math.exp %345 : vector<8x128xf32>
    %cst_67 = arith.constant 1.000000e+00 : f32
    %347 = vector.broadcast %cst_67 : f32 to vector<8x128xf32>
    %348 = arith.addf %347, %346 : vector<8x128xf32>
    %349 = arith.divf %347, %348 : vector<8x128xf32>
    %350 = arith.select %9, %344, %349 : vector<8x128xi1>, vector<8x128xf32>
    %351 = arith.select %9, %350, %331 : vector<8x128xi1>, vector<8x128xf32>
    %352 = arith.mulf %343, %351 : vector<8x128xf32>
    %c64_i32_68 = arith.constant 64 : i32
    %353 = tpu.dynamic_rotate %352 by %c64_i32_68 dim 1 : vector<8x128xf32>, i32 -> vector<8x128xf32>
    %354 = arith.addf %352, %353 : vector<8x128xf32>
    %355 = math.tanh %354 : vector<8x128xf32>
    %356 = arith.mulf %350, %355 : vector<8x128xf32>
    %357 = vector.extract_strided_slice %5 {offsets = [120, 0], sizes = [8, 256], strides = [1, 1]} : vector<224x256xf32> to vector<8x256xf32>
    %cst_69 = arith.constant dense<0.000000e+00> : vector<8x256xf32>
    %358 = tpu.matmul %356, %6, %cst_69 {dimension_numbers = #tpu.dot_dimension_numbers<[1], [0], [0], [1], [0, 0, 1, 1], [], []>} : vector<8x128xf32>, vector<128x256xf32>, vector<8x256xf32> -> vector<8x256xf32>
    %359 = arith.addf %357, %358 : vector<8x256xf32>
    %360 = vector.extract_strided_slice %359 {offsets = [0, 0], sizes = [8, 128], strides = [1, 1]} : vector<8x256xf32> to vector<8x128xf32>
    %361 = vector.extract_strided_slice %359 {offsets = [0, 128], sizes = [8, 128], strides = [1, 1]} : vector<8x256xf32> to vector<8x128xf32>
    %362 = arith.negf %360 : vector<8x128xf32>
    %363 = math.exp %362 : vector<8x128xf32>
    %cst_70 = arith.constant 1.000000e+00 : f32
    %364 = vector.broadcast %cst_70 : f32 to vector<8x128xf32>
    %365 = arith.addf %364, %363 : vector<8x128xf32>
    %366 = arith.divf %364, %365 : vector<8x128xf32>
    %367 = math.tanh %361 : vector<8x128xf32>
    %368 = arith.negf %361 : vector<8x128xf32>
    %369 = math.exp %368 : vector<8x128xf32>
    %cst_71 = arith.constant 1.000000e+00 : f32
    %370 = vector.broadcast %cst_71 : f32 to vector<8x128xf32>
    %371 = arith.addf %370, %369 : vector<8x128xf32>
    %372 = arith.divf %370, %371 : vector<8x128xf32>
    %373 = arith.select %9, %367, %372 : vector<8x128xi1>, vector<8x128xf32>
    %374 = arith.select %9, %373, %354 : vector<8x128xi1>, vector<8x128xf32>
    %375 = arith.mulf %366, %374 : vector<8x128xf32>
    %c64_i32_72 = arith.constant 64 : i32
    %376 = tpu.dynamic_rotate %375 by %c64_i32_72 dim 1 : vector<8x128xf32>, i32 -> vector<8x128xf32>
    %377 = arith.addf %375, %376 : vector<8x128xf32>
    %378 = math.tanh %377 : vector<8x128xf32>
    %379 = arith.mulf %373, %378 : vector<8x128xf32>
    %380 = vector.extract_strided_slice %5 {offsets = [128, 0], sizes = [8, 256], strides = [1, 1]} : vector<224x256xf32> to vector<8x256xf32>
    %cst_73 = arith.constant dense<0.000000e+00> : vector<8x256xf32>
    %381 = tpu.matmul %379, %6, %cst_73 {dimension_numbers = #tpu.dot_dimension_numbers<[1], [0], [0], [1], [0, 0, 1, 1], [], []>} : vector<8x128xf32>, vector<128x256xf32>, vector<8x256xf32> -> vector<8x256xf32>
    %382 = arith.addf %380, %381 : vector<8x256xf32>
    %383 = vector.extract_strided_slice %382 {offsets = [0, 0], sizes = [8, 128], strides = [1, 1]} : vector<8x256xf32> to vector<8x128xf32>
    %384 = vector.extract_strided_slice %382 {offsets = [0, 128], sizes = [8, 128], strides = [1, 1]} : vector<8x256xf32> to vector<8x128xf32>
    %385 = arith.negf %383 : vector<8x128xf32>
    %386 = math.exp %385 : vector<8x128xf32>
    %cst_74 = arith.constant 1.000000e+00 : f32
    %387 = vector.broadcast %cst_74 : f32 to vector<8x128xf32>
    %388 = arith.addf %387, %386 : vector<8x128xf32>
    %389 = arith.divf %387, %388 : vector<8x128xf32>
    %390 = math.tanh %384 : vector<8x128xf32>
    %391 = arith.negf %384 : vector<8x128xf32>
    %392 = math.exp %391 : vector<8x128xf32>
    %cst_75 = arith.constant 1.000000e+00 : f32
    %393 = vector.broadcast %cst_75 : f32 to vector<8x128xf32>
    %394 = arith.addf %393, %392 : vector<8x128xf32>
    %395 = arith.divf %393, %394 : vector<8x128xf32>
    %396 = arith.select %9, %390, %395 : vector<8x128xi1>, vector<8x128xf32>
    %397 = arith.select %9, %396, %377 : vector<8x128xi1>, vector<8x128xf32>
    %398 = arith.mulf %389, %397 : vector<8x128xf32>
    %c64_i32_76 = arith.constant 64 : i32
    %399 = tpu.dynamic_rotate %398 by %c64_i32_76 dim 1 : vector<8x128xf32>, i32 -> vector<8x128xf32>
    %400 = arith.addf %398, %399 : vector<8x128xf32>
    %401 = math.tanh %400 : vector<8x128xf32>
    %402 = arith.mulf %396, %401 : vector<8x128xf32>
    %403 = vector.extract_strided_slice %5 {offsets = [136, 0], sizes = [8, 256], strides = [1, 1]} : vector<224x256xf32> to vector<8x256xf32>
    %cst_77 = arith.constant dense<0.000000e+00> : vector<8x256xf32>
    %404 = tpu.matmul %402, %6, %cst_77 {dimension_numbers = #tpu.dot_dimension_numbers<[1], [0], [0], [1], [0, 0, 1, 1], [], []>} : vector<8x128xf32>, vector<128x256xf32>, vector<8x256xf32> -> vector<8x256xf32>
    %405 = arith.addf %403, %404 : vector<8x256xf32>
    %406 = vector.extract_strided_slice %405 {offsets = [0, 0], sizes = [8, 128], strides = [1, 1]} : vector<8x256xf32> to vector<8x128xf32>
    %407 = vector.extract_strided_slice %405 {offsets = [0, 128], sizes = [8, 128], strides = [1, 1]} : vector<8x256xf32> to vector<8x128xf32>
    %408 = arith.negf %406 : vector<8x128xf32>
    %409 = math.exp %408 : vector<8x128xf32>
    %cst_78 = arith.constant 1.000000e+00 : f32
    %410 = vector.broadcast %cst_78 : f32 to vector<8x128xf32>
    %411 = arith.addf %410, %409 : vector<8x128xf32>
    %412 = arith.divf %410, %411 : vector<8x128xf32>
    %413 = math.tanh %407 : vector<8x128xf32>
    %414 = arith.negf %407 : vector<8x128xf32>
    %415 = math.exp %414 : vector<8x128xf32>
    %cst_79 = arith.constant 1.000000e+00 : f32
    %416 = vector.broadcast %cst_79 : f32 to vector<8x128xf32>
    %417 = arith.addf %416, %415 : vector<8x128xf32>
    %418 = arith.divf %416, %417 : vector<8x128xf32>
    %419 = arith.select %9, %413, %418 : vector<8x128xi1>, vector<8x128xf32>
    %420 = arith.select %9, %419, %400 : vector<8x128xi1>, vector<8x128xf32>
    %421 = arith.mulf %412, %420 : vector<8x128xf32>
    %c64_i32_80 = arith.constant 64 : i32
    %422 = tpu.dynamic_rotate %421 by %c64_i32_80 dim 1 : vector<8x128xf32>, i32 -> vector<8x128xf32>
    %423 = arith.addf %421, %422 : vector<8x128xf32>
    %424 = math.tanh %423 : vector<8x128xf32>
    %425 = arith.mulf %419, %424 : vector<8x128xf32>
    %426 = vector.extract_strided_slice %5 {offsets = [144, 0], sizes = [8, 256], strides = [1, 1]} : vector<224x256xf32> to vector<8x256xf32>
    %cst_81 = arith.constant dense<0.000000e+00> : vector<8x256xf32>
    %427 = tpu.matmul %425, %6, %cst_81 {dimension_numbers = #tpu.dot_dimension_numbers<[1], [0], [0], [1], [0, 0, 1, 1], [], []>} : vector<8x128xf32>, vector<128x256xf32>, vector<8x256xf32> -> vector<8x256xf32>
    %428 = arith.addf %426, %427 : vector<8x256xf32>
    %429 = vector.extract_strided_slice %428 {offsets = [0, 0], sizes = [8, 128], strides = [1, 1]} : vector<8x256xf32> to vector<8x128xf32>
    %430 = vector.extract_strided_slice %428 {offsets = [0, 128], sizes = [8, 128], strides = [1, 1]} : vector<8x256xf32> to vector<8x128xf32>
    %431 = arith.negf %429 : vector<8x128xf32>
    %432 = math.exp %431 : vector<8x128xf32>
    %cst_82 = arith.constant 1.000000e+00 : f32
    %433 = vector.broadcast %cst_82 : f32 to vector<8x128xf32>
    %434 = arith.addf %433, %432 : vector<8x128xf32>
    %435 = arith.divf %433, %434 : vector<8x128xf32>
    %436 = math.tanh %430 : vector<8x128xf32>
    %437 = arith.negf %430 : vector<8x128xf32>
    %438 = math.exp %437 : vector<8x128xf32>
    %cst_83 = arith.constant 1.000000e+00 : f32
    %439 = vector.broadcast %cst_83 : f32 to vector<8x128xf32>
    %440 = arith.addf %439, %438 : vector<8x128xf32>
    %441 = arith.divf %439, %440 : vector<8x128xf32>
    %442 = arith.select %9, %436, %441 : vector<8x128xi1>, vector<8x128xf32>
    %443 = arith.select %9, %442, %423 : vector<8x128xi1>, vector<8x128xf32>
    %444 = arith.mulf %435, %443 : vector<8x128xf32>
    %c64_i32_84 = arith.constant 64 : i32
    %445 = tpu.dynamic_rotate %444 by %c64_i32_84 dim 1 : vector<8x128xf32>, i32 -> vector<8x128xf32>
    %446 = arith.addf %444, %445 : vector<8x128xf32>
    %447 = math.tanh %446 : vector<8x128xf32>
    %448 = arith.mulf %442, %447 : vector<8x128xf32>
    %449 = vector.extract_strided_slice %5 {offsets = [152, 0], sizes = [8, 256], strides = [1, 1]} : vector<224x256xf32> to vector<8x256xf32>
    %cst_85 = arith.constant dense<0.000000e+00> : vector<8x256xf32>
    %450 = tpu.matmul %448, %6, %cst_85 {dimension_numbers = #tpu.dot_dimension_numbers<[1], [0], [0], [1], [0, 0, 1, 1], [], []>} : vector<8x128xf32>, vector<128x256xf32>, vector<8x256xf32> -> vector<8x256xf32>
    %451 = arith.addf %449, %450 : vector<8x256xf32>
    %452 = vector.extract_strided_slice %451 {offsets = [0, 0], sizes = [8, 128], strides = [1, 1]} : vector<8x256xf32> to vector<8x128xf32>
    %453 = vector.extract_strided_slice %451 {offsets = [0, 128], sizes = [8, 128], strides = [1, 1]} : vector<8x256xf32> to vector<8x128xf32>
    %454 = arith.negf %452 : vector<8x128xf32>
    %455 = math.exp %454 : vector<8x128xf32>
    %cst_86 = arith.constant 1.000000e+00 : f32
    %456 = vector.broadcast %cst_86 : f32 to vector<8x128xf32>
    %457 = arith.addf %456, %455 : vector<8x128xf32>
    %458 = arith.divf %456, %457 : vector<8x128xf32>
    %459 = math.tanh %453 : vector<8x128xf32>
    %460 = arith.negf %453 : vector<8x128xf32>
    %461 = math.exp %460 : vector<8x128xf32>
    %cst_87 = arith.constant 1.000000e+00 : f32
    %462 = vector.broadcast %cst_87 : f32 to vector<8x128xf32>
    %463 = arith.addf %462, %461 : vector<8x128xf32>
    %464 = arith.divf %462, %463 : vector<8x128xf32>
    %465 = arith.select %9, %459, %464 : vector<8x128xi1>, vector<8x128xf32>
    %466 = arith.select %9, %465, %446 : vector<8x128xi1>, vector<8x128xf32>
    %467 = arith.mulf %458, %466 : vector<8x128xf32>
    %c64_i32_88 = arith.constant 64 : i32
    %468 = tpu.dynamic_rotate %467 by %c64_i32_88 dim 1 : vector<8x128xf32>, i32 -> vector<8x128xf32>
    %469 = arith.addf %467, %468 : vector<8x128xf32>
    %470 = math.tanh %469 : vector<8x128xf32>
    %471 = arith.mulf %465, %470 : vector<8x128xf32>
    %472 = vector.extract_strided_slice %5 {offsets = [160, 0], sizes = [8, 256], strides = [1, 1]} : vector<224x256xf32> to vector<8x256xf32>
    %cst_89 = arith.constant dense<0.000000e+00> : vector<8x256xf32>
    %473 = tpu.matmul %471, %6, %cst_89 {dimension_numbers = #tpu.dot_dimension_numbers<[1], [0], [0], [1], [0, 0, 1, 1], [], []>} : vector<8x128xf32>, vector<128x256xf32>, vector<8x256xf32> -> vector<8x256xf32>
    %474 = arith.addf %472, %473 : vector<8x256xf32>
    %475 = vector.extract_strided_slice %474 {offsets = [0, 0], sizes = [8, 128], strides = [1, 1]} : vector<8x256xf32> to vector<8x128xf32>
    %476 = vector.extract_strided_slice %474 {offsets = [0, 128], sizes = [8, 128], strides = [1, 1]} : vector<8x256xf32> to vector<8x128xf32>
    %477 = arith.negf %475 : vector<8x128xf32>
    %478 = math.exp %477 : vector<8x128xf32>
    %cst_90 = arith.constant 1.000000e+00 : f32
    %479 = vector.broadcast %cst_90 : f32 to vector<8x128xf32>
    %480 = arith.addf %479, %478 : vector<8x128xf32>
    %481 = arith.divf %479, %480 : vector<8x128xf32>
    %482 = math.tanh %476 : vector<8x128xf32>
    %483 = arith.negf %476 : vector<8x128xf32>
    %484 = math.exp %483 : vector<8x128xf32>
    %cst_91 = arith.constant 1.000000e+00 : f32
    %485 = vector.broadcast %cst_91 : f32 to vector<8x128xf32>
    %486 = arith.addf %485, %484 : vector<8x128xf32>
    %487 = arith.divf %485, %486 : vector<8x128xf32>
    %488 = arith.select %9, %482, %487 : vector<8x128xi1>, vector<8x128xf32>
    %489 = arith.select %9, %488, %469 : vector<8x128xi1>, vector<8x128xf32>
    %490 = arith.mulf %481, %489 : vector<8x128xf32>
    %c64_i32_92 = arith.constant 64 : i32
    %491 = tpu.dynamic_rotate %490 by %c64_i32_92 dim 1 : vector<8x128xf32>, i32 -> vector<8x128xf32>
    %492 = arith.addf %490, %491 : vector<8x128xf32>
    %493 = math.tanh %492 : vector<8x128xf32>
    %494 = arith.mulf %488, %493 : vector<8x128xf32>
    %495 = vector.extract_strided_slice %5 {offsets = [168, 0], sizes = [8, 256], strides = [1, 1]} : vector<224x256xf32> to vector<8x256xf32>
    %cst_93 = arith.constant dense<0.000000e+00> : vector<8x256xf32>
    %496 = tpu.matmul %494, %6, %cst_93 {dimension_numbers = #tpu.dot_dimension_numbers<[1], [0], [0], [1], [0, 0, 1, 1], [], []>} : vector<8x128xf32>, vector<128x256xf32>, vector<8x256xf32> -> vector<8x256xf32>
    %497 = arith.addf %495, %496 : vector<8x256xf32>
    %498 = vector.extract_strided_slice %497 {offsets = [0, 0], sizes = [8, 128], strides = [1, 1]} : vector<8x256xf32> to vector<8x128xf32>
    %499 = vector.extract_strided_slice %497 {offsets = [0, 128], sizes = [8, 128], strides = [1, 1]} : vector<8x256xf32> to vector<8x128xf32>
    %500 = arith.negf %498 : vector<8x128xf32>
    %501 = math.exp %500 : vector<8x128xf32>
    %cst_94 = arith.constant 1.000000e+00 : f32
    %502 = vector.broadcast %cst_94 : f32 to vector<8x128xf32>
    %503 = arith.addf %502, %501 : vector<8x128xf32>
    %504 = arith.divf %502, %503 : vector<8x128xf32>
    %505 = math.tanh %499 : vector<8x128xf32>
    %506 = arith.negf %499 : vector<8x128xf32>
    %507 = math.exp %506 : vector<8x128xf32>
    %cst_95 = arith.constant 1.000000e+00 : f32
    %508 = vector.broadcast %cst_95 : f32 to vector<8x128xf32>
    %509 = arith.addf %508, %507 : vector<8x128xf32>
    %510 = arith.divf %508, %509 : vector<8x128xf32>
    %511 = arith.select %9, %505, %510 : vector<8x128xi1>, vector<8x128xf32>
    %512 = arith.select %9, %511, %492 : vector<8x128xi1>, vector<8x128xf32>
    %513 = arith.mulf %504, %512 : vector<8x128xf32>
    %c64_i32_96 = arith.constant 64 : i32
    %514 = tpu.dynamic_rotate %513 by %c64_i32_96 dim 1 : vector<8x128xf32>, i32 -> vector<8x128xf32>
    %515 = arith.addf %513, %514 : vector<8x128xf32>
    %516 = math.tanh %515 : vector<8x128xf32>
    %517 = arith.mulf %511, %516 : vector<8x128xf32>
    %518 = vector.extract_strided_slice %5 {offsets = [176, 0], sizes = [8, 256], strides = [1, 1]} : vector<224x256xf32> to vector<8x256xf32>
    %cst_97 = arith.constant dense<0.000000e+00> : vector<8x256xf32>
    %519 = tpu.matmul %517, %6, %cst_97 {dimension_numbers = #tpu.dot_dimension_numbers<[1], [0], [0], [1], [0, 0, 1, 1], [], []>} : vector<8x128xf32>, vector<128x256xf32>, vector<8x256xf32> -> vector<8x256xf32>
    %520 = arith.addf %518, %519 : vector<8x256xf32>
    %521 = vector.extract_strided_slice %520 {offsets = [0, 0], sizes = [8, 128], strides = [1, 1]} : vector<8x256xf32> to vector<8x128xf32>
    %522 = vector.extract_strided_slice %520 {offsets = [0, 128], sizes = [8, 128], strides = [1, 1]} : vector<8x256xf32> to vector<8x128xf32>
    %523 = arith.negf %521 : vector<8x128xf32>
    %524 = math.exp %523 : vector<8x128xf32>
    %cst_98 = arith.constant 1.000000e+00 : f32
    %525 = vector.broadcast %cst_98 : f32 to vector<8x128xf32>
    %526 = arith.addf %525, %524 : vector<8x128xf32>
    %527 = arith.divf %525, %526 : vector<8x128xf32>
    %528 = math.tanh %522 : vector<8x128xf32>
    %529 = arith.negf %522 : vector<8x128xf32>
    %530 = math.exp %529 : vector<8x128xf32>
    %cst_99 = arith.constant 1.000000e+00 : f32
    %531 = vector.broadcast %cst_99 : f32 to vector<8x128xf32>
    %532 = arith.addf %531, %530 : vector<8x128xf32>
    %533 = arith.divf %531, %532 : vector<8x128xf32>
    %534 = arith.select %9, %528, %533 : vector<8x128xi1>, vector<8x128xf32>
    %535 = arith.select %9, %534, %515 : vector<8x128xi1>, vector<8x128xf32>
    %536 = arith.mulf %527, %535 : vector<8x128xf32>
    %c64_i32_100 = arith.constant 64 : i32
    %537 = tpu.dynamic_rotate %536 by %c64_i32_100 dim 1 : vector<8x128xf32>, i32 -> vector<8x128xf32>
    %538 = arith.addf %536, %537 : vector<8x128xf32>
    %539 = math.tanh %538 : vector<8x128xf32>
    %540 = arith.mulf %534, %539 : vector<8x128xf32>
    %541 = vector.extract_strided_slice %5 {offsets = [184, 0], sizes = [8, 256], strides = [1, 1]} : vector<224x256xf32> to vector<8x256xf32>
    %cst_101 = arith.constant dense<0.000000e+00> : vector<8x256xf32>
    %542 = tpu.matmul %540, %6, %cst_101 {dimension_numbers = #tpu.dot_dimension_numbers<[1], [0], [0], [1], [0, 0, 1, 1], [], []>} : vector<8x128xf32>, vector<128x256xf32>, vector<8x256xf32> -> vector<8x256xf32>
    %543 = arith.addf %541, %542 : vector<8x256xf32>
    %544 = vector.extract_strided_slice %543 {offsets = [0, 0], sizes = [8, 128], strides = [1, 1]} : vector<8x256xf32> to vector<8x128xf32>
    %545 = vector.extract_strided_slice %543 {offsets = [0, 128], sizes = [8, 128], strides = [1, 1]} : vector<8x256xf32> to vector<8x128xf32>
    %546 = arith.negf %544 : vector<8x128xf32>
    %547 = math.exp %546 : vector<8x128xf32>
    %cst_102 = arith.constant 1.000000e+00 : f32
    %548 = vector.broadcast %cst_102 : f32 to vector<8x128xf32>
    %549 = arith.addf %548, %547 : vector<8x128xf32>
    %550 = arith.divf %548, %549 : vector<8x128xf32>
    %551 = math.tanh %545 : vector<8x128xf32>
    %552 = arith.negf %545 : vector<8x128xf32>
    %553 = math.exp %552 : vector<8x128xf32>
    %cst_103 = arith.constant 1.000000e+00 : f32
    %554 = vector.broadcast %cst_103 : f32 to vector<8x128xf32>
    %555 = arith.addf %554, %553 : vector<8x128xf32>
    %556 = arith.divf %554, %555 : vector<8x128xf32>
    %557 = arith.select %9, %551, %556 : vector<8x128xi1>, vector<8x128xf32>
    %558 = arith.select %9, %557, %538 : vector<8x128xi1>, vector<8x128xf32>
    %559 = arith.mulf %550, %558 : vector<8x128xf32>
    %c64_i32_104 = arith.constant 64 : i32
    %560 = tpu.dynamic_rotate %559 by %c64_i32_104 dim 1 : vector<8x128xf32>, i32 -> vector<8x128xf32>
    %561 = arith.addf %559, %560 : vector<8x128xf32>
    %562 = math.tanh %561 : vector<8x128xf32>
    %563 = arith.mulf %557, %562 : vector<8x128xf32>
    %564 = vector.extract_strided_slice %5 {offsets = [192, 0], sizes = [8, 256], strides = [1, 1]} : vector<224x256xf32> to vector<8x256xf32>
    %cst_105 = arith.constant dense<0.000000e+00> : vector<8x256xf32>
    %565 = tpu.matmul %563, %6, %cst_105 {dimension_numbers = #tpu.dot_dimension_numbers<[1], [0], [0], [1], [0, 0, 1, 1], [], []>} : vector<8x128xf32>, vector<128x256xf32>, vector<8x256xf32> -> vector<8x256xf32>
    %566 = arith.addf %564, %565 : vector<8x256xf32>
    %567 = vector.extract_strided_slice %566 {offsets = [0, 0], sizes = [8, 128], strides = [1, 1]} : vector<8x256xf32> to vector<8x128xf32>
    %568 = vector.extract_strided_slice %566 {offsets = [0, 128], sizes = [8, 128], strides = [1, 1]} : vector<8x256xf32> to vector<8x128xf32>
    %569 = arith.negf %567 : vector<8x128xf32>
    %570 = math.exp %569 : vector<8x128xf32>
    %cst_106 = arith.constant 1.000000e+00 : f32
    %571 = vector.broadcast %cst_106 : f32 to vector<8x128xf32>
    %572 = arith.addf %571, %570 : vector<8x128xf32>
    %573 = arith.divf %571, %572 : vector<8x128xf32>
    %574 = math.tanh %568 : vector<8x128xf32>
    %575 = arith.negf %568 : vector<8x128xf32>
    %576 = math.exp %575 : vector<8x128xf32>
    %cst_107 = arith.constant 1.000000e+00 : f32
    %577 = vector.broadcast %cst_107 : f32 to vector<8x128xf32>
    %578 = arith.addf %577, %576 : vector<8x128xf32>
    %579 = arith.divf %577, %578 : vector<8x128xf32>
    %580 = arith.select %9, %574, %579 : vector<8x128xi1>, vector<8x128xf32>
    %581 = arith.select %9, %580, %561 : vector<8x128xi1>, vector<8x128xf32>
    %582 = arith.mulf %573, %581 : vector<8x128xf32>
    %c64_i32_108 = arith.constant 64 : i32
    %583 = tpu.dynamic_rotate %582 by %c64_i32_108 dim 1 : vector<8x128xf32>, i32 -> vector<8x128xf32>
    %584 = arith.addf %582, %583 : vector<8x128xf32>
    %585 = math.tanh %584 : vector<8x128xf32>
    %586 = arith.mulf %580, %585 : vector<8x128xf32>
    %587 = vector.extract_strided_slice %5 {offsets = [200, 0], sizes = [8, 256], strides = [1, 1]} : vector<224x256xf32> to vector<8x256xf32>
    %cst_109 = arith.constant dense<0.000000e+00> : vector<8x256xf32>
    %588 = tpu.matmul %586, %6, %cst_109 {dimension_numbers = #tpu.dot_dimension_numbers<[1], [0], [0], [1], [0, 0, 1, 1], [], []>} : vector<8x128xf32>, vector<128x256xf32>, vector<8x256xf32> -> vector<8x256xf32>
    %589 = arith.addf %587, %588 : vector<8x256xf32>
    %590 = vector.extract_strided_slice %589 {offsets = [0, 0], sizes = [8, 128], strides = [1, 1]} : vector<8x256xf32> to vector<8x128xf32>
    %591 = vector.extract_strided_slice %589 {offsets = [0, 128], sizes = [8, 128], strides = [1, 1]} : vector<8x256xf32> to vector<8x128xf32>
    %592 = arith.negf %590 : vector<8x128xf32>
    %593 = math.exp %592 : vector<8x128xf32>
    %cst_110 = arith.constant 1.000000e+00 : f32
    %594 = vector.broadcast %cst_110 : f32 to vector<8x128xf32>
    %595 = arith.addf %594, %593 : vector<8x128xf32>
    %596 = arith.divf %594, %595 : vector<8x128xf32>
    %597 = math.tanh %591 : vector<8x128xf32>
    %598 = arith.negf %591 : vector<8x128xf32>
    %599 = math.exp %598 : vector<8x128xf32>
    %cst_111 = arith.constant 1.000000e+00 : f32
    %600 = vector.broadcast %cst_111 : f32 to vector<8x128xf32>
    %601 = arith.addf %600, %599 : vector<8x128xf32>
    %602 = arith.divf %600, %601 : vector<8x128xf32>
    %603 = arith.select %9, %597, %602 : vector<8x128xi1>, vector<8x128xf32>
    %604 = arith.select %9, %603, %584 : vector<8x128xi1>, vector<8x128xf32>
    %605 = arith.mulf %596, %604 : vector<8x128xf32>
    %c64_i32_112 = arith.constant 64 : i32
    %606 = tpu.dynamic_rotate %605 by %c64_i32_112 dim 1 : vector<8x128xf32>, i32 -> vector<8x128xf32>
    %607 = arith.addf %605, %606 : vector<8x128xf32>
    %608 = math.tanh %607 : vector<8x128xf32>
    %609 = arith.mulf %603, %608 : vector<8x128xf32>
    %610 = vector.extract_strided_slice %5 {offsets = [208, 0], sizes = [8, 256], strides = [1, 1]} : vector<224x256xf32> to vector<8x256xf32>
    %cst_113 = arith.constant dense<0.000000e+00> : vector<8x256xf32>
    %611 = tpu.matmul %609, %6, %cst_113 {dimension_numbers = #tpu.dot_dimension_numbers<[1], [0], [0], [1], [0, 0, 1, 1], [], []>} : vector<8x128xf32>, vector<128x256xf32>, vector<8x256xf32> -> vector<8x256xf32>
    %612 = arith.addf %610, %611 : vector<8x256xf32>
    %613 = vector.extract_strided_slice %612 {offsets = [0, 0], sizes = [8, 128], strides = [1, 1]} : vector<8x256xf32> to vector<8x128xf32>
    %614 = vector.extract_strided_slice %612 {offsets = [0, 128], sizes = [8, 128], strides = [1, 1]} : vector<8x256xf32> to vector<8x128xf32>
    %615 = arith.negf %613 : vector<8x128xf32>
    %616 = math.exp %615 : vector<8x128xf32>
    %cst_114 = arith.constant 1.000000e+00 : f32
    %617 = vector.broadcast %cst_114 : f32 to vector<8x128xf32>
    %618 = arith.addf %617, %616 : vector<8x128xf32>
    %619 = arith.divf %617, %618 : vector<8x128xf32>
    %620 = math.tanh %614 : vector<8x128xf32>
    %621 = arith.negf %614 : vector<8x128xf32>
    %622 = math.exp %621 : vector<8x128xf32>
    %cst_115 = arith.constant 1.000000e+00 : f32
    %623 = vector.broadcast %cst_115 : f32 to vector<8x128xf32>
    %624 = arith.addf %623, %622 : vector<8x128xf32>
    %625 = arith.divf %623, %624 : vector<8x128xf32>
    %626 = arith.select %9, %620, %625 : vector<8x128xi1>, vector<8x128xf32>
    %627 = arith.select %9, %626, %607 : vector<8x128xi1>, vector<8x128xf32>
    %628 = arith.mulf %619, %627 : vector<8x128xf32>
    %c64_i32_116 = arith.constant 64 : i32
    %629 = tpu.dynamic_rotate %628 by %c64_i32_116 dim 1 : vector<8x128xf32>, i32 -> vector<8x128xf32>
    %630 = arith.addf %628, %629 : vector<8x128xf32>
    %631 = math.tanh %630 : vector<8x128xf32>
    %632 = arith.mulf %626, %631 : vector<8x128xf32>
    %633 = vector.extract_strided_slice %5 {offsets = [216, 0], sizes = [8, 256], strides = [1, 1]} : vector<224x256xf32> to vector<8x256xf32>
    %cst_117 = arith.constant dense<0.000000e+00> : vector<8x256xf32>
    %634 = tpu.matmul %632, %6, %cst_117 {dimension_numbers = #tpu.dot_dimension_numbers<[1], [0], [0], [1], [0, 0, 1, 1], [], []>} : vector<8x128xf32>, vector<128x256xf32>, vector<8x256xf32> -> vector<8x256xf32>
    %635 = arith.addf %633, %634 : vector<8x256xf32>
    %636 = vector.extract_strided_slice %635 {offsets = [0, 0], sizes = [8, 128], strides = [1, 1]} : vector<8x256xf32> to vector<8x128xf32>
    %637 = vector.extract_strided_slice %635 {offsets = [0, 128], sizes = [8, 128], strides = [1, 1]} : vector<8x256xf32> to vector<8x128xf32>
    %638 = arith.negf %636 : vector<8x128xf32>
    %639 = math.exp %638 : vector<8x128xf32>
    %cst_118 = arith.constant 1.000000e+00 : f32
    %640 = vector.broadcast %cst_118 : f32 to vector<8x128xf32>
    %641 = arith.addf %640, %639 : vector<8x128xf32>
    %642 = arith.divf %640, %641 : vector<8x128xf32>
    %643 = math.tanh %637 : vector<8x128xf32>
    %644 = arith.negf %637 : vector<8x128xf32>
    %645 = math.exp %644 : vector<8x128xf32>
    %cst_119 = arith.constant 1.000000e+00 : f32
    %646 = vector.broadcast %cst_119 : f32 to vector<8x128xf32>
    %647 = arith.addf %646, %645 : vector<8x128xf32>
    %648 = arith.divf %646, %647 : vector<8x128xf32>
    %649 = arith.select %9, %643, %648 : vector<8x128xi1>, vector<8x128xf32>
    %650 = arith.select %9, %649, %630 : vector<8x128xi1>, vector<8x128xf32>
    %651 = arith.mulf %642, %650 : vector<8x128xf32>
    %c64_i32_120 = arith.constant 64 : i32
    %652 = tpu.dynamic_rotate %651 by %c64_i32_120 dim 1 : vector<8x128xf32>, i32 -> vector<8x128xf32>
    %653 = arith.addf %651, %652 : vector<8x128xf32>
    %654 = math.tanh %653 : vector<8x128xf32>
    %655 = arith.mulf %649, %654 : vector<8x128xf32>
    %c0_121 = arith.constant 0 : index
    %c0_122 = arith.constant 0 : index
    %656 = vector.load %arg4[%c0_121, %c0_122] : memref<128x10xf32, #tpu.memory_space<vmem>>, vector<128x10xf32>
    %cst_123 = arith.constant dense<0.000000e+00> : vector<8x10xf32>
    %657 = tpu.matmul %655, %656, %cst_123 {dimension_numbers = #tpu.dot_dimension_numbers<[1], [0], [0], [1], [0, 0, 1, 1], [], []>} : vector<8x128xf32>, vector<128x10xf32>, vector<8x10xf32> -> vector<8x10xf32>
    %c0_124 = arith.constant 0 : index
    %c0_125 = arith.constant 0 : index
    %658 = vector.load %arg5[%c0_124, %c0_125] : memref<1x10xf32, #tpu.memory_space<vmem>>, vector<1x10xf32>
    %659 = vector.broadcast %658 : vector<1x10xf32> to vector<8x10xf32>
    %660 = arith.addf %657, %659 : vector<8x10xf32>
    %c0_126 = arith.constant 0 : index
    %c0_127 = arith.constant 0 : index
    %661 = vector.load %arg6[%c0_126, %c0_127] : memref<8x10xf32, #tpu.memory_space<vmem>>, vector<8x10xf32>
    tpu.vector_store %arg6[%c0_126, %c0_127], %660 {strides = array<i32>} : memref<8x10xf32, #tpu.memory_space<vmem>>, vector<8x10xf32>,
    return
  }
}

</mosaic_0001>

<bundles_post_ra>
// kernel: tpu_custom_call.1
= control target key start
LH: loop header
LB: loop body
LE: loop exit
PB: predicated region body
PF: predicated region fallthrough
CT: control target
= control target key end

     0   :  { %vm157_vm0 = vcmask 1043456   ;;  %v5915_v7 = vmov 0.0   ;;  %vm4721_vm1 = vmmov 1   ;;  %vm72_vm3 = vcmask 228352   ;;  %s5908_s0 = inlined_call_operand.vmem [shape: f32[224,28], index: 0, kind: input, shape index: {}]   ;;  %s5909_s1 = inlined_call_operand.vmem [shape: f32[28,256], index: 1, kind: input, shape index: {}]   ;;  %s5910_s2 = inlined_call_operand.vmem [shape: f32[128,256], index: 2, kind: input, shape index: {}]   ;;  %s5911_s3 = inlined_call_operand.vmem [shape: f32[1,256], index: 3, kind: input, shape index: {}]   ;;  %s5912_s4 = inlined_call_operand.vmem [shape: f32[128,10], index: 4, kind: input, shape index: {}]   ;;  %s5913_s5 = inlined_call_operand.vmem [shape: f32[1,10], index: 5, kind: input, shape index: {}]   ;;  %s5914_s6 = inlined_call_operand.hbm [shape: f32[8,10], index: 6, kind: output, shape index: {}]  }
   0x1   :  { %v53_v0 = vld [vmem:[%s5909_s1 + $0x8] sm:$0xff]  ;;  %v55_v1 = vld [vmem:[%s5909_s1 + $0x18] sm:$0xff]  ;;  %v52_v2 = vld [vmem:[%s5909_s1] sm:$0xff]  ;;  %228 = vmatprep.mubr.f32.mxu1 %v5915_v7  ;;  %1624 = vmatprep.mubr.f32.mxu0 %v5915_v7 }
   0x2   :  { %v3312_v3 = vpack.c.bf16 %v55_v1, %v53_v0  ;;  %v54_v4 = vld [vmem:[%s5909_s1 + $0x10] sm:$0xff]  ;;  %v57_v5 = vld [vmem:[%s5909_s1 + $0x28] sm:$0xff]  ;;  %v59_v6 = vld [vmem:[%s5909_s1 + $0x38] sm:$0xf] }
   0x3   :  { %v3314_v8 = vpack.c.bf16 %v54_v4, %v52_v2  ;;  %v3316_v9 = vpack.c.bf16 %v59_v6, %v57_v5  ;;  %vm4781_vm2 = vmpackc.low %vm157_vm0, %vm4721_vm1  ;;  %v56_v11 = vld [vmem:[%s5909_s1 + $0x20] sm:$0xff]  ;;  %v58_v12 = vld [vmem:[%s5909_s1 + $0x30] sm:$0xf] }
   0x4   :  { %3313 = vmatprep.subr.bf16.mxu1 %v3312_v3  ;;  %v398_v13 = vld [vmem:[%s5910_s2 + $0x8] sm:$0xff]  ;;  %v400_v14 = vld [vmem:[%s5910_s2 + $0x18] sm:$0xff]  ;;  %v3319_v15 = vpack.c.bf16 %v58_v12, %v56_v11  ;;  %v397_v17 = vld [vmem:[%s5910_s2] sm:$0xff] }
   0x5   :  { %3315 = vmatpush1.bf16.msra.mxu1 %v3314_v8  ;;  %v4797_v16 = vpack.c.bf16 %v400_v14, %v398_v13  ;;  %v399_v18 = vld [vmem:[%s5910_s2 + $0x10] sm:$0xff]  ;;  %v402_v20 = vld [vmem:[%s5910_s2 + $0x28] sm:$0xff]  ;;  %v404_v21 = vld [vmem:[%s5910_s2 + $0x38] sm:$0xff] }
   0x6   :  { %3318 = vmatprep.subr.msk.bf16.mxu1 %vm4781_vm2, %v3316_v9  ;;  %v4807_v19 = vpack.c.bf16 %v399_v18, %v397_v17  ;;  %v401_v22 = vld [vmem:[%s5910_s2 + $0x20] sm:$0xff]  ;;  %v403_v23 = vld [vmem:[%s5910_s2 + $0x30] sm:$0xff]  ;;  %v4822_v24 = vpack.c.bf16 %v404_v21, %v402_v20  ;;  %v406_v26 = vld [vmem:[%s5910_s2 + $0x48] sm:$0xff] }
   0x7   :  { %3707 = vmatprep.subr.bf16.mxu0 %v4797_v16  ;;  %v24_v25 = vld [vmem:[%s5908_s0] sm:$0xff]  ;;  %v408_v27 = vld [vmem:[%s5910_s2 + $0x58] sm:$0xff]  ;;  %v4837_v28 = vpack.c.bf16 %v403_v23, %v401_v22  ;;  %v407_v30 = vld [vmem:[%s5910_s2 + $0x50] sm:$0xff] }
   0x8   :  { %3709 = vmatpush1.bf16.msra.mxu0 %v4807_v19  ;;  %v405_v29 = vld [vmem:[%s5910_s2 + $0x40] sm:$0xff]  ;;  %v4847_v31 = vpack.c.bf16 %v408_v27, %v406_v26  ;;  %v25_v32 = vld [vmem:[%s5908_s0 + $0x8] sm:$0xff]  ;;  %v412_v34 = vld [vmem:[%s5910_s2 + $0x78] sm:$0xff] }
   0x9   :  { %3321 = vmatpush1.bf16.msk.msra.mxu1 %vm4781_vm2, %v3319_v15  ;;  %3711 = vmatprep.subr.bf16.mxu0 %v4822_v24  ;;  %v410_v33 = vld [vmem:[%s5910_s2 + $0x68] sm:$0xff]  ;;  %v4862_v35 = vpack.c.bf16 %v407_v30, %v405_v29  ;;  %v409_v36 = vld [vmem:[%s5910_s2 + $0x60] sm:$0xff]  ;;  %v411_v37 = vld [vmem:[%s5910_s2 + $0x70] sm:$0xff] }
   0xa   :  { %3323 = vmatprep.subr.bf16.mxu1 %v4797_v16  ;;  %v4872_v38 = vpack.c.bf16 %v412_v34, %v410_v33  ;;  %v26_v39 = vld [vmem:[%s5908_s0 + $0x10] sm:$0xff]  ;;  %v414_v40 = vld [vmem:[%s5910_s2 + $0x88] sm:$0xff]  ;;  %v416_v41 = vld [vmem:[%s5910_s2 + $0x98] sm:$0xff]  ;;  %v4887_v42 = vpack.c.bf16 %v411_v37, %v409_v36 }
   0xb   :  { %v413_v43 = vld [vmem:[%s5910_s2 + $0x80] sm:$0xff]  ;;  %v415_v44 = vld [vmem:[%s5910_s2 + $0x90] sm:$0xff]  ;;  %v4897_v45 = vpack.c.bf16 %v416_v41, %v414_v40  ;;  %v27_v46 = vld [vmem:[%s5908_s0 + $0x18] sm:$0xff] }
   0xc   :  { %3175 = vmatmul.mubr.msk.f32.vlgmr.msra.gmra.mrb[0].mxu1 %vm72_vm3, %v24_v25  ;;  %3713 = vmatpush1.bf16.msra.mxu0 %v4837_v28  ;;  %v418_v47 = vld [vmem:[%s5910_s2 + $0xa8] sm:$0xff]  ;;  %v420_v48 = vld [vmem:[%s5910_s2 + $0xb8] sm:$0xff]  ;;  %v4912_v49 = vpack.c.bf16 %v415_v44, %v413_v43  ;;  %v417_v50 = vld [vmem:[%s5910_s2 + $0xa0] sm:$0xff] }
   0xd   :  { %3325 = vmatpush1.bf16.msra.mxu1 %v4807_v19  ;;  %234 = vmatprep.mubr.f32.mxu1 %v5915_v7  ;;  %v419_v51 = vld [vmem:[%s5910_s2 + $0xb0] sm:$0xff]  ;;  %v4922_v52 = vpack.c.bf16 %v420_v48, %v418_v47 }
   0xe   :  { %3327 = vmatprep.subr.bf16.mxu1 %v4822_v24  ;;  %3715 = vmatprep.subr.bf16.mxu0 %v4847_v31 }
  0x10   :  { %3176 = vmatmul.mubr.msk.f32.gmra.mrb[2].mxu1 %vm72_vm3, %v25_v32  ;;  %3717 = vmatpush1.bf16.msra.mxu0 %v4862_v35 }
  0x11   :  { %240 = vmatprep.mubr.f32.mxu1 %v5915_v7  ;;  %3329 = vmatpush1.bf16.msra.mxu1 %v4837_v28 }
  0x12   :  { %3331 = vmatprep.subr.bf16.mxu1 %v4847_v31  ;;  %3719 = vmatprep.subr.bf16.mxu0 %v4872_v38 }
  0x14   :  { %3177 = vmatmul.mubr.msk.f32.gmra.mrb[4].mxu1 %vm72_vm3, %v26_v39  ;;  %3721 = vmatpush1.bf16.msra.mxu0 %v4887_v42 }
  0x15   :  { %246 = vmatprep.mubr.f32.mxu1 %v5915_v7  ;;  %3333 = vmatpush1.bf16.msra.mxu1 %v4862_v35 }
  0x16   :  { %3335 = vmatprep.subr.bf16.mxu1 %v4872_v38  ;;  %3723 = vmatprep.subr.bf16.mxu0 %v4897_v45 }
  0x18   :  { %3178 = vmatmul.mubr.msk.f32.gmra.mrb[6].mxu1 %vm72_vm3, %v27_v46  ;;  %3725 = vmatpush1.bf16.msra.mxu0 %v4912_v49 }
  0x19   :  { %11 = vsyncpa [#allocation3], 0  ;;  %252 = vmatprep.mubr.f32.mxu1 %v5915_v7  ;;  %v28_v53 = vld [vmem:[%s5908_s0 + $0x20] sm:$0xff]  ;;  %3337 = vmatpush1.bf16.msra.mxu1 %v4887_v42  ;;  %v422_v54 = vld [vmem:[%s5910_s2 + $0xc8] sm:$0xff]  ;;  %v4937_v56 = vpack.c.bf16 %v419_v51, %v417_v50  ;;  %vm4724_vm5 = vmmov 0   ;;  %s4725_s13 = smov [#allocation2]  }
  0x1a   :  { %v424_v55 = vld [vmem:[%s5910_s2 + $0xd8] sm:$0xff]  ;;  %3339 = vmatprep.subr.bf16.mxu1 %v4897_v45  ;;  %3727 = vmatprep.subr.bf16.mxu0 %v4922_v52  ;;  %v421_v57 = vld [vmem:[%s5910_s2 + $0xc0] sm:$0xff]  ;;  %v423_v58 = vld [vmem:[%s5910_s2 + $0xd0] sm:$0xff]  ;;  %s3165_s14 = sshll.u32 %s4725_s13, 4  ;;  %vm3157_vm6 = vcmask 80896   ;;  %s3166_s14 = int_to_ptr.vmem [resolvable:$true] %s3165_s14 }
  0x1b   :  { %v4947_v59 = vpack.c.bf16 %v424_v55, %v422_v54  ;;  %v29_v60 = vld [vmem:[%s5908_s0 + $0x28] sm:$0xff]  ;;  %v428_v62 = vld [vmem:[%s5910_s2 + $0xf8] sm:$0xff]  ;;  %v4962_v63 = vpack.c.bf16 %v423_v58, %v421_v57  ;;  %v425_v0 = vld [vmem:[%s5910_s2 + $0xe0] sm:$0xff]  ;;  %s4696_s15 = scalar_lea.vmem %s3166_s14, 128  ;;  %p4701_p1 = scmp.lt.s32.totalorder %s3166_s14, %s3166_s14 }
  0x1c   :  { %3179 = vmatmul.mubr.msk.f32.gmra.mrb[8].mxu1 %vm72_vm3, %v28_v53  ;;  %3729 = vmatpush1.bf16.msra.mxu0 %v4937_v56  ;;  %v426_v61 = vld [vmem:[%s5910_s2 + $0xe8] sm:$0xff]  ;;  %v427_v1 = vld [vmem:[%s5910_s2 + $0xf0] sm:$0xff]  ;;  %v31_v5 = vld [vmem:[%s5908_s0 + $0x38] sm:$0xff]  ;;  %p4697_p0 = scmp.ne.s32.totalorder %s3166_s14, %s4696_s15  ;;  %p4702_p2 = scmp.lt.s32.totalorder %s4696_s15, %s4696_s15 }
  0x1d   :  { %258 = vmatprep.mubr.f32.mxu1 %v5915_v7  ;;  %3341 = vmatpush1.bf16.msra.mxu1 %v4912_v49  ;;  %v4972_v2 = vpack.c.bf16 %v428_v62, %v426_v61  ;;  %v30_v3 = vld [vmem:[%s5908_s0 + $0x30] sm:$0xff]  ;;  %v4981_v4 = vpack.c.bf16 %v427_v1, %v425_v0  ;;  %v32_v6 = vld [vmem:[%s5908_s0 + $0x40] sm:$0xff]  ;;  %v33_v8 = vld [vmem:[%s5908_s0 + $0x48] sm:$0xff] }
  0x1e   :  { %3343 = vmatprep.subr.bf16.mxu1 %v4922_v52  ;;  %3731 = vmatprep.subr.bf16.mxu0 %v4947_v59  ;;  %v34_v9 = vld [vmem:[%s5908_s0 + $0x50] sm:$0xff]  ;;  %v35_v10 = vld [vmem:[%s5908_s0 + $0x58] sm:$0xff]  ;;  %v36_v11 = vld [vmem:[%s5908_s0 + $0x60] sm:$0xff]  ;;  %p4703_p3 = por %p4702_p2, %p4701_p1 }
  0x1f   :  { %v37_v12 = vld [vmem:[%s5908_s0 + $0x68] sm:$0xff]  ;;  %v38_v13 = vld [vmem:[%s5908_s0 + $0x70] sm:$0xff]  ;;  %v39_v14 = vld [vmem:[%s5908_s0 + $0x78] sm:$0xff] }
  0x20   :  { %3180 = vmatmul.mubr.msk.f32.gmra.mrb[10].mxu1 %vm72_vm3, %v29_v60  ;;  %3733 = vmatpush1.bf16.msra.mxu0 %v4962_v63  ;;  %v40_v15 = vld [vmem:[%s5908_s0 + $0x80] sm:$0xff]  ;;  %v41_v17 = vld [vmem:[%s5908_s0 + $0x88] sm:$0xff]  ;;  %v42_v18 = vld [vmem:[%s5908_s0 + $0x90] sm:$0xff]  ;;  %p4704_p4 = pnand %p4703_p3, %p4697_p0 }
  0x21   :  { %264 = vmatprep.mubr.f32.mxu1 %v5915_v7  ;;  %3345 = vmatpush1.bf16.msra.mxu1 %v4937_v56  ;;  %v43_v20 = vld [vmem:[%s5908_s0 + $0x98] sm:$0xff]  ;;  %v44_v21 = vld [vmem:[%s5908_s0 + $0xa0] sm:$0xff]  ;;  %v45_v22 = vld [vmem:[%s5908_s0 + $0xa8] sm:$0xff] }
  0x22   :  { %3347 = vmatprep.subr.bf16.mxu1 %v4947_v59  ;;  %3735 = vmatprep.subr.bf16.mxu0 %v4972_v2  ;;  %v46_v23 = vld [vmem:[%s5908_s0 + $0xb0] sm:$0xff]  ;;  %v47_v25 = vld [vmem:[%s5908_s0 + $0xb8] sm:$0xff]  ;;  %v48_v26 = vld [vmem:[%s5908_s0 + $0xc0] sm:$0xff] }
  0x23   :  { %v49_v27 = vld [vmem:[%s5908_s0 + $0xc8] sm:$0xff]  ;;  %v50_v29 = vld [vmem:[%s5908_s0 + $0xd0] sm:$0xff]  ;;  %v51_v30 = vld [vmem:[%s5908_s0 + $0xd8] sm:$0xff] }
  0x24   :  { %3181 = vmatmul.mubr.msk.f32.gmra.mrb[12].mxu1 %vm72_vm3, %v30_v3  ;;  %3737 = vmatpush1.bf16.msra.mxu0 %v4981_v4 }
  0x25   :  { %270 = vmatprep.mubr.f32.mxu1 %v5915_v7  ;;  %3349 = vmatpush1.bf16.msra.mxu1 %v4962_v63 }
  0x26   :  { %3351 = vmatprep.subr.bf16.mxu1 %v4972_v2  ;;  %3739 = vmatprep.subr.bf16.mxu0 %v4797_v16 }
  0x28   :  { %3182 = vmatmul.mubr.msk.f32.gmra.mrb[14].mxu1 %vm72_vm3, %v31_v5  ;;  %v62_v5 = vlaneseq }
  0x29   :  { %276 = vmatprep.mubr.f32.mxu1 %v5915_v7  ;;  %3353 = vmatpush1.bf16.msra.mxu1 %v4981_v4 }
  0x2a   :  { %3355 = vmatprep.subr.bf16.mxu1 %v4797_v16 }
  0x2c   :  { %3183 = vmatmul.mubr.msk.f32.gmra.mrb[16].mxu1 %vm72_vm3, %v32_v6 }
  0x2d   :  { %282 = vmatprep.mubr.f32.mxu1 %v5915_v7 }
  0x30   :  { %3184 = vmatmul.mubr.msk.f32.gmra.mrb[18].mxu1 %vm72_vm3, %v33_v8 }
  0x31   :  { %288 = vmatprep.mubr.f32.mxu1 %v5915_v7 }
  0x34   :  { %3185 = vmatmul.mubr.msk.f32.gmra.mrb[20].mxu1 %vm72_vm3, %v34_v9  ;;  %v63_v9 = vshrl.u32 %v62_v5, 7 }
  0x35   :  { %294 = vmatprep.mubr.f32.mxu1 %v5915_v7 }
  0x38   :  { %3186 = vmatmul.mubr.msk.f32.gmra.mrb[22].mxu1 %vm72_vm3, %v35_v10 }
  0x39   :  { %300 = vmatprep.mubr.f32.mxu1 %v5915_v7 }
  0x3c   :  { %3187 = vmatmul.mubr.msk.f32.gmra.mrb[24].mxu1 %vm72_vm3, %v36_v11 }
  0x3d   :  { %306 = vmatprep.mubr.f32.mxu1 %v5915_v7 }
  0x40   :  { %3188 = vmatmul.mubr.msk.f32.gmra.mrb[26].mxu1 %vm72_vm3, %v37_v12  ;;  %v64_v12 = vsub.s32 0, %v63_v9 }
  0x41   :  { %312 = vmatprep.mubr.f32.mxu1 %v5915_v7 }
  0x44   :  { %3189 = vmatmul.mubr.msk.f32.gmra.mrb[28].mxu1 %vm72_vm3, %v38_v13  ;;  %v60_v13 = vld [vmem:[%s5911_s3] sm:$0x3]  ;;  %s4722_s3 = smov 64  }
  0x45   :  { %318 = vmatprep.mubr.f32.mxu1 %v5915_v7 }
  0x48   :  { %3190 = vmatmul.mubr.msk.f32.gmra.mrb[30].mxu1 %vm72_vm3, %v39_v14  ;;  %v68_v14 = vsub.s32 1, %v63_v9 }
  0x49   :  { %324 = vmatprep.mubr.f32.mxu1 %v5915_v7 }
  0x4c   :  { %3191 = vmatmul.mubr.msk.f32.gmra.mrb[32].mxu1 %vm72_vm3, %v40_v15 }
  0x4d   :  { %330 = vmatprep.mubr.f32.mxu1 %v5915_v7 }
  0x50   :  { %3192 = vmatmul.mubr.msk.f32.gmra.mrb[34].mxu1 %vm72_vm3, %v41_v17 }
  0x51   :  { %336 = vmatprep.mubr.f32.mxu1 %v5915_v7 }
  0x54   :  { %3193 = vmatmul.mubr.msk.f32.gmra.mrb[36].mxu1 %vm72_vm3, %v42_v18  ;;  %v5182_v18 = vrot.slane %v60_v13, %v64_v12  ;;  %v5188_v12 = vand.u32 127, %v62_v5 }
  0x55   :  { %342 = vmatprep.mubr.f32.mxu1 %v5915_v7 }
  0x56   :  { %vm431_vm4 = vcmp.lt.s32.totalorder %v5188_v12, 64 }
  0x58   :  { %3194 = vmatmul.mubr.msk.f32.gmra.mrb[38].mxu1 %vm72_vm3, %v43_v20  ;;  %v5184_v20 = vrot.slane %v60_v13, %v68_v14 }
  0x59   :  { %348 = vmatprep.mubr.f32.mxu1 %v5915_v7 }
  0x5c   :  { %3195 = vmatmul.mubr.msk.f32.gmra.mrb[40].mxu1 %vm72_vm3, %v44_v21 }
  0x5d   :  { %354 = vmatprep.mubr.f32.mxu1 %v5915_v7 }
  0x60   :  { %3196 = vmatmul.mubr.msk.f32.gmra.mrb[42].mxu1 %vm72_vm3, %v45_v22 }
  0x61   :  { %360 = vmatprep.mubr.f32.mxu1 %v5915_v7 }
  0x64   :  { %3197 = vmatmul.mubr.msk.f32.gmra.mrb[44].mxu1 %vm72_vm3, %v46_v23 }
  0x65   :  { %366 = vmatprep.mubr.f32.mxu1 %v5915_v7 }
  0x68   :  { %3198 = vmatmul.mubr.msk.f32.gmra.mrb[46].mxu1 %vm72_vm3, %v47_v25 }
  0x69   :  { %372 = vmatprep.mubr.f32.mxu1 %v5915_v7 }
  0x6c   :  { %3199 = vmatmul.mubr.msk.f32.gmra.mrb[48].mxu1 %vm72_vm3, %v48_v26 }
  0x6d   :  { %378 = vmatprep.mubr.f32.mxu1 %v5915_v7 }
  0x70   :  { %3200 = vmatmul.mubr.msk.f32.gmra.mrb[50].mxu1 %vm72_vm3, %v49_v27 }
  0x71   :  { %384 = vmatprep.mubr.f32.mxu1 %v5915_v7 }
  0x74   :  { %3201 = vmatmul.mubr.msk.f32.gmra.mrb[52].mxu1 %vm72_vm3, %v50_v29 }
  0x75   :  { %390 = vmatprep.mubr.f32.mxu1 %v5915_v7 }
  0x78   :  { %3202 = vmatmul.mubr.msk.f32.gmra.mrb[54].mxu1 %vm72_vm3, %v51_v30 }
  0x79   :  { %496 = vmatprep.mubr.f32.mxu1 %v5915_v7 }
  0x7c   :  { %497 = vmatmul.mubr.f32.vlgmr.msra.gmra.mrb[0].mxu1 %v5915_v7 }
  0x7d   :  { %3357 = vmatpush1.bf16.msra.mxu1 %v4807_v19  ;;  %590 = vmatprep.mubr.f32.mxu1 %v5915_v7 }
  0x7e   :  { %3359 = vmatprep.subr.bf16.mxu1 %v4822_v24 }
  0x81   :  { %3361 = vmatpush1.bf16.msra.mxu1 %v4837_v28 }
  0x82   :  { %3363 = vmatprep.subr.bf16.mxu1 %v4847_v31 }
  0x85   :  { %3365 = vmatpush1.bf16.msra.mxu1 %v4862_v35 }
  0x86   :  { %3367 = vmatprep.subr.bf16.mxu1 %v4872_v38 }
  0x89   :  { %3369 = vmatpush1.bf16.msra.mxu1 %v4887_v42 }
  0x8a   :  { %3371 = vmatprep.subr.bf16.mxu1 %v4897_v45 }
  0x8d   :  { %3373 = vmatpush1.bf16.msra.mxu1 %v4912_v49 }
  0x8e   :  { %3375 = vmatprep.subr.bf16.mxu1 %v4922_v52 }
  0x91   :  { %3377 = vmatpush1.bf16.msra.mxu1 %v4937_v56 }
  0x92   :  { %3379 = vmatprep.subr.bf16.mxu1 %v4947_v59 }
  0x95   :  { %3381 = vmatpush1.bf16.msra.mxu1 %v4962_v63 }
  0x96   :  { %3383 = vmatprep.subr.bf16.mxu1 %v4972_v2 }
  0x99   :  { %3385 = vmatpush1.bf16.msra.mxu1 %v4981_v4 }
  0x9a   :  { %3387 = vmatprep.subr.bf16.mxu1 %v4797_v16 }
 0x10f   :  { %v5115_v32 = vpop.f32.mrb[24].mxu1 }
 0x110   :  { %v5117_v33 = vpop.f32.mrb[25].mxu1 }
 0x113   :  { %v5119_v34 = vpop.f32.mrb[26].mxu1 }
 0x114   :  { %v5121_v36 = vpop.f32.mrb[27].mxu1 }
 0x117   :  { %v5123_v37 = vpop.f32.mrb[28].mxu1 }
 0x118   :  { %v5125_v39 = vpop.f32.mrb[29].mxu1 }
 0x11b   :  { %v5127_v40 = vpop.f32.mrb[30].mxu1 }
 0x11c   :  { %v5129_v41 = vpop.f32.mrb[31].mxu1 }
 0x11f   :  { %v5131_v43 = vpop.f32.mrb[32].mxu1 }
 0x120   :  { %v5133_v44 = vpop.f32.mrb[33].mxu1 }
 0x123   :  { %v5135_v46 = vpop.f32.mrb[34].mxu1 }
 0x124   :  { %v5137_v47 = vpop.f32.mrb[35].mxu1 }
 0x127   :  { %v5139_v48 = vpop.f32.mrb[36].mxu1 }
 0x128   :  { %v5141_v50 = vpop.f32.mrb[37].mxu1 }
 0x12b   :  { %v5143_v51 = vpop.f32.mrb[38].mxu1 }
 0x12c   :  { %v5145_v53 = vpop.f32.mrb[39].mxu1 }
 0x12f   :  { %v5147_v54 = vpop.f32.mrb[40].mxu1 }
 0x130   :  { %v5149_v55 = vpop.f32.mrb[41].mxu1 }
 0x133   :  { %v5151_v57 = vpop.f32.mrb[42].mxu1 }
 0x134   :  { %v5153_v58 = vpop.f32.mrb[43].mxu1 }
 0x137   :  { %v5155_v60 = vpop.f32.mrb[44].mxu1 }
 0x138   :  { %v5157_v61 = vpop.f32.mrb[45].mxu1 }
 0x13b   :  { %v5159_v62 = vpop.f32.mrb[46].mxu1 }
 0x13c   :  { %v5161_v0 = vpop.f32.mrb[47].mxu1 }
 0x13f   :  { %v5163_v1 = vpop.f32.mrb[48].mxu1 }
 0x140   :  { %v5165_v3 = vpop.f32.mrb[49].mxu1 }
 0x143   :  { %v5167_v6 = vpop.f32.mrb[50].mxu1 }
 0x144   :  { %v5169_v8 = vpop.f32.mrb[51].mxu1 }
 0x147   :  { %v5171_v10 = vpop.f32.mrb[52].mxu1 }
 0x148   :  { %5919 = vst [vmem:[#allocation5_spill] sm:$0xff] %v5171_v10  ;;  %v5173_v11 = vpop.f32.mrb[53].mxu1 }
 0x149   :  { %5920 = vst [vmem:[#allocation6_spill] sm:$0xff] %v5173_v11 }
 0x14b   :  { %v5178_v15 = vpop.f32.mrb[54].mxu1 }
 0x14c   :  { %5921 = vst [vmem:[#allocation7_spill] sm:$0xff] %v5178_v15  ;;  %v5180_v17 = vpop.f32.mrb[55].mxu1 }
 0x14d   :  { %5922 = vst [vmem:[#allocation8_spill] sm:$0xff] %v5180_v17 }
 0x14f   :  { %v498_v21 = vpop.f32.mrb[0].mxu1 }
 0x150   :  { %v4242_v22 = vadd.f32 %v498_v21, %v5182_v18  ;;  %v500_v23 = vpop.f32.mrb[1].mxu1 }
 0x151   :  { %v4243_v25 = vadd.f32 %v500_v23, %v5184_v20 }
 0x152   :  { %v3203_v26 = vmul.f32 -1.442695, %v4242_v22 }
 0x153   :  { %v3204_v27 = vmul.f32 -1.442695, %v4243_v25 }
 0x154   :  { %4360 = vpow2.f32 %v3203_v26 }
 0x155   :  { %4362 = vpow2.f32 %v3204_v27 }
 0x156   :  { %4364 = vtanh.f32 %v4243_v25 }
 0x15e   :  { %v4361_v29 = vpop.eup %4360 }
 0x15f   :  { %v4363_v30 = vpop.eup %4362  ;;  %v508_v9 = vadd.f32 1.0, %v4361_v29  ;;  %v5923_v29 = vmov 0.0  }
 0x160   :  { %v515_v7 = vadd.f32 1.0, %v4363_v30  ;;  %v4365_v13 = vpop.eup %4364 }
 0x161   :  { %4366 = vrcp.f32 %v508_v9  ;;  %v519_v21 = vsel %vm431_vm4, %v4365_v13, 0.0 }
 0x162   :  { %4368 = vrcp.f32 %v515_v7 }
 0x16b   :  { %v4367_v14 = vpop.eup %4366 }
 0x16c   :  { %v4369_v22 = vpop.eup %4368  ;;  %v520_v23 = vmul.f32 %v4367_v14, %v519_v21 }
 0x16d   :  { %v518_v26 = vsel %vm431_vm4, %v4365_v13, %v4369_v22 }
 0x16e   :  { %521 = vrot.lane.b32.xlu0 %v520_v23, %s4722_s3 }
 0x1e0   :  { %v522_v25 = vpop.permute.xlu0 %521 }
 0x1e1   :  { %v523_v27 = vadd.f32 %v522_v25, %v520_v23 }
 0x1e3   :  { %4370 = vtanh.f32 %v523_v27 }
 0x1ed   :  { %v4371_v7 = vpop.eup %4370 }
 0x1ee   :  { %v525_v5 = vmul.f32 %v4371_v7, %v518_v26 }
 0x1f0   :  { %591 = vmatmul.mubr.f32.vlgmr.msra.gmra.mrb[2].mxu1 %v525_v5 }
 0x1f1   :  { %3389 = vmatpush1.bf16.msra.mxu1 %v4807_v19  ;;  %684 = vmatprep.mubr.f32.mxu1 %v5923_v29 }
 0x1f2   :  { %3391 = vmatprep.subr.bf16.mxu1 %v4822_v24 }
 0x1f5   :  { %3393 = vmatpush1.bf16.msra.mxu1 %v4837_v28 }
 0x1f6   :  { %3395 = vmatprep.subr.bf16.mxu1 %v4847_v31 }
 0x1f9   :  { %3397 = vmatpush1.bf16.msra.mxu1 %v4862_v35 }
 0x1fa   :  { %3399 = vmatprep.subr.bf16.mxu1 %v4872_v38 }
 0x1fd   :  { %3401 = vmatpush1.bf16.msra.mxu1 %v4887_v42 }
 0x1fe   :  { %3403 = vmatprep.subr.bf16.mxu1 %v4897_v45 }
 0x201   :  { %3405 = vmatpush1.bf16.msra.mxu1 %v4912_v49 }
 0x202   :  { %3407 = vmatprep.subr.bf16.mxu1 %v4922_v52 }
 0x205   :  { %3409 = vmatpush1.bf16.msra.mxu1 %v4937_v56 }
 0x206   :  { %3411 = vmatprep.subr.bf16.mxu1 %v4947_v59 }
 0x209   :  { %3413 = vmatpush1.bf16.msra.mxu1 %v4962_v63 }
 0x20a   :  { %3415 = vmatprep.subr.bf16.mxu1 %v4972_v2 }
 0x20d   :  { %3417 = vmatpush1.bf16.msra.mxu1 %v4981_v4 }
 0x20e   :  { %3419 = vmatprep.subr.bf16.mxu1 %v4797_v16 }
 0x2c3   :  { %v592_v30 = vpop.f32.mrb[2].mxu1 }
 0x2c4   :  { %v4244_v9 = vadd.f32 %v592_v30, %v5182_v18  ;;  %v594_v13 = vpop.f32.mrb[3].mxu1 }
 0x2c5   :  { %v4245_v14 = vadd.f32 %v594_v13, %v5184_v20 }
 0x2c6   :  { %v3205_v21 = vmul.f32 -1.442695, %v4244_v9 }
 0x2c7   :  { %v3206_v22 = vmul.f32 -1.442695, %v4245_v14 }
 0x2c8   :  { %4372 = vpow2.f32 %v3205_v21 }
 0x2c9   :  { %4374 = vpow2.f32 %v3206_v22 }
 0x2ca   :  { %4376 = vtanh.f32 %v4245_v14 }
 0x2d2   :  { %v4373_v23 = vpop.eup %4372 }
 0x2d3   :  { %v4375_v26 = vpop.eup %4374  ;;  %v602_v25 = vadd.f32 1.0, %v4373_v23 }
 0x2d4   :  { %v609_v7 = vadd.f32 1.0, %v4375_v26  ;;  %v4377_v5 = vpop.eup %4376 }
 0x2d5   :  { %4378 = vrcp.f32 %v602_v25  ;;  %v613_v15 = vsel %vm431_vm4, %v4377_v5, %v523_v27 }
 0x2d6   :  { %4380 = vrcp.f32 %v609_v7 }
 0x2df   :  { %v4379_v17 = vpop.eup %4378 }
 0x2e0   :  { %v4381_v30 = vpop.eup %4380  ;;  %v614_v11 = vmul.f32 %v4379_v17, %v613_v15 }
 0x2e1   :  { %v612_v9 = vsel %vm431_vm4, %v4377_v5, %v4381_v30 }
 0x2e2   :  { %615 = vrot.lane.b32.xlu0 %v614_v11, %s4722_s3 }
 0x354   :  { %v616_v13 = vpop.permute.xlu0 %615 }
 0x355   :  { %v617_v21 = vadd.f32 %v616_v13, %v614_v11 }
 0x357   :  { %4382 = vtanh.f32 %v617_v21 }
 0x361   :  { %v4383_v14 = vpop.eup %4382 }
 0x362   :  { %v619_v22 = vmul.f32 %v4383_v14, %v612_v9 }
 0x364   :  { %685 = vmatmul.mubr.f32.vlgmr.msra.gmra.mrb[4].mxu1 %v619_v22 }
 0x365   :  { %3421 = vmatpush1.bf16.msra.mxu1 %v4807_v19  ;;  %778 = vmatprep.mubr.f32.mxu1 %v5923_v29 }
 0x366   :  { %3423 = vmatprep.subr.bf16.mxu1 %v4822_v24 }
 0x369   :  { %3425 = vmatpush1.bf16.msra.mxu1 %v4837_v28 }
 0x36a   :  { %3427 = vmatprep.subr.bf16.mxu1 %v4847_v31 }
 0x36d   :  { %3429 = vmatpush1.bf16.msra.mxu1 %v4862_v35 }
 0x36e   :  { %3431 = vmatprep.subr.bf16.mxu1 %v4872_v38 }
 0x371   :  { %3433 = vmatpush1.bf16.msra.mxu1 %v4887_v42 }
 0x372   :  { %3435 = vmatprep.subr.bf16.mxu1 %v4897_v45 }
 0x375   :  { %3437 = vmatpush1.bf16.msra.mxu1 %v4912_v49 }
 0x376   :  { %3439 = vmatprep.subr.bf16.mxu1 %v4922_v52 }
 0x379   :  { %3441 = vmatpush1.bf16.msra.mxu1 %v4937_v56 }
 0x37a   :  { %3443 = vmatprep.subr.bf16.mxu1 %v4947_v59 }
 0x37d   :  { %3445 = vmatpush1.bf16.msra.mxu1 %v4962_v63 }
 0x37e   :  { %3447 = vmatprep.subr.bf16.mxu1 %v4972_v2 }
 0x381   :  { %3449 = vmatpush1.bf16.msra.mxu1 %v4981_v4 }
 0x382   :  { %3451 = vmatprep.subr.bf16.mxu1 %v4797_v16 }
 0x437   :  { %v686_v11 = vpop.f32.mrb[4].mxu1 }
 0x438   :  { %v4246_v15 = vadd.f32 %v686_v11, %v5182_v18  ;;  %v688_v17 = vpop.f32.mrb[5].mxu1 }
 0x439   :  { %v4247_v27 = vadd.f32 %v688_v17, %v5184_v20 }
 0x43a   :  { %v3207_v23 = vmul.f32 -1.442695, %v4246_v15 }
 0x43b   :  { %v3208_v26 = vmul.f32 -1.442695, %v4247_v27 }
 0x43c   :  { %4384 = vpow2.f32 %v3207_v23 }
 0x43d   :  { %4386 = vpow2.f32 %v3208_v26 }
 0x43e   :  { %4388 = vtanh.f32 %v4247_v27 }
 0x446   :  { %v4385_v25 = vpop.eup %4384 }
 0x447   :  { %v4387_v7 = vpop.eup %4386  ;;  %v696_v5 = vadd.f32 1.0, %v4385_v25 }
 0x448   :  { %v703_v30 = vadd.f32 1.0, %v4387_v7  ;;  %v4389_v9 = vpop.eup %4388 }
 0x449   :  { %4390 = vrcp.f32 %v696_v5  ;;  %v707_v14 = vsel %vm431_vm4, %v4389_v9, %v617_v21 }
 0x44a   :  { %4392 = vrcp.f32 %v703_v30 }
 0x453   :  { %v4391_v13 = vpop.eup %4390 }
 0x454   :  { %v4393_v22 = vpop.eup %4392  ;;  %v708_v11 = vmul.f32 %v4391_v13, %v707_v14 }
 0x455   :  { %v706_v15 = vsel %vm431_vm4, %v4389_v9, %v4393_v22 }
 0x456   :  { %709 = vrot.lane.b32.xlu1 %v708_v11, %s4722_s3 }
 0x4c8   :  { %v710_v17 = vpop.permute.xlu1 %709 }
 0x4c9   :  { %v711_v23 = vadd.f32 %v710_v17, %v708_v11 }
 0x4cb   :  { %4394 = vtanh.f32 %v711_v23 }
 0x4d5   :  { %v4395_v27 = vpop.eup %4394 }
 0x4d6   :  { %v713_v26 = vmul.f32 %v4395_v27, %v706_v15 }
 0x4d8   :  { %779 = vmatmul.mubr.f32.vlgmr.msra.gmra.mrb[6].mxu1 %v713_v26 }
 0x4d9   :  { %3453 = vmatpush1.bf16.msra.mxu1 %v4807_v19  ;;  %872 = vmatprep.mubr.f32.mxu1 %v5923_v29 }
 0x4da   :  { %3455 = vmatprep.subr.bf16.mxu1 %v4822_v24 }
 0x4dd   :  { %3457 = vmatpush1.bf16.msra.mxu1 %v4837_v28 }
 0x4de   :  { %3459 = vmatprep.subr.bf16.mxu1 %v4847_v31 }
 0x4e1   :  { %3461 = vmatpush1.bf16.msra.mxu1 %v4862_v35 }
 0x4e2   :  { %3463 = vmatprep.subr.bf16.mxu1 %v4872_v38 }
 0x4e5   :  { %3465 = vmatpush1.bf16.msra.mxu1 %v4887_v42 }
 0x4e6   :  { %3467 = vmatprep.subr.bf16.mxu1 %v4897_v45 }
 0x4e9   :  { %3469 = vmatpush1.bf16.msra.mxu1 %v4912_v49 }
 0x4ea   :  { %3471 = vmatprep.subr.bf16.mxu1 %v4922_v52 }
 0x4ed   :  { %3473 = vmatpush1.bf16.msra.mxu1 %v4937_v56 }
 0x4ee   :  { %3475 = vmatprep.subr.bf16.mxu1 %v4947_v59 }
 0x4f1   :  { %3477 = vmatpush1.bf16.msra.mxu1 %v4962_v63 }
 0x4f2   :  { %3479 = vmatprep.subr.bf16.mxu1 %v4972_v2 }
 0x4f5   :  { %3481 = vmatpush1.bf16.msra.mxu1 %v4981_v4 }
 0x4f6   :  { %3483 = vmatprep.subr.bf16.mxu1 %v4797_v16 }
 0x5ab   :  { %v780_v21 = vpop.f32.mrb[6].mxu1 }
 0x5ac   :  { %v4248_v25 = vadd.f32 %v780_v21, %v5182_v18  ;;  %v782_v7 = vpop.f32.mrb[7].mxu1 }
 0x5ad   :  { %v4249_v5 = vadd.f32 %v782_v7, %v5184_v20 }
 0x5ae   :  { %v3209_v30 = vmul.f32 -1.442695, %v4248_v25 }
 0x5af   :  { %v3210_v9 = vmul.f32 -1.442695, %v4249_v5 }
 0x5b0   :  { %4396 = vpow2.f32 %v3209_v30 }
 0x5b1   :  { %4398 = vpow2.f32 %v3210_v9 }
 0x5b2   :  { %4400 = vtanh.f32 %v4249_v5 }
 0x5ba   :  { %v4397_v13 = vpop.eup %4396 }
 0x5bb   :  { %v4399_v14 = vpop.eup %4398  ;;  %v790_v22 = vadd.f32 1.0, %v4397_v13 }
 0x5bc   :  { %v797_v11 = vadd.f32 1.0, %v4399_v14  ;;  %v4401_v15 = vpop.eup %4400 }
 0x5bd   :  { %4402 = vrcp.f32 %v790_v22  ;;  %v801_v27 = vsel %vm431_vm4, %v4401_v15, %v711_v23 }
 0x5be   :  { %4404 = vrcp.f32 %v797_v11 }
 0x5c7   :  { %v4403_v17 = vpop.eup %4402 }
 0x5c8   :  { %v4405_v26 = vpop.eup %4404  ;;  %v802_v21 = vmul.f32 %v4403_v17, %v801_v27 }
 0x5c9   :  { %v800_v25 = vsel %vm431_vm4, %v4401_v15, %v4405_v26 }
 0x5ca   :  { %803 = vrot.lane.b32.xlu1 %v802_v21, %s4722_s3 }
 0x63c   :  { %v804_v7 = vpop.permute.xlu1 %803 }
 0x63d   :  { %v805_v30 = vadd.f32 %v804_v7, %v802_v21 }
 0x63f   :  { %4406 = vtanh.f32 %v805_v30 }
 0x649   :  { %v4407_v5 = vpop.eup %4406 }
 0x64a   :  { %v807_v9 = vmul.f32 %v4407_v5, %v800_v25 }
 0x64c   :  { %873 = vmatmul.mubr.f32.vlgmr.msra.gmra.mrb[8].mxu1 %v807_v9 }
 0x64d   :  { %3485 = vmatpush1.bf16.msra.mxu1 %v4807_v19  ;;  %966 = vmatprep.mubr.f32.mxu1 %v5923_v29 }
 0x64e   :  { %3487 = vmatprep.subr.bf16.mxu1 %v4822_v24 }
 0x651   :  { %3489 = vmatpush1.bf16.msra.mxu1 %v4837_v28 }
 0x652   :  { %3491 = vmatprep.subr.bf16.mxu1 %v4847_v31 }
 0x655   :  { %3493 = vmatpush1.bf16.msra.mxu1 %v4862_v35 }
 0x656   :  { %3495 = vmatprep.subr.bf16.mxu1 %v4872_v38 }
 0x659   :  { %3497 = vmatpush1.bf16.msra.mxu1 %v4887_v42 }
 0x65a   :  { %3499 = vmatprep.subr.bf16.mxu1 %v4897_v45 }
 0x65d   :  { %3501 = vmatpush1.bf16.msra.mxu1 %v4912_v49 }
 0x65e   :  { %3503 = vmatprep.subr.bf16.mxu1 %v4922_v52 }
 0x661   :  { %3505 = vmatpush1.bf16.msra.mxu1 %v4937_v56 }
 0x662   :  { %3507 = vmatprep.subr.bf16.mxu1 %v4947_v59 }
 0x665   :  { %3509 = vmatpush1.bf16.msra.mxu1 %v4962_v63 }
 0x666   :  { %3511 = vmatprep.subr.bf16.mxu1 %v4972_v2 }
 0x669   :  { %3513 = vmatpush1.bf16.msra.mxu1 %v4981_v4 }
 0x66a   :  { %3515 = vmatprep.subr.bf16.mxu1 %v4797_v16 }
 0x71f   :  { %v874_v23 = vpop.f32.mrb[8].mxu1 }
 0x720   :  { %v4250_v13 = vadd.f32 %v874_v23, %v5182_v18  ;;  %v876_v14 = vpop.f32.mrb[9].mxu1 }
 0x721   :  { %v4251_v22 = vadd.f32 %v876_v14, %v5184_v20 }
 0x722   :  { %v3211_v11 = vmul.f32 -1.442695, %v4250_v13 }
 0x723   :  { %v3212_v15 = vmul.f32 -1.442695, %v4251_v22 }
 0x724   :  { %4408 = vpow2.f32 %v3211_v11 }
 0x725   :  { %4410 = vpow2.f32 %v3212_v15 }
 0x726   :  { %4412 = vtanh.f32 %v4251_v22 }
 0x72e   :  { %v4409_v17 = vpop.eup %4408 }
 0x72f   :  { %v4411_v27 = vpop.eup %4410  ;;  %v884_v26 = vadd.f32 1.0, %v4409_v17 }
 0x730   :  { %v891_v21 = vadd.f32 1.0, %v4411_v27  ;;  %v4413_v25 = vpop.eup %4412 }
 0x731   :  { %4414 = vrcp.f32 %v884_v26  ;;  %v895_v5 = vsel %vm431_vm4, %v4413_v25, %v805_v30 }
 0x732   :  { %4416 = vrcp.f32 %v891_v21 }
 0x73b   :  { %v4415_v7 = vpop.eup %4414 }
 0x73c   :  { %v4417_v9 = vpop.eup %4416  ;;  %v896_v23 = vmul.f32 %v4415_v7, %v895_v5 }
 0x73d   :  { %v894_v13 = vsel %vm431_vm4, %v4413_v25, %v4417_v9 }
 0x73e   :  { %897 = vrot.lane.b32.xlu0 %v896_v23, %s4722_s3 }
 0x7b0   :  { %v898_v14 = vpop.permute.xlu0 %897 }
 0x7b1   :  { %v899_v11 = vadd.f32 %v898_v14, %v896_v23 }
 0x7b3   :  { %4418 = vtanh.f32 %v899_v11 }
 0x7bd   :  { %v4419_v22 = vpop.eup %4418 }
 0x7be   :  { %v901_v15 = vmul.f32 %v4419_v22, %v894_v13 }
 0x7c0   :  { %967 = vmatmul.mubr.f32.vlgmr.msra.gmra.mrb[10].mxu1 %v901_v15 }
 0x7c1   :  { %3517 = vmatpush1.bf16.msra.mxu1 %v4807_v19  ;;  %1060 = vmatprep.mubr.f32.mxu1 %v5923_v29 }
 0x7c2   :  { %3519 = vmatprep.subr.bf16.mxu1 %v4822_v24 }
 0x7c5   :  { %3521 = vmatpush1.bf16.msra.mxu1 %v4837_v28 }
 0x7c6   :  { %3523 = vmatprep.subr.bf16.mxu1 %v4847_v31 }
 0x7c9   :  { %3525 = vmatpush1.bf16.msra.mxu1 %v4862_v35 }
 0x7ca   :  { %3527 = vmatprep.subr.bf16.mxu1 %v4872_v38 }
 0x7cd   :  { %3529 = vmatpush1.bf16.msra.mxu1 %v4887_v42 }
 0x7ce   :  { %3531 = vmatprep.subr.bf16.mxu1 %v4897_v45 }
 0x7d1   :  { %3533 = vmatpush1.bf16.msra.mxu1 %v4912_v49 }
 0x7d2   :  { %3535 = vmatprep.subr.bf16.mxu1 %v4922_v52 }
 0x7d5   :  { %3537 = vmatpush1.bf16.msra.mxu1 %v4937_v56 }
 0x7d6   :  { %3539 = vmatprep.subr.bf16.mxu1 %v4947_v59 }
 0x7d9   :  { %3541 = vmatpush1.bf16.msra.mxu1 %v4962_v63 }
 0x7da   :  { %3543 = vmatprep.subr.bf16.mxu1 %v4972_v2 }
 0x7dd   :  { %3545 = vmatpush1.bf16.msra.mxu1 %v4981_v4 }
 0x7de   :  { %3547 = vmatprep.subr.bf16.mxu1 %v4797_v16 }
 0x893   :  { %v968_v30 = vpop.f32.mrb[10].mxu1 }
 0x894   :  { %v4252_v17 = vadd.f32 %v968_v30, %v5182_v18  ;;  %v970_v27 = vpop.f32.mrb[11].mxu1 }
 0x895   :  { %v4253_v26 = vadd.f32 %v970_v27, %v5184_v20 }
 0x896   :  { %v3213_v21 = vmul.f32 -1.442695, %v4252_v17 }
 0x897   :  { %v3214_v25 = vmul.f32 -1.442695, %v4253_v26 }
 0x898   :  { %4420 = vpow2.f32 %v3213_v21 }
 0x899   :  { %4422 = vpow2.f32 %v3214_v25 }
 0x89a   :  { %4424 = vtanh.f32 %v4253_v26 }
 0x8a2   :  { %v4421_v7 = vpop.eup %4420 }
 0x8a3   :  { %v4423_v5 = vpop.eup %4422  ;;  %v978_v9 = vadd.f32 1.0, %v4421_v7 }
 0x8a4   :  { %v985_v23 = vadd.f32 1.0, %v4423_v5  ;;  %v4425_v13 = vpop.eup %4424 }
 0x8a5   :  { %4426 = vrcp.f32 %v978_v9  ;;  %v989_v22 = vsel %vm431_vm4, %v4425_v13, %v899_v11 }
 0x8a6   :  { %4428 = vrcp.f32 %v985_v23 }
 0x8af   :  { %v4427_v14 = vpop.eup %4426 }
 0x8b0   :  { %v4429_v15 = vpop.eup %4428  ;;  %v990_v30 = vmul.f32 %v4427_v14, %v989_v22 }
 0x8b1   :  { %v988_v17 = vsel %vm431_vm4, %v4425_v13, %v4429_v15 }
 0x8b2   :  { %991 = vrot.lane.b32.xlu1 %v990_v30, %s4722_s3 }
 0x924   :  { %v992_v27 = vpop.permute.xlu1 %991 }
 0x925   :  { %v993_v21 = vadd.f32 %v992_v27, %v990_v30 }
 0x927   :  { %4430 = vtanh.f32 %v993_v21 }
 0x931   :  { %v4431_v26 = vpop.eup %4430 }
 0x932   :  { %v995_v25 = vmul.f32 %v4431_v26, %v988_v17 }
 0x934   :  { %1061 = vmatmul.mubr.f32.vlgmr.msra.gmra.mrb[12].mxu1 %v995_v25 }
 0x935   :  { %3549 = vmatpush1.bf16.msra.mxu1 %v4807_v19  ;;  %1154 = vmatprep.mubr.f32.mxu1 %v5923_v29 }
 0x936   :  { %3551 = vmatprep.subr.bf16.mxu1 %v4822_v24 }
 0x939   :  { %3553 = vmatpush1.bf16.msra.mxu1 %v4837_v28 }
 0x93a   :  { %3555 = vmatprep.subr.bf16.mxu1 %v4847_v31 }
 0x93d   :  { %3557 = vmatpush1.bf16.msra.mxu1 %v4862_v35 }
 0x93e   :  { %3559 = vmatprep.subr.bf16.mxu1 %v4872_v38 }
 0x941   :  { %3561 = vmatpush1.bf16.msra.mxu1 %v4887_v42 }
 0x942   :  { %3563 = vmatprep.subr.bf16.mxu1 %v4897_v45 }
 0x945   :  { %3565 = vmatpush1.bf16.msra.mxu1 %v4912_v49 }
 0x946   :  { %3567 = vmatprep.subr.bf16.mxu1 %v4922_v52 }
 0x949   :  { %3569 = vmatpush1.bf16.msra.mxu1 %v4937_v56 }
 0x94a   :  { %3571 = vmatprep.subr.bf16.mxu1 %v4947_v59 }
 0x94d   :  { %3573 = vmatpush1.bf16.msra.mxu1 %v4962_v63 }
 0x94e   :  { %3575 = vmatprep.subr.bf16.mxu1 %v4972_v2 }
 0x951   :  { %3577 = vmatpush1.bf16.msra.mxu1 %v4981_v4 }
 0x952   :  { %3579 = vmatprep.subr.bf16.mxu1 %v4797_v16 }
 0xa07   :  { %v1062_v11 = vpop.f32.mrb[12].mxu1 }
 0xa08   :  { %v4254_v7 = vadd.f32 %v1062_v11, %v5182_v18  ;;  %v1064_v5 = vpop.f32.mrb[13].mxu1 }
 0xa09   :  { %v4255_v9 = vadd.f32 %v1064_v5, %v5184_v20 }
 0xa0a   :  { %v3215_v23 = vmul.f32 -1.442695, %v4254_v7 }
 0xa0b   :  { %v3216_v13 = vmul.f32 -1.442695, %v4255_v9 }
 0xa0c   :  { %4432 = vpow2.f32 %v3215_v23 }
 0xa0d   :  { %4434 = vpow2.f32 %v3216_v13 }
 0xa0e   :  { %4436 = vtanh.f32 %v4255_v9 }
 0xa16   :  { %v4433_v14 = vpop.eup %4432 }
 0xa17   :  { %v4435_v22 = vpop.eup %4434  ;;  %v1072_v15 = vadd.f32 1.0, %v4433_v14 }
 0xa18   :  { %v1079_v30 = vadd.f32 1.0, %v4435_v22  ;;  %v4437_v17 = vpop.eup %4436 }
 0xa19   :  { %4438 = vrcp.f32 %v1072_v15  ;;  %v1083_v26 = vsel %vm431_vm4, %v4437_v17, %v993_v21 }
 0xa1a   :  { %4440 = vrcp.f32 %v1079_v30 }
 0xa23   :  { %v4439_v27 = vpop.eup %4438 }
 0xa24   :  { %v4441_v25 = vpop.eup %4440  ;;  %v1084_v11 = vmul.f32 %v4439_v27, %v1083_v26 }
 0xa25   :  { %v1082_v7 = vsel %vm431_vm4, %v4437_v17, %v4441_v25 }
 0xa26   :  { %1085 = vrot.lane.b32.xlu0 %v1084_v11, %s4722_s3 }
 0xa98   :  { %v1086_v5 = vpop.permute.xlu0 %1085 }
 0xa99   :  { %v1087_v23 = vadd.f32 %v1086_v5, %v1084_v11 }
 0xa9b   :  { %4442 = vtanh.f32 %v1087_v23 }
 0xaa5   :  { %v4443_v9 = vpop.eup %4442 }
 0xaa6   :  { %v1089_v13 = vmul.f32 %v4443_v9, %v1082_v7 }
 0xaa8   :  { %1155 = vmatmul.mubr.f32.vlgmr.msra.gmra.mrb[14].mxu1 %v1089_v13 }
 0xaa9   :  { %3581 = vmatpush1.bf16.msra.mxu1 %v4807_v19  ;;  %1248 = vmatprep.mubr.f32.mxu1 %v5923_v29 }
 0xaaa   :  { %3583 = vmatprep.subr.bf16.mxu1 %v4822_v24 }
 0xaad   :  { %3585 = vmatpush1.bf16.msra.mxu1 %v4837_v28 }
 0xaae   :  { %3587 = vmatprep.subr.bf16.mxu1 %v4847_v31 }
 0xab1   :  { %3589 = vmatpush1.bf16.msra.mxu1 %v4862_v35 }
 0xab2   :  { %3591 = vmatprep.subr.bf16.mxu1 %v4872_v38 }
 0xab5   :  { %3593 = vmatpush1.bf16.msra.mxu1 %v4887_v42 }
 0xab6   :  { %3595 = vmatprep.subr.bf16.mxu1 %v4897_v45 }
 0xab9   :  { %3597 = vmatpush1.bf16.msra.mxu1 %v4912_v49 }
 0xaba   :  { %3599 = vmatprep.subr.bf16.mxu1 %v4922_v52 }
 0xabd   :  { %3601 = vmatpush1.bf16.msra.mxu1 %v4937_v56 }
 0xabe   :  { %3603 = vmatprep.subr.bf16.mxu1 %v4947_v59 }
 0xac1   :  { %3605 = vmatpush1.bf16.msra.mxu1 %v4962_v63 }
 0xac2   :  { %3607 = vmatprep.subr.bf16.mxu1 %v4972_v2 }
 0xac5   :  { %3609 = vmatpush1.bf16.msra.mxu1 %v4981_v4 }
 0xac6   :  { %3611 = vmatprep.subr.bf16.mxu1 %v4797_v16 }
 0xb7b   :  { %v1156_v21 = vpop.f32.mrb[14].mxu1 }
 0xb7c   :  { %v4256_v14 = vadd.f32 %v1156_v21, %v5182_v18  ;;  %v1158_v22 = vpop.f32.mrb[15].mxu1 }
 0xb7d   :  { %v4257_v15 = vadd.f32 %v1158_v22, %v5184_v20 }
 0xb7e   :  { %v3217_v30 = vmul.f32 -1.442695, %v4256_v14 }
 0xb7f   :  { %v3218_v17 = vmul.f32 -1.442695, %v4257_v15 }
 0xb80   :  { %4444 = vpow2.f32 %v3217_v30 }
 0xb81   :  { %4446 = vpow2.f32 %v3218_v17 }
 0xb82   :  { %4448 = vtanh.f32 %v4257_v15 }
 0xb8a   :  { %v4445_v27 = vpop.eup %4444 }
 0xb8b   :  { %v4447_v26 = vpop.eup %4446  ;;  %v1166_v25 = vadd.f32 1.0, %v4445_v27 }
 0xb8c   :  { %v1173_v11 = vadd.f32 1.0, %v4447_v26  ;;  %v4449_v7 = vpop.eup %4448 }
 0xb8d   :  { %4450 = vrcp.f32 %v1166_v25  ;;  %v1177_v9 = vsel %vm431_vm4, %v4449_v7, %v1087_v23 }
 0xb8e   :  { %4452 = vrcp.f32 %v1173_v11 }
 0xb97   :  { %v4451_v5 = vpop.eup %4450 }
 0xb98   :  { %v4453_v13 = vpop.eup %4452  ;;  %v1178_v21 = vmul.f32 %v4451_v5, %v1177_v9 }
 0xb99   :  { %v1176_v14 = vsel %vm431_vm4, %v4449_v7, %v4453_v13 }
 0xb9a   :  { %1179 = vrot.lane.b32.xlu1 %v1178_v21, %s4722_s3 }
 0xc0c   :  { %v1180_v22 = vpop.permute.xlu1 %1179 }
 0xc0d   :  { %v1181_v30 = vadd.f32 %v1180_v22, %v1178_v21 }
 0xc0f   :  { %4454 = vtanh.f32 %v1181_v30 }
 0xc19   :  { %v4455_v15 = vpop.eup %4454 }
 0xc1a   :  { %v1183_v17 = vmul.f32 %v4455_v15, %v1176_v14 }
 0xc1c   :  { %1249 = vmatmul.mubr.f32.vlgmr.msra.gmra.mrb[16].mxu1 %v1183_v17 }
 0xc1d   :  { %3613 = vmatpush1.bf16.msra.mxu1 %v4807_v19  ;;  %1342 = vmatprep.mubr.f32.mxu1 %v5923_v29 }
 0xc1e   :  { %3615 = vmatprep.subr.bf16.mxu1 %v4822_v24 }
 0xc21   :  { %3617 = vmatpush1.bf16.msra.mxu1 %v4837_v28 }
 0xc22   :  { %3619 = vmatprep.subr.bf16.mxu1 %v4847_v31 }
 0xc25   :  { %3621 = vmatpush1.bf16.msra.mxu1 %v4862_v35 }
 0xc26   :  { %3623 = vmatprep.subr.bf16.mxu1 %v4872_v38 }
 0xc29   :  { %3625 = vmatpush1.bf16.msra.mxu1 %v4887_v42 }
 0xc2a   :  { %3627 = vmatprep.subr.bf16.mxu1 %v4897_v45 }
 0xc2d   :  { %3629 = vmatpush1.bf16.msra.mxu1 %v4912_v49 }
 0xc2e   :  { %3631 = vmatprep.subr.bf16.mxu1 %v4922_v52 }
 0xc31   :  { %3633 = vmatpush1.bf16.msra.mxu1 %v4937_v56 }
 0xc32   :  { %3635 = vmatprep.subr.bf16.mxu1 %v4947_v59 }
 0xc35   :  { %3637 = vmatpush1.bf16.msra.mxu1 %v4962_v63 }
 0xc36   :  { %3639 = vmatprep.subr.bf16.mxu1 %v4972_v2 }
 0xc39   :  { %3641 = vmatpush1.bf16.msra.mxu1 %v4981_v4 }
 0xc3a   :  { %3643 = vmatprep.subr.bf16.mxu1 %v4797_v16 }
 0xcef   :  { %v1250_v23 = vpop.f32.mrb[16].mxu1 }
 0xcf0   :  { %v4258_v27 = vadd.f32 %v1250_v23, %v5182_v18  ;;  %v1252_v26 = vpop.f32.mrb[17].mxu1 }
 0xcf1   :  { %v4259_v25 = vadd.f32 %v1252_v26, %v5184_v20 }
 0xcf2   :  { %v3219_v11 = vmul.f32 -1.442695, %v4258_v27 }
 0xcf3   :  { %v3220_v7 = vmul.f32 -1.442695, %v4259_v25 }
 0xcf4   :  { %4456 = vpow2.f32 %v3219_v11 }
 0xcf5   :  { %4458 = vpow2.f32 %v3220_v7 }
 0xcf6   :  { %4460 = vtanh.f32 %v4259_v25 }
 0xcfe   :  { %v4457_v5 = vpop.eup %4456 }
 0xcff   :  { %v4459_v9 = vpop.eup %4458  ;;  %v1260_v13 = vadd.f32 1.0, %v4457_v5 }
 0xd00   :  { %v1267_v21 = vadd.f32 1.0, %v4459_v9  ;;  %v4461_v14 = vpop.eup %4460 }
 0xd01   :  { %4462 = vrcp.f32 %v1260_v13  ;;  %v1271_v15 = vsel %vm431_vm4, %v4461_v14, %v1181_v30 }
 0xd02   :  { %4464 = vrcp.f32 %v1267_v21 }
 0xd0b   :  { %v4463_v22 = vpop.eup %4462 }
 0xd0c   :  { %v4465_v17 = vpop.eup %4464  ;;  %v1272_v23 = vmul.f32 %v4463_v22, %v1271_v15 }
 0xd0d   :  { %v1270_v27 = vsel %vm431_vm4, %v4461_v14, %v4465_v17 }
 0xd0e   :  { %1273 = vrot.lane.b32.xlu0 %v1272_v23, %s4722_s3 }
 0xd80   :  { %v1274_v26 = vpop.permute.xlu0 %1273 }
 0xd81   :  { %v1275_v11 = vadd.f32 %v1274_v26, %v1272_v23 }
 0xd83   :  { %4466 = vtanh.f32 %v1275_v11 }
 0xd8d   :  { %v4467_v25 = vpop.eup %4466 }
 0xd8e   :  { %v1277_v7 = vmul.f32 %v4467_v25, %v1270_v27 }
 0xd90   :  { %1343 = vmatmul.mubr.f32.vlgmr.msra.gmra.mrb[18].mxu1 %v1277_v7 }
 0xd91   :  { %3645 = vmatpush1.bf16.msra.mxu1 %v4807_v19  ;;  %1436 = vmatprep.mubr.f32.mxu1 %v5923_v29 }
 0xd92   :  { %3647 = vmatprep.subr.bf16.mxu1 %v4822_v24 }
 0xd95   :  { %3649 = vmatpush1.bf16.msra.mxu1 %v4837_v28 }
 0xd96   :  { %3651 = vmatprep.subr.bf16.mxu1 %v4847_v31 }
 0xd99   :  { %3653 = vmatpush1.bf16.msra.mxu1 %v4862_v35 }
 0xd9a   :  { %3655 = vmatprep.subr.bf16.mxu1 %v4872_v38 }
 0xd9d   :  { %3657 = vmatpush1.bf16.msra.mxu1 %v4887_v42 }
 0xd9e   :  { %3659 = vmatprep.subr.bf16.mxu1 %v4897_v45 }
 0xda1   :  { %3661 = vmatpush1.bf16.msra.mxu1 %v4912_v49 }
 0xda2   :  { %3663 = vmatprep.subr.bf16.mxu1 %v4922_v52 }
 0xda5   :  { %3665 = vmatpush1.bf16.msra.mxu1 %v4937_v56 }
 0xda6   :  { %3667 = vmatprep.subr.bf16.mxu1 %v4947_v59 }
 0xda9   :  { %3669 = vmatpush1.bf16.msra.mxu1 %v4962_v63 }
 0xdaa   :  { %3671 = vmatprep.subr.bf16.mxu1 %v4972_v2 }
 0xdad   :  { %3673 = vmatpush1.bf16.msra.mxu1 %v4981_v4 }
 0xdae   :  { %3675 = vmatprep.subr.bf16.mxu1 %v4797_v16 }
 0xe63   :  { %v1344_v30 = vpop.f32.mrb[18].mxu1 }
 0xe64   :  { %v4260_v5 = vadd.f32 %v1344_v30, %v5182_v18  ;;  %v1346_v9 = vpop.f32.mrb[19].mxu1 }
 0xe65   :  { %v4261_v13 = vadd.f32 %v1346_v9, %v5184_v20 }
 0xe66   :  { %v3221_v21 = vmul.f32 -1.442695, %v4260_v5 }
 0xe67   :  { %v3222_v14 = vmul.f32 -1.442695, %v4261_v13 }
 0xe68   :  { %4468 = vpow2.f32 %v3221_v21 }
 0xe69   :  { %4470 = vpow2.f32 %v3222_v14 }
 0xe6a   :  { %4472 = vtanh.f32 %v4261_v13 }
 0xe72   :  { %v4469_v22 = vpop.eup %4468 }
 0xe73   :  { %v4471_v15 = vpop.eup %4470  ;;  %v1354_v17 = vadd.f32 1.0, %v4469_v22 }
 0xe74   :  { %v1361_v23 = vadd.f32 1.0, %v4471_v15  ;;  %v4473_v27 = vpop.eup %4472 }
 0xe75   :  { %4474 = vrcp.f32 %v1354_v17  ;;  %v1365_v25 = vsel %vm431_vm4, %v4473_v27, %v1275_v11 }
 0xe76   :  { %4476 = vrcp.f32 %v1361_v23 }
 0xe7f   :  { %v4475_v26 = vpop.eup %4474 }
 0xe80   :  { %v4477_v7 = vpop.eup %4476  ;;  %v1366_v30 = vmul.f32 %v4475_v26, %v1365_v25 }
 0xe81   :  { %v1364_v5 = vsel %vm431_vm4, %v4473_v27, %v4477_v7 }
 0xe82   :  { %1367 = vrot.lane.b32.xlu1 %v1366_v30, %s4722_s3 }
 0xef4   :  { %v1368_v9 = vpop.permute.xlu1 %1367 }
 0xef5   :  { %v1369_v21 = vadd.f32 %v1368_v9, %v1366_v30 }
 0xef7   :  { %4478 = vtanh.f32 %v1369_v21 }
 0xf01   :  { %v4479_v13 = vpop.eup %4478 }
 0xf02   :  { %v1371_v14 = vmul.f32 %v4479_v13, %v1364_v5 }
 0xf04   :  { %1437 = vmatmul.mubr.f32.vlgmr.msra.gmra.mrb[20].mxu1 %v1371_v14 }
 0xf05   :  { %3677 = vmatpush1.bf16.msra.mxu1 %v4807_v19  ;;  %1530 = vmatprep.mubr.f32.mxu1 %v5923_v29 }
 0xf06   :  { %3679 = vmatprep.subr.bf16.mxu1 %v4822_v24 }
 0xf09   :  { %3681 = vmatpush1.bf16.msra.mxu1 %v4837_v28 }
 0xf0a   :  { %3683 = vmatprep.subr.bf16.mxu1 %v4847_v31 }
 0xf0d   :  { %3685 = vmatpush1.bf16.msra.mxu1 %v4862_v35 }
 0xf0e   :  { %3687 = vmatprep.subr.bf16.mxu1 %v4872_v38 }
 0xf11   :  { %3689 = vmatpush1.bf16.msra.mxu1 %v4887_v42 }
 0xf12   :  { %3691 = vmatprep.subr.bf16.mxu1 %v4897_v45 }
 0xf15   :  { %3693 = vmatpush1.bf16.msra.mxu1 %v4912_v49 }
 0xf16   :  { %3695 = vmatprep.subr.bf16.mxu1 %v4922_v52 }
 0xf19   :  { %3697 = vmatpush1.bf16.msra.mxu1 %v4937_v56 }
 0xf1a   :  { %3699 = vmatprep.subr.bf16.mxu1 %v4947_v59 }
 0xf1d   :  { %3701 = vmatpush1.bf16.msra.mxu1 %v4962_v63 }
 0xf1e   :  { %3703 = vmatprep.subr.bf16.mxu1 %v4972_v2 }
 0xf21   :  { %3705 = vmatpush1.bf16.msra.mxu1 %v4981_v4 }
 0xfd7   :  { %v1438_v11 = vpop.f32.mrb[20].mxu1 }
 0xfd8   :  { %v4262_v22 = vadd.f32 %v1438_v11, %v5182_v18  ;;  %v1440_v15 = vpop.f32.mrb[21].mxu1 }
 0xfd9   :  { %v4263_v17 = vadd.f32 %v1440_v15, %v5184_v20 }
 0xfda   :  { %v3223_v23 = vmul.f32 -1.442695, %v4262_v22 }
 0xfdb   :  { %v3224_v27 = vmul.f32 -1.442695, %v4263_v17 }
 0xfdc   :  { %4480 = vpow2.f32 %v3223_v23 }
 0xfdd   :  { %4482 = vpow2.f32 %v3224_v27 }
 0xfde   :  { %4484 = vtanh.f32 %v4263_v17 }
 0xfe6   :  { %v4481_v26 = vpop.eup %4480 }
 0xfe7   :  { %v4483_v25 = vpop.eup %4482  ;;  %v1448_v7 = vadd.f32 1.0, %v4481_v26 }
 0xfe8   :  { %v1455_v30 = vadd.f32 1.0, %v4483_v25  ;;  %v4485_v5 = vpop.eup %4484 }
 0xfe9   :  { %4486 = vrcp.f32 %v1448_v7  ;;  %v1459_v13 = vsel %vm431_vm4, %v4485_v5, %v1369_v21 }
 0xfea   :  { %4488 = vrcp.f32 %v1455_v30 }
 0xff3   :  { %v4487_v9 = vpop.eup %4486 }
 0xff4   :  { %v4489_v14 = vpop.eup %4488  ;;  %v1460_v11 = vmul.f32 %v4487_v9, %v1459_v13 }
 0xff5   :  { %v1458_v22 = vsel %vm431_vm4, %v4485_v5, %v4489_v14 }
 0xff6   :  { %1461 = vrot.lane.b32.xlu0 %v1460_v11, %s4722_s3 }
0x1068   :  { %v1462_v15 = vpop.permute.xlu0 %1461 }
0x1069   :  { %v1463_v23 = vadd.f32 %v1462_v15, %v1460_v11 }
0x106b   :  { %4490 = vtanh.f32 %v1463_v23 }
0x1075   :  { %v4491_v17 = vpop.eup %4490 }
0x1076   :  { %v1465_v27 = vmul.f32 %v4491_v17, %v1458_v22 }
0x1078   :  { %1531 = vmatmul.mubr.f32.vlgmr.msra.gmra.mrb[22].mxu1 %v1465_v27 }
0x1079   :  { %3309 = vmatprep.mubr.msk.f32.mxu1 %vm4724_vm5, %v5923_v29 }
0x114b   :  { %v1532_v26 = vpop.f32.mrb[22].mxu1 }
0x114c   :  { %v4264_v25 = vadd.f32 %v1532_v26, %v5182_v18  ;;  %v1534_v7 = vpop.f32.mrb[23].mxu1 }
0x114d   :  { %v4265_v30 = vadd.f32 %v1534_v7, %v5184_v20 }
0x114e   :  { %v3225_v21 = vmul.f32 -1.442695, %v4264_v25 }
0x114f   :  { %v3226_v10 = vmul.f32 -1.442695, %v4265_v30 }
0x1150   :  { %4492 = vpow2.f32 %v3225_v21  ;;  %v305_v21 = vadd.f32 %v5117_v33, %v5184_v20 }
0x1151   :  { %4494 = vpow2.f32 %v3226_v10 }
0x1152   :  { %4496 = vtanh.f32 %v4265_v30 }
0x115a   :  { %v4493_v9 = vpop.eup %4492 }
0x115b   :  { %v4495_v5 = vpop.eup %4494  ;;  %v1542_v13 = vadd.f32 1.0, %v4493_v9 }
0x115c   :  { %v1549_v14 = vadd.f32 1.0, %v4495_v5  ;;  %v4497_v11 = vpop.eup %4496 }
0x115d   :  { %4498 = vrcp.f32 %v1542_v13  ;;  %v1553_v15 = vsel %vm431_vm4, %v4497_v11, %v1463_v23  ;;  %v303_v23 = vadd.f32 %v5115_v32, %v5182_v18 }
0x115e   :  { %4500 = vrcp.f32 %v1549_v14 }
0x1167   :  { %v4499_v22 = vpop.eup %4498 }
0x1168   :  { %v4501_v17 = vpop.eup %4500  ;;  %v1554_v27 = vmul.f32 %v4499_v22, %v1553_v15 }
0x1169   :  { %v1552_v26 = vsel %vm431_vm4, %v4497_v11, %v4501_v17 }
0x116a   :  { %1555 = vrot.lane.b32.xlu1 %v1554_v27, %s4722_s3 }
0x11dc   :  { %v1556_v10 = vpop.permute.xlu1 %1555 }
0x11dd   :  { %v1557_v25 = vadd.f32 %v1556_v10, %v1554_v27 }
0x11df   :  { %4502 = vtanh.f32 %v1557_v25 }
0x11e9   :  { %v4503_v7 = vpop.eup %4502 }
0x11ea   :  { %v1559_v30 = vmul.f32 %v4503_v7, %v1552_v26 }
0x11ec   :  { %1625 = vmatmul.mubr.f32.vlgmr.msra.gmra.mrb[0].mxu0 %v1559_v30 }
0x11ed   :  { %3741 = vmatpush1.bf16.msra.mxu0 %v4807_v19  ;;  %1718 = vmatprep.mubr.f32.mxu0 %v5923_v29 }
0x11ee   :  { %3743 = vmatprep.subr.bf16.mxu0 %v4822_v24 }
0x11f1   :  { %3745 = vmatpush1.bf16.msra.mxu0 %v4837_v28 }
0x11f2   :  { %3747 = vmatprep.subr.bf16.mxu0 %v4847_v31 }
0x11f5   :  { %3749 = vmatpush1.bf16.msra.mxu0 %v4862_v35 }
0x11f6   :  { %3751 = vmatprep.subr.bf16.mxu0 %v4872_v38 }
0x11f9   :  { %3753 = vmatpush1.bf16.msra.mxu0 %v4887_v42 }
0x11fa   :  { %3755 = vmatprep.subr.bf16.mxu0 %v4897_v45 }
0x11fd   :  { %3757 = vmatpush1.bf16.msra.mxu0 %v4912_v49 }
0x11fe   :  { %3759 = vmatprep.subr.bf16.mxu0 %v4922_v52 }
0x1201   :  { %3761 = vmatpush1.bf16.msra.mxu0 %v4937_v56 }
0x1202   :  { %3763 = vmatprep.subr.bf16.mxu0 %v4947_v59 }
0x1205   :  { %3765 = vmatpush1.bf16.msra.mxu0 %v4962_v63 }
0x1206   :  { %3767 = vmatprep.subr.bf16.mxu0 %v4972_v2 }
0x1209   :  { %3769 = vmatpush1.bf16.msra.mxu0 %v4981_v4 }
0x120a   :  { %3771 = vmatprep.subr.bf16.mxu0 %v4797_v16 }
0x12bf   :  { %v1626_v9 = vpop.f32.mrb[0].mxu0 }
0x12c0   :  { %v1631_v5 = vadd.f32 %v1626_v9, %v303_v23  ;;  %v1628_v13 = vpop.f32.mrb[1].mxu0 }
0x12c1   :  { %v1632_v14 = vadd.f32 %v1628_v13, %v305_v21 }
0x12c2   :  { %v3227_v11 = vmul.f32 -1.442695, %v1631_v5 }
0x12c3   :  { %v3228_v22 = vmul.f32 -1.442695, %v1632_v14 }
0x12c4   :  { %4504 = vpow2.f32 %v3227_v11 }
0x12c5   :  { %4506 = vpow2.f32 %v3228_v22 }
0x12c6   :  { %4508 = vtanh.f32 %v1632_v14  ;;  %v311_v14 = vadd.f32 %v5121_v36, %v5184_v20 }
0x12ce   :  { %v4505_v15 = vpop.eup %4504 }
0x12cf   :  { %v4507_v17 = vpop.eup %4506  ;;  %v1636_v27 = vadd.f32 1.0, %v4505_v15 }
0x12d0   :  { %v1643_v26 = vadd.f32 1.0, %v4507_v17  ;;  %v4509_v10 = vpop.eup %4508 }
0x12d1   :  { %4510 = vrcp.f32 %v1636_v27  ;;  %v1647_v33 = vsel %vm431_vm4, %v4509_v10, %v1557_v25  ;;  %v309_v25 = vadd.f32 %v5119_v34, %v5182_v18 }
0x12d2   :  { %4512 = vrcp.f32 %v1643_v26 }
0x12db   :  { %v4511_v32 = vpop.eup %4510 }
0x12dc   :  { %v4513_v7 = vpop.eup %4512  ;;  %v1648_v30 = vmul.f32 %v4511_v32, %v1647_v33 }
0x12dd   :  { %v1646_v23 = vsel %vm431_vm4, %v4509_v10, %v4513_v7 }
0x12de   :  { %1649 = vrot.lane.b32.xlu0 %v1648_v30, %s4722_s3 }
0x1350   :  { %v1650_v21 = vpop.permute.xlu0 %1649 }
0x1351   :  { %v1651_v9 = vadd.f32 %v1650_v21, %v1648_v30 }
0x1353   :  { %4514 = vtanh.f32 %v1651_v9 }
0x135d   :  { %v4515_v5 = vpop.eup %4514 }
0x135e   :  { %v1653_v13 = vmul.f32 %v4515_v5, %v1646_v23 }
0x1360   :  { %1719 = vmatmul.mubr.f32.vlgmr.msra.gmra.mrb[2].mxu0 %v1653_v13 }
0x1361   :  { %3773 = vmatpush1.bf16.msra.mxu0 %v4807_v19  ;;  %1812 = vmatprep.mubr.f32.mxu0 %v5923_v29 }
0x1362   :  { %3775 = vmatprep.subr.bf16.mxu0 %v4822_v24 }
0x1365   :  { %3777 = vmatpush1.bf16.msra.mxu0 %v4837_v28 }
0x1366   :  { %3779 = vmatprep.subr.bf16.mxu0 %v4847_v31 }
0x1369   :  { %3781 = vmatpush1.bf16.msra.mxu0 %v4862_v35 }
0x136a   :  { %3783 = vmatprep.subr.bf16.mxu0 %v4872_v38 }
0x136d   :  { %3785 = vmatpush1.bf16.msra.mxu0 %v4887_v42 }
0x136e   :  { %3787 = vmatprep.subr.bf16.mxu0 %v4897_v45 }
0x1371   :  { %3789 = vmatpush1.bf16.msra.mxu0 %v4912_v49 }
0x1372   :  { %3791 = vmatprep.subr.bf16.mxu0 %v4922_v52 }
0x1375   :  { %3793 = vmatpush1.bf16.msra.mxu0 %v4937_v56 }
0x1376   :  { %3795 = vmatprep.subr.bf16.mxu0 %v4947_v59 }
0x1379   :  { %3797 = vmatpush1.bf16.msra.mxu0 %v4962_v63 }
0x137a   :  { %3799 = vmatprep.subr.bf16.mxu0 %v4972_v2 }
0x137d   :  { %3801 = vmatpush1.bf16.msra.mxu0 %v4981_v4 }
0x137e   :  { %3803 = vmatprep.subr.bf16.mxu0 %v4797_v16 }
0x1433   :  { %v1720_v11 = vpop.f32.mrb[2].mxu0 }
0x1434   :  { %v1725_v22 = vadd.f32 %v1720_v11, %v309_v25  ;;  %v1722_v15 = vpop.f32.mrb[3].mxu0 }
0x1435   :  { %v1726_v17 = vadd.f32 %v1722_v15, %v311_v14 }
0x1436   :  { %v3229_v27 = vmul.f32 -1.442695, %v1725_v22  ;;  %v317_v22 = vadd.f32 %v5125_v39, %v5184_v20 }
0x1437   :  { %v3230_v26 = vmul.f32 -1.442695, %v1726_v17 }
0x1438   :  { %4516 = vpow2.f32 %v3229_v27 }
0x1439   :  { %4518 = vpow2.f32 %v3230_v26 }
0x143a   :  { %4520 = vtanh.f32 %v1726_v17 }
0x1442   :  { %v4517_v10 = vpop.eup %4516 }
0x1443   :  { %v4519_v32 = vpop.eup %4518  ;;  %v1730_v33 = vadd.f32 1.0, %v4517_v10 }
0x1444   :  { %v1737_v7 = vadd.f32 1.0, %v4519_v32  ;;  %v4521_v30 = vpop.eup %4520 }
0x1445   :  { %4522 = vrcp.f32 %v1730_v33  ;;  %v1741_v36 = vsel %vm431_vm4, %v4521_v30, %v1651_v9  ;;  %v315_v9 = vadd.f32 %v5123_v37, %v5182_v18 }
0x1446   :  { %4524 = vrcp.f32 %v1737_v7 }
0x144f   :  { %v4523_v34 = vpop.eup %4522 }
0x1450   :  { %v4525_v23 = vpop.eup %4524  ;;  %v1742_v21 = vmul.f32 %v4523_v34, %v1741_v36 }
0x1451   :  { %v1740_v5 = vsel %vm431_vm4, %v4521_v30, %v4525_v23 }
0x1452   :  { %1743 = vrot.lane.b32.xlu1 %v1742_v21, %s4722_s3 }
0x14c4   :  { %v1744_v13 = vpop.permute.xlu1 %1743 }
0x14c5   :  { %v1745_v25 = vadd.f32 %v1744_v13, %v1742_v21 }
0x14c7   :  { %4526 = vtanh.f32 %v1745_v25 }
0x14d1   :  { %v4527_v14 = vpop.eup %4526 }
0x14d2   :  { %v1747_v11 = vmul.f32 %v4527_v14, %v1740_v5 }
0x14d4   :  { %1813 = vmatmul.mubr.f32.vlgmr.msra.gmra.mrb[4].mxu0 %v1747_v11 }
0x14d5   :  { %3805 = vmatpush1.bf16.msra.mxu0 %v4807_v19  ;;  %1906 = vmatprep.mubr.f32.mxu0 %v5923_v29 }
0x14d6   :  { %3807 = vmatprep.subr.bf16.mxu0 %v4822_v24 }
0x14d9   :  { %3809 = vmatpush1.bf16.msra.mxu0 %v4837_v28 }
0x14da   :  { %3811 = vmatprep.subr.bf16.mxu0 %v4847_v31 }
0x14dd   :  { %3813 = vmatpush1.bf16.msra.mxu0 %v4862_v35 }
0x14de   :  { %3815 = vmatprep.subr.bf16.mxu0 %v4872_v38 }
0x14e1   :  { %3817 = vmatpush1.bf16.msra.mxu0 %v4887_v42 }
0x14e2   :  { %3819 = vmatprep.subr.bf16.mxu0 %v4897_v45 }
0x14e5   :  { %3821 = vmatpush1.bf16.msra.mxu0 %v4912_v49 }
0x14e6   :  { %3823 = vmatprep.subr.bf16.mxu0 %v4922_v52 }
0x14e9   :  { %3825 = vmatpush1.bf16.msra.mxu0 %v4937_v56 }
0x14ea   :  { %3827 = vmatprep.subr.bf16.mxu0 %v4947_v59 }
0x14ed   :  { %3829 = vmatpush1.bf16.msra.mxu0 %v4962_v63 }
0x14ee   :  { %3831 = vmatprep.subr.bf16.mxu0 %v4972_v2 }
0x14f1   :  { %3833 = vmatpush1.bf16.msra.mxu0 %v4981_v4 }
0x14f2   :  { %3835 = vmatprep.subr.bf16.mxu0 %v4797_v16 }
0x15a7   :  { %v1814_v15 = vpop.f32.mrb[4].mxu0 }
0x15a8   :  { %v1819_v17 = vadd.f32 %v1814_v15, %v315_v9  ;;  %v1816_v27 = vpop.f32.mrb[5].mxu0 }
0x15a9   :  { %v1820_v26 = vadd.f32 %v1816_v27, %v317_v22  ;;  %v323_v22 = vadd.f32 %v5129_v41, %v5184_v20 }
0x15aa   :  { %v3231_v10 = vmul.f32 -1.442695, %v1819_v17 }
0x15ab   :  { %v3232_v32 = vmul.f32 -1.442695, %v1820_v26 }
0x15ac   :  { %4528 = vpow2.f32 %v3231_v10 }
0x15ad   :  { %4530 = vpow2.f32 %v3232_v32 }
0x15ae   :  { %4532 = vtanh.f32 %v1820_v26 }
0x15b6   :  { %v4529_v33 = vpop.eup %4528 }
0x15b7   :  { %v4531_v7 = vpop.eup %4530  ;;  %v1824_v30 = vadd.f32 1.0, %v4529_v33 }
0x15b8   :  { %v1831_v34 = vadd.f32 1.0, %v4531_v7  ;;  %v4533_v36 = vpop.eup %4532 }
0x15b9   :  { %4534 = vrcp.f32 %v1824_v30  ;;  %v1835_v39 = vsel %vm431_vm4, %v4533_v36, %v1745_v25  ;;  %v321_v25 = vadd.f32 %v5127_v40, %v5182_v18 }
0x15ba   :  { %4536 = vrcp.f32 %v1831_v34 }
0x15c3   :  { %v4535_v37 = vpop.eup %4534 }
0x15c4   :  { %v4537_v23 = vpop.eup %4536  ;;  %v1836_v21 = vmul.f32 %v4535_v37, %v1835_v39 }
0x15c5   :  { %v1834_v5 = vsel %vm431_vm4, %v4533_v36, %v4537_v23 }
0x15c6   :  { %1837 = vrot.lane.b32.xlu0 %v1836_v21, %s4722_s3 }
0x1638   :  { %v1838_v13 = vpop.permute.xlu0 %1837 }
0x1639   :  { %v1839_v14 = vadd.f32 %v1838_v13, %v1836_v21 }
0x163b   :  { %4538 = vtanh.f32 %v1839_v14 }
0x1645   :  { %v4539_v11 = vpop.eup %4538 }
0x1646   :  { %v1841_v9 = vmul.f32 %v4539_v11, %v1834_v5 }
0x1648   :  { %1907 = vmatmul.mubr.f32.vlgmr.msra.gmra.mrb[6].mxu0 %v1841_v9  ;;  %v329_v9 = vadd.f32 %v5133_v44, %v5184_v20 }
0x1649   :  { %3837 = vmatpush1.bf16.msra.mxu0 %v4807_v19  ;;  %2000 = vmatprep.mubr.f32.mxu0 %v5923_v29 }
0x164a   :  { %3839 = vmatprep.subr.bf16.mxu0 %v4822_v24 }
0x164d   :  { %3841 = vmatpush1.bf16.msra.mxu0 %v4837_v28 }
0x164e   :  { %3843 = vmatprep.subr.bf16.mxu0 %v4847_v31 }
0x1651   :  { %3845 = vmatpush1.bf16.msra.mxu0 %v4862_v35 }
0x1652   :  { %3847 = vmatprep.subr.bf16.mxu0 %v4872_v38 }
0x1655   :  { %3849 = vmatpush1.bf16.msra.mxu0 %v4887_v42 }
0x1656   :  { %3851 = vmatprep.subr.bf16.mxu0 %v4897_v45 }
0x1659   :  { %3853 = vmatpush1.bf16.msra.mxu0 %v4912_v49 }
0x165a   :  { %3855 = vmatprep.subr.bf16.mxu0 %v4922_v52 }
0x165d   :  { %3857 = vmatpush1.bf16.msra.mxu0 %v4937_v56 }
0x165e   :  { %3859 = vmatprep.subr.bf16.mxu0 %v4947_v59 }
0x1661   :  { %3861 = vmatpush1.bf16.msra.mxu0 %v4962_v63 }
0x1662   :  { %3863 = vmatprep.subr.bf16.mxu0 %v4972_v2 }
0x1665   :  { %3865 = vmatpush1.bf16.msra.mxu0 %v4981_v4 }
0x1666   :  { %3867 = vmatprep.subr.bf16.mxu0 %v4797_v16 }
0x171b   :  { %v1908_v15 = vpop.f32.mrb[6].mxu0 }
0x171c   :  { %v1913_v17 = vadd.f32 %v1908_v15, %v321_v25  ;;  %v1910_v27 = vpop.f32.mrb[7].mxu0 }
0x171d   :  { %v1914_v26 = vadd.f32 %v1910_v27, %v323_v22 }
0x171e   :  { %v3233_v10 = vmul.f32 -1.442695, %v1913_v17 }
0x171f   :  { %v3234_v32 = vmul.f32 -1.442695, %v1914_v26 }
0x1720   :  { %4540 = vpow2.f32 %v3233_v10 }
0x1721   :  { %4542 = vpow2.f32 %v3234_v32 }
0x1722   :  { %4544 = vtanh.f32 %v1914_v26 }
0x172a   :  { %v4541_v33 = vpop.eup %4540 }
0x172b   :  { %v4543_v7 = vpop.eup %4542  ;;  %v1918_v30 = vadd.f32 1.0, %v4541_v33 }
0x172c   :  { %v1925_v34 = vadd.f32 1.0, %v4543_v7  ;;  %v4545_v36 = vpop.eup %4544 }
0x172d   :  { %4546 = vrcp.f32 %v1918_v30  ;;  %v1929_v41 = vsel %vm431_vm4, %v4545_v36, %v1839_v14  ;;  %v327_v14 = vadd.f32 %v5131_v43, %v5182_v18 }
0x172e   :  { %4548 = vrcp.f32 %v1925_v34 }
0x1737   :  { %v4547_v40 = vpop.eup %4546 }
0x1738   :  { %v4549_v37 = vpop.eup %4548  ;;  %v1930_v39 = vmul.f32 %v4547_v40, %v1929_v41 }
0x1739   :  { %v1928_v23 = vsel %vm431_vm4, %v4545_v36, %v4549_v37 }
0x173a   :  { %1931 = vrot.lane.b32.xlu1 %v1930_v39, %s4722_s3 }
0x17ac   :  { %v1932_v21 = vpop.permute.xlu1 %1931 }
0x17ad   :  { %v1933_v5 = vadd.f32 %v1932_v21, %v1930_v39  ;;  %v333_v21 = vadd.f32 %v5135_v46, %v5182_v18 }
0x17af   :  { %4550 = vtanh.f32 %v1933_v5 }
0x17b9   :  { %v4551_v13 = vpop.eup %4550 }
0x17ba   :  { %v1935_v11 = vmul.f32 %v4551_v13, %v1928_v23 }
0x17bc   :  { %2001 = vmatmul.mubr.f32.vlgmr.msra.gmra.mrb[8].mxu0 %v1935_v11 }
0x17bd   :  { %3869 = vmatpush1.bf16.msra.mxu0 %v4807_v19  ;;  %2094 = vmatprep.mubr.f32.mxu0 %v5923_v29 }
0x17be   :  { %3871 = vmatprep.subr.bf16.mxu0 %v4822_v24 }
0x17c1   :  { %3873 = vmatpush1.bf16.msra.mxu0 %v4837_v28 }
0x17c2   :  { %3875 = vmatprep.subr.bf16.mxu0 %v4847_v31 }
0x17c5   :  { %3877 = vmatpush1.bf16.msra.mxu0 %v4862_v35 }
0x17c6   :  { %3879 = vmatprep.subr.bf16.mxu0 %v4872_v38 }
0x17c9   :  { %3881 = vmatpush1.bf16.msra.mxu0 %v4887_v42 }
0x17ca   :  { %3883 = vmatprep.subr.bf16.mxu0 %v4897_v45 }
0x17cd   :  { %3885 = vmatpush1.bf16.msra.mxu0 %v4912_v49 }
0x17ce   :  { %3887 = vmatprep.subr.bf16.mxu0 %v4922_v52 }
0x17d1   :  { %3889 = vmatpush1.bf16.msra.mxu0 %v4937_v56 }
0x17d2   :  { %3891 = vmatprep.subr.bf16.mxu0 %v4947_v59 }
0x17d5   :  { %3893 = vmatpush1.bf16.msra.mxu0 %v4962_v63 }
0x17d6   :  { %3895 = vmatprep.subr.bf16.mxu0 %v4972_v2 }
0x17d9   :  { %3897 = vmatpush1.bf16.msra.mxu0 %v4981_v4 }
0x17da   :  { %3899 = vmatprep.subr.bf16.mxu0 %v4797_v16 }
0x188f   :  { %v2002_v25 = vpop.f32.mrb[8].mxu0 }
0x1890   :  { %v2007_v22 = vadd.f32 %v2002_v25, %v327_v14  ;;  %v2004_v15 = vpop.f32.mrb[9].mxu0 }
0x1891   :  { %v2008_v17 = vadd.f32 %v2004_v15, %v329_v9 }
0x1892   :  { %v3235_v27 = vmul.f32 -1.442695, %v2007_v22 }
0x1893   :  { %v3236_v26 = vmul.f32 -1.442695, %v2008_v17 }
0x1894   :  { %4552 = vpow2.f32 %v3235_v27 }
0x1895   :  { %4554 = vpow2.f32 %v3236_v26 }
0x1896   :  { %4556 = vtanh.f32 %v2008_v17 }
0x189e   :  { %v4553_v10 = vpop.eup %4552 }
0x189f   :  { %v4555_v32 = vpop.eup %4554  ;;  %v2012_v33 = vadd.f32 1.0, %v4553_v10 }
0x18a0   :  { %v2019_v7 = vadd.f32 1.0, %v4555_v32  ;;  %v4557_v30 = vpop.eup %4556 }
0x18a1   :  { %4558 = vrcp.f32 %v2012_v33  ;;  %v2023_v44 = vsel %vm431_vm4, %v4557_v30, %v1933_v5  ;;  %v335_v5 = vadd.f32 %v5137_v47, %v5184_v20 }
0x18a2   :  { %4560 = vrcp.f32 %v2019_v7 }
0x18ab   :  { %v4559_v43 = vpop.eup %4558 }
0x18ac   :  { %v4561_v34 = vpop.eup %4560  ;;  %v2024_v36 = vmul.f32 %v4559_v43, %v2023_v44 }
0x18ad   :  { %v2022_v40 = vsel %vm431_vm4, %v4557_v30, %v4561_v34 }
0x18ae   :  { %2025 = vrot.lane.b32.xlu0 %v2024_v36, %s4722_s3 }
0x1920   :  { %v2026_v41 = vpop.permute.xlu0 %2025 }
0x1921   :  { %v2027_v37 = vadd.f32 %v2026_v41, %v2024_v36  ;;  %v339_v36 = vadd.f32 %v5139_v48, %v5182_v18 }
0x1923   :  { %4562 = vtanh.f32 %v2027_v37 }
0x192d   :  { %v4563_v39 = vpop.eup %4562 }
0x192e   :  { %v2029_v23 = vmul.f32 %v4563_v39, %v2022_v40  ;;  %v341_v40 = vadd.f32 %v5141_v50, %v5184_v20 }
0x1930   :  { %2095 = vmatmul.mubr.f32.vlgmr.msra.gmra.mrb[10].mxu0 %v2029_v23 }
0x1931   :  { %3901 = vmatpush1.bf16.msra.mxu0 %v4807_v19  ;;  %2188 = vmatprep.mubr.f32.mxu0 %v5923_v29 }
0x1932   :  { %3903 = vmatprep.subr.bf16.mxu0 %v4822_v24 }
0x1935   :  { %3905 = vmatpush1.bf16.msra.mxu0 %v4837_v28 }
0x1936   :  { %3907 = vmatprep.subr.bf16.mxu0 %v4847_v31 }
0x1939   :  { %3909 = vmatpush1.bf16.msra.mxu0 %v4862_v35 }
0x193a   :  { %3911 = vmatprep.subr.bf16.mxu0 %v4872_v38 }
0x193d   :  { %3913 = vmatpush1.bf16.msra.mxu0 %v4887_v42 }
0x193e   :  { %3915 = vmatprep.subr.bf16.mxu0 %v4897_v45 }
0x1941   :  { %3917 = vmatpush1.bf16.msra.mxu0 %v4912_v49 }
0x1942   :  { %3919 = vmatprep.subr.bf16.mxu0 %v4922_v52 }
0x1945   :  { %3921 = vmatpush1.bf16.msra.mxu0 %v4937_v56 }
0x1946   :  { %3923 = vmatprep.subr.bf16.mxu0 %v4947_v59 }
0x1949   :  { %3925 = vmatpush1.bf16.msra.mxu0 %v4962_v63 }
0x194a   :  { %3927 = vmatprep.subr.bf16.mxu0 %v4972_v2 }
0x194d   :  { %3929 = vmatpush1.bf16.msra.mxu0 %v4981_v4 }
0x194e   :  { %3931 = vmatprep.subr.bf16.mxu0 %v4797_v16 }
0x1a03   :  { %v2096_v13 = vpop.f32.mrb[10].mxu0 }
0x1a04   :  { %v2101_v11 = vadd.f32 %v2096_v13, %v333_v21  ;;  %v2098_v14 = vpop.f32.mrb[11].mxu0 }
0x1a05   :  { %v2102_v9 = vadd.f32 %v2098_v14, %v335_v5 }
0x1a06   :  { %v3237_v25 = vmul.f32 -1.442695, %v2101_v11 }
0x1a07   :  { %v3238_v22 = vmul.f32 -1.442695, %v2102_v9 }
0x1a08   :  { %4564 = vpow2.f32 %v3237_v25 }
0x1a09   :  { %4566 = vpow2.f32 %v3238_v22 }
0x1a0a   :  { %4568 = vtanh.f32 %v2102_v9 }
0x1a12   :  { %v4565_v15 = vpop.eup %4564 }
0x1a13   :  { %v4567_v17 = vpop.eup %4566  ;;  %v2106_v27 = vadd.f32 1.0, %v4565_v15 }
0x1a14   :  { %v2113_v26 = vadd.f32 1.0, %v4567_v17  ;;  %v4569_v10 = vpop.eup %4568 }
0x1a15   :  { %4570 = vrcp.f32 %v2106_v27  ;;  %v2117_v47 = vsel %vm431_vm4, %v4569_v10, %v2027_v37 }
0x1a16   :  { %4572 = vrcp.f32 %v2113_v26 }
0x1a1f   :  { %v4571_v46 = vpop.eup %4570 }
0x1a20   :  { %v4573_v32 = vpop.eup %4572  ;;  %v2118_v33 = vmul.f32 %v4571_v46, %v2117_v47  ;;  %v345_v47 = vadd.f32 %v5143_v51, %v5182_v18 }
0x1a21   :  { %v2116_v7 = vsel %vm431_vm4, %v4569_v10, %v4573_v32  ;;  %v347_v32 = vadd.f32 %v5145_v53, %v5184_v20 }
0x1a22   :  { %2119 = vrot.lane.b32.xlu1 %v2118_v33, %s4722_s3 }
0x1a94   :  { %v2120_v30 = vpop.permute.xlu1 %2119 }
0x1a95   :  { %v2121_v43 = vadd.f32 %v2120_v30, %v2118_v33 }
0x1a97   :  { %4574 = vtanh.f32 %v2121_v43 }
0x1aa1   :  { %v4575_v44 = vpop.eup %4574 }
0x1aa2   :  { %v2123_v34 = vmul.f32 %v4575_v44, %v2116_v7 }
0x1aa4   :  { %2189 = vmatmul.mubr.f32.vlgmr.msra.gmra.mrb[12].mxu0 %v2123_v34 }
0x1aa5   :  { %3933 = vmatpush1.bf16.msra.mxu0 %v4807_v19  ;;  %2282 = vmatprep.mubr.f32.mxu0 %v5923_v29 }
0x1aa6   :  { %3935 = vmatprep.subr.bf16.mxu0 %v4822_v24 }
0x1aa9   :  { %3937 = vmatpush1.bf16.msra.mxu0 %v4837_v28 }
0x1aaa   :  { %3939 = vmatprep.subr.bf16.mxu0 %v4847_v31 }
0x1aad   :  { %3941 = vmatpush1.bf16.msra.mxu0 %v4862_v35 }
0x1aae   :  { %3943 = vmatprep.subr.bf16.mxu0 %v4872_v38 }
0x1ab1   :  { %3945 = vmatpush1.bf16.msra.mxu0 %v4887_v42 }
0x1ab2   :  { %3947 = vmatprep.subr.bf16.mxu0 %v4897_v45 }
0x1ab5   :  { %3949 = vmatpush1.bf16.msra.mxu0 %v4912_v49 }
0x1ab6   :  { %3951 = vmatprep.subr.bf16.mxu0 %v4922_v52 }
0x1ab9   :  { %3953 = vmatpush1.bf16.msra.mxu0 %v4937_v56 }
0x1aba   :  { %3955 = vmatprep.subr.bf16.mxu0 %v4947_v59 }
0x1abd   :  { %3957 = vmatpush1.bf16.msra.mxu0 %v4962_v63 }
0x1abe   :  { %3959 = vmatprep.subr.bf16.mxu0 %v4972_v2 }
0x1ac1   :  { %3961 = vmatpush1.bf16.msra.mxu0 %v4981_v4 }
0x1ac2   :  { %3963 = vmatprep.subr.bf16.mxu0 %v4797_v16 }
0x1b77   :  { %v2190_v41 = vpop.f32.mrb[12].mxu0 }
0x1b78   :  { %v2195_v37 = vadd.f32 %v2190_v41, %v339_v36  ;;  %v2192_v39 = vpop.f32.mrb[13].mxu0 }
0x1b79   :  { %v2196_v23 = vadd.f32 %v2192_v39, %v341_v40 }
0x1b7a   :  { %v3239_v21 = vmul.f32 -1.442695, %v2195_v37 }
0x1b7b   :  { %v3240_v5 = vmul.f32 -1.442695, %v2196_v23 }
0x1b7c   :  { %4576 = vpow2.f32 %v3239_v21 }
0x1b7d   :  { %4578 = vpow2.f32 %v3240_v5 }
0x1b7e   :  { %4580 = vtanh.f32 %v2196_v23 }
0x1b86   :  { %v4577_v13 = vpop.eup %4576 }
0x1b87   :  { %v4579_v11 = vpop.eup %4578  ;;  %v2200_v14 = vadd.f32 1.0, %v4577_v13 }
0x1b88   :  { %v2207_v9 = vadd.f32 1.0, %v4579_v11  ;;  %v4581_v25 = vpop.eup %4580 }
0x1b89   :  { %4582 = vrcp.f32 %v2200_v14  ;;  %v2211_v50 = vsel %vm431_vm4, %v4581_v25, %v2121_v43 }
0x1b8a   :  { %4584 = vrcp.f32 %v2207_v9 }
0x1b93   :  { %v4583_v48 = vpop.eup %4582 }
0x1b94   :  { %v4585_v22 = vpop.eup %4584  ;;  %v2212_v15 = vmul.f32 %v4583_v48, %v2211_v50  ;;  %v353_v48 = vadd.f32 %v5149_v55, %v5184_v20 }
0x1b95   :  { %v2210_v17 = vsel %vm431_vm4, %v4581_v25, %v4585_v22  ;;  %v351_v25 = vadd.f32 %v5147_v54, %v5182_v18 }
0x1b96   :  { %2213 = vrot.lane.b32.xlu0 %v2212_v15, %s4722_s3 }
0x1c08   :  { %v2214_v27 = vpop.permute.xlu0 %2213 }
0x1c09   :  { %v2215_v26 = vadd.f32 %v2214_v27, %v2212_v15 }
0x1c0b   :  { %4586 = vtanh.f32 %v2215_v26 }
0x1c15   :  { %v4587_v10 = vpop.eup %4586 }
0x1c16   :  { %v2217_v46 = vmul.f32 %v4587_v10, %v2210_v17 }
0x1c18   :  { %2283 = vmatmul.mubr.f32.vlgmr.msra.gmra.mrb[14].mxu0 %v2217_v46 }
0x1c19   :  { %3965 = vmatpush1.bf16.msra.mxu0 %v4807_v19  ;;  %2376 = vmatprep.mubr.f32.mxu0 %v5923_v29 }
0x1c1a   :  { %3967 = vmatprep.subr.bf16.mxu0 %v4822_v24 }
0x1c1d   :  { %3969 = vmatpush1.bf16.msra.mxu0 %v4837_v28 }
0x1c1e   :  { %3971 = vmatprep.subr.bf16.mxu0 %v4847_v31 }
0x1c21   :  { %3973 = vmatpush1.bf16.msra.mxu0 %v4862_v35 }
0x1c22   :  { %3975 = vmatprep.subr.bf16.mxu0 %v4872_v38 }
0x1c25   :  { %3977 = vmatpush1.bf16.msra.mxu0 %v4887_v42 }
0x1c26   :  { %3979 = vmatprep.subr.bf16.mxu0 %v4897_v45 }
0x1c29   :  { %3981 = vmatpush1.bf16.msra.mxu0 %v4912_v49 }
0x1c2a   :  { %3983 = vmatprep.subr.bf16.mxu0 %v4922_v52 }
0x1c2d   :  { %3985 = vmatpush1.bf16.msra.mxu0 %v4937_v56 }
0x1c2e   :  { %3987 = vmatprep.subr.bf16.mxu0 %v4947_v59 }
0x1c31   :  { %3989 = vmatpush1.bf16.msra.mxu0 %v4962_v63 }
0x1c32   :  { %3991 = vmatprep.subr.bf16.mxu0 %v4972_v2 }
0x1c35   :  { %3993 = vmatpush1.bf16.msra.mxu0 %v4981_v4 }
0x1c36   :  { %3995 = vmatprep.subr.bf16.mxu0 %v4797_v16 }
0x1ceb   :  { %v2284_v33 = vpop.f32.mrb[14].mxu0 }
0x1cec   :  { %v2289_v7 = vadd.f32 %v2284_v33, %v345_v47  ;;  %v2286_v30 = vpop.f32.mrb[15].mxu0 }
0x1ced   :  { %v2290_v43 = vadd.f32 %v2286_v30, %v347_v32 }
0x1cee   :  { %v3241_v44 = vmul.f32 -1.442695, %v2289_v7 }
0x1cef   :  { %v3242_v34 = vmul.f32 -1.442695, %v2290_v43 }
0x1cf0   :  { %4588 = vpow2.f32 %v3241_v44 }
0x1cf1   :  { %4590 = vpow2.f32 %v3242_v34 }
0x1cf2   :  { %4592 = vtanh.f32 %v2290_v43 }
0x1cfa   :  { %v4589_v36 = vpop.eup %4588 }
0x1cfb   :  { %v4591_v40 = vpop.eup %4590  ;;  %v2294_v41 = vadd.f32 1.0, %v4589_v36 }
0x1cfc   :  { %v2301_v37 = vadd.f32 1.0, %v4591_v40  ;;  %v4593_v39 = vpop.eup %4592 }
0x1cfd   :  { %4594 = vrcp.f32 %v2294_v41  ;;  %v2305_v53 = vsel %vm431_vm4, %v4593_v39, %v2215_v26  ;;  %v357_v41 = vadd.f32 %v5151_v57, %v5182_v18 }
0x1cfe   :  { %4596 = vrcp.f32 %v2301_v37  ;;  %v359_v37 = vadd.f32 %v5153_v58, %v5184_v20 }
0x1d07   :  { %v4595_v51 = vpop.eup %4594 }
0x1d08   :  { %v4597_v23 = vpop.eup %4596  ;;  %v2306_v21 = vmul.f32 %v4595_v51, %v2305_v53 }
0x1d09   :  { %v2304_v5 = vsel %vm431_vm4, %v4593_v39, %v4597_v23 }
0x1d0a   :  { %2307 = vrot.lane.b32.xlu1 %v2306_v21, %s4722_s3 }
0x1d7c   :  { %v2308_v13 = vpop.permute.xlu1 %2307 }
0x1d7d   :  { %v2309_v11 = vadd.f32 %v2308_v13, %v2306_v21 }
0x1d7f   :  { %4598 = vtanh.f32 %v2309_v11 }
0x1d89   :  { %v4599_v14 = vpop.eup %4598 }
0x1d8a   :  { %v2311_v9 = vmul.f32 %v4599_v14, %v2304_v5 }
0x1d8c   :  { %2377 = vmatmul.mubr.f32.vlgmr.msra.gmra.mrb[16].mxu0 %v2311_v9 }
0x1d8d   :  { %3997 = vmatpush1.bf16.msra.mxu0 %v4807_v19  ;;  %2470 = vmatprep.mubr.f32.mxu0 %v5923_v29 }
0x1d8e   :  { %3999 = vmatprep.subr.bf16.mxu0 %v4822_v24 }
0x1d91   :  { %4001 = vmatpush1.bf16.msra.mxu0 %v4837_v28 }
0x1d92   :  { %4003 = vmatprep.subr.bf16.mxu0 %v4847_v31 }
0x1d95   :  { %4005 = vmatpush1.bf16.msra.mxu0 %v4862_v35 }
0x1d96   :  { %4007 = vmatprep.subr.bf16.mxu0 %v4872_v38 }
0x1d99   :  { %4009 = vmatpush1.bf16.msra.mxu0 %v4887_v42 }
0x1d9a   :  { %4011 = vmatprep.subr.bf16.mxu0 %v4897_v45 }
0x1d9d   :  { %4013 = vmatpush1.bf16.msra.mxu0 %v4912_v49 }
0x1d9e   :  { %4015 = vmatprep.subr.bf16.mxu0 %v4922_v52 }
0x1da1   :  { %4017 = vmatpush1.bf16.msra.mxu0 %v4937_v56 }
0x1da2   :  { %4019 = vmatprep.subr.bf16.mxu0 %v4947_v59 }
0x1da5   :  { %4021 = vmatpush1.bf16.msra.mxu0 %v4962_v63 }
0x1da6   :  { %4023 = vmatprep.subr.bf16.mxu0 %v4972_v2 }
0x1da9   :  { %4025 = vmatpush1.bf16.msra.mxu0 %v4981_v4 }
0x1daa   :  { %4027 = vmatprep.subr.bf16.mxu0 %v4797_v16 }
0x1e5f   :  { %v2378_v50 = vpop.f32.mrb[16].mxu0 }
0x1e60   :  { %v2383_v22 = vadd.f32 %v2378_v50, %v351_v25  ;;  %v2380_v15 = vpop.f32.mrb[17].mxu0 }
0x1e61   :  { %v2384_v17 = vadd.f32 %v2380_v15, %v353_v48 }
0x1e62   :  { %v3243_v27 = vmul.f32 -1.442695, %v2383_v22 }
0x1e63   :  { %v3244_v26 = vmul.f32 -1.442695, %v2384_v17 }
0x1e64   :  { %4600 = vpow2.f32 %v3243_v27 }
0x1e65   :  { %4602 = vpow2.f32 %v3244_v26 }
0x1e66   :  { %4604 = vtanh.f32 %v2384_v17 }
0x1e6e   :  { %v4601_v10 = vpop.eup %4600 }
0x1e6f   :  { %v4603_v46 = vpop.eup %4602  ;;  %v2388_v47 = vadd.f32 1.0, %v4601_v10  ;;  %v363_v10 = vadd.f32 %v5155_v60, %v5182_v18 }
0x1e70   :  { %v2395_v32 = vadd.f32 1.0, %v4603_v46  ;;  %v4605_v33 = vpop.eup %4604  ;;  %v365_v46 = vadd.f32 %v5157_v61, %v5184_v20 }
0x1e71   :  { %4606 = vrcp.f32 %v2388_v47  ;;  %v2399_v55 = vsel %vm431_vm4, %v4605_v33, %v2309_v11 }
0x1e72   :  { %4608 = vrcp.f32 %v2395_v32 }
0x1e7b   :  { %v4607_v54 = vpop.eup %4606 }
0x1e7c   :  { %v4609_v7 = vpop.eup %4608  ;;  %v2400_v30 = vmul.f32 %v4607_v54, %v2399_v55 }
0x1e7d   :  { %v2398_v43 = vsel %vm431_vm4, %v4605_v33, %v4609_v7 }
0x1e7e   :  { %2401 = vrot.lane.b32.xlu0 %v2400_v30, %s4722_s3 }
0x1ef0   :  { %v2402_v44 = vpop.permute.xlu0 %2401 }
0x1ef1   :  { %v2403_v34 = vadd.f32 %v2402_v44, %v2400_v30 }
0x1ef3   :  { %4610 = vtanh.f32 %v2403_v34 }
0x1efd   :  { %v4611_v36 = vpop.eup %4610 }
0x1efe   :  { %v2405_v40 = vmul.f32 %v4611_v36, %v2398_v43 }
0x1f00   :  { %2471 = vmatmul.mubr.f32.vlgmr.msra.gmra.mrb[18].mxu0 %v2405_v40 }
0x1f01   :  { %4029 = vmatpush1.bf16.msra.mxu0 %v4807_v19  ;;  %2564 = vmatprep.mubr.f32.mxu0 %v5923_v29 }
0x1f02   :  { %4031 = vmatprep.subr.bf16.mxu0 %v4822_v24 }
0x1f05   :  { %4033 = vmatpush1.bf16.msra.mxu0 %v4837_v28 }
0x1f06   :  { %4035 = vmatprep.subr.bf16.mxu0 %v4847_v31 }
0x1f09   :  { %4037 = vmatpush1.bf16.msra.mxu0 %v4862_v35 }
0x1f0a   :  { %4039 = vmatprep.subr.bf16.mxu0 %v4872_v38 }
0x1f0d   :  { %4041 = vmatpush1.bf16.msra.mxu0 %v4887_v42 }
0x1f0e   :  { %4043 = vmatprep.subr.bf16.mxu0 %v4897_v45 }
0x1f11   :  { %4045 = vmatpush1.bf16.msra.mxu0 %v4912_v49 }
0x1f12   :  { %4047 = vmatprep.subr.bf16.mxu0 %v4922_v52 }
0x1f15   :  { %4049 = vmatpush1.bf16.msra.mxu0 %v4937_v56 }
0x1f16   :  { %4051 = vmatprep.subr.bf16.mxu0 %v4947_v59 }
0x1f19   :  { %4053 = vmatpush1.bf16.msra.mxu0 %v4962_v63 }
0x1f1a   :  { %4055 = vmatprep.subr.bf16.mxu0 %v4972_v2 }
0x1f1d   :  { %4057 = vmatpush1.bf16.msra.mxu0 %v4981_v4 }
0x1f1e   :  { %4059 = vmatprep.subr.bf16.mxu0 %v4797_v16 }
0x1fd3   :  { %v2472_v39 = vpop.f32.mrb[18].mxu0 }
0x1fd4   :  { %v2477_v51 = vadd.f32 %v2472_v39, %v357_v41  ;;  %v2474_v53 = vpop.f32.mrb[19].mxu0 }
0x1fd5   :  { %v2478_v23 = vadd.f32 %v2474_v53, %v359_v37 }
0x1fd6   :  { %v3245_v21 = vmul.f32 -1.442695, %v2477_v51 }
0x1fd7   :  { %v3246_v5 = vmul.f32 -1.442695, %v2478_v23 }
0x1fd8   :  { %4612 = vpow2.f32 %v3245_v21  ;;  %v369_v21 = vadd.f32 %v5159_v62, %v5182_v18 }
0x1fd9   :  { %4614 = vpow2.f32 %v3246_v5  ;;  %v371_v5 = vadd.f32 %v5161_v0, %v5184_v20 }
0x1fda   :  { %4616 = vtanh.f32 %v2478_v23 }
0x1fe2   :  { %v4613_v13 = vpop.eup %4612 }
0x1fe3   :  { %v4615_v11 = vpop.eup %4614  ;;  %v2482_v14 = vadd.f32 1.0, %v4613_v13 }
0x1fe4   :  { %v2489_v9 = vadd.f32 1.0, %v4615_v11  ;;  %v4617_v25 = vpop.eup %4616 }
0x1fe5   :  { %4618 = vrcp.f32 %v2482_v14  ;;  %v2493_v58 = vsel %vm431_vm4, %v4617_v25, %v2403_v34 }
0x1fe6   :  { %4620 = vrcp.f32 %v2489_v9 }
0x1fef   :  { %v4619_v57 = vpop.eup %4618 }
0x1ff0   :  { %v4621_v48 = vpop.eup %4620  ;;  %v2494_v50 = vmul.f32 %v4619_v57, %v2493_v58 }
0x1ff1   :  { %v2492_v22 = vsel %vm431_vm4, %v4617_v25, %v4621_v48 }
0x1ff2   :  { %2495 = vrot.lane.b32.xlu1 %v2494_v50, %s4722_s3 }
0x2064   :  { %v2496_v15 = vpop.permute.xlu1 %2495 }
0x2065   :  { %v2497_v17 = vadd.f32 %v2496_v15, %v2494_v50 }
0x2067   :  { %4622 = vtanh.f32 %v2497_v17 }
0x2071   :  { %v4623_v27 = vpop.eup %4622 }
0x2072   :  { %v2499_v26 = vmul.f32 %v4623_v27, %v2492_v22 }
0x2074   :  { %2565 = vmatmul.mubr.f32.vlgmr.msra.gmra.mrb[20].mxu0 %v2499_v26 }
0x2075   :  { %4061 = vmatpush1.bf16.msra.mxu0 %v4807_v19  ;;  %2658 = vmatprep.mubr.f32.mxu0 %v5923_v29 }
0x2076   :  { %4063 = vmatprep.subr.bf16.mxu0 %v4822_v24 }
0x2079   :  { %4065 = vmatpush1.bf16.msra.mxu0 %v4837_v28 }
0x207a   :  { %4067 = vmatprep.subr.bf16.mxu0 %v4847_v31 }
0x207d   :  { %4069 = vmatpush1.bf16.msra.mxu0 %v4862_v35 }
0x207e   :  { %4071 = vmatprep.subr.bf16.mxu0 %v4872_v38 }
0x2081   :  { %4073 = vmatpush1.bf16.msra.mxu0 %v4887_v42 }
0x2082   :  { %4075 = vmatprep.subr.bf16.mxu0 %v4897_v45 }
0x2085   :  { %4077 = vmatpush1.bf16.msra.mxu0 %v4912_v49 }
0x2086   :  { %4079 = vmatprep.subr.bf16.mxu0 %v4922_v52 }
0x2089   :  { %4081 = vmatpush1.bf16.msra.mxu0 %v4937_v56 }
0x208a   :  { %4083 = vmatprep.subr.bf16.mxu0 %v4947_v59 }
0x208d   :  { %4085 = vmatpush1.bf16.msra.mxu0 %v4962_v63 }
0x208e   :  { %4087 = vmatprep.subr.bf16.mxu0 %v4972_v2 }
0x2091   :  { %4089 = vmatpush1.bf16.msra.mxu0 %v4981_v4 }
0x2092   :  { %4091 = vmatprep.subr.bf16.mxu0 %v4797_v16 }
0x2147   :  { %v2566_v47 = vpop.f32.mrb[20].mxu0 }
0x2148   :  { %v2571_v32 = vadd.f32 %v2566_v47, %v363_v10  ;;  %v2568_v33 = vpop.f32.mrb[21].mxu0 }
0x2149   :  { %v2572_v54 = vadd.f32 %v2568_v33, %v365_v46  ;;  %v375_v33 = vadd.f32 %v5163_v1, %v5182_v18 }
0x214a   :  { %v3247_v55 = vmul.f32 -1.442695, %v2571_v32 }
0x214b   :  { %v3248_v7 = vmul.f32 -1.442695, %v2572_v54 }
0x214c   :  { %4624 = vpow2.f32 %v3247_v55 }
0x214d   :  { %4626 = vpow2.f32 %v3248_v7 }
0x214e   :  { %4628 = vtanh.f32 %v2572_v54  ;;  %v377_v54 = vadd.f32 %v5165_v3, %v5184_v20 }
0x2156   :  { %v4625_v30 = vpop.eup %4624 }
0x2157   :  { %v4627_v43 = vpop.eup %4626  ;;  %v2576_v44 = vadd.f32 1.0, %v4625_v30 }
0x2158   :  { %v2583_v34 = vadd.f32 1.0, %v4627_v43  ;;  %v4629_v36 = vpop.eup %4628 }
0x2159   :  { %4630 = vrcp.f32 %v2576_v44  ;;  %v2587_v61 = vsel %vm431_vm4, %v4629_v36, %v2497_v17 }
0x215a   :  { %4632 = vrcp.f32 %v2583_v34 }
0x2163   :  { %v4631_v60 = vpop.eup %4630 }
0x2164   :  { %v4633_v40 = vpop.eup %4632  ;;  %v2588_v41 = vmul.f32 %v4631_v60, %v2587_v61 }
0x2165   :  { %v2586_v37 = vsel %vm431_vm4, %v4629_v36, %v4633_v40 }
0x2166   :  { %2589 = vrot.lane.b32.xlu0 %v2588_v41, %s4722_s3 }
0x21d8   :  { %v2590_v39 = vpop.permute.xlu0 %2589 }
0x21d9   :  { %v2591_v51 = vadd.f32 %v2590_v39, %v2588_v41 }
0x21db   :  { %4634 = vtanh.f32 %v2591_v51 }
0x21e5   :  { %v4635_v53 = vpop.eup %4634 }
0x21e6   :  { %v2593_v23 = vmul.f32 %v4635_v53, %v2586_v37 }
0x21e8   :  { %2659 = vmatmul.mubr.f32.vlgmr.msra.gmra.mrb[22].mxu0 %v2593_v23 }
0x21e9   :  { %4093 = vmatpush1.bf16.msra.mxu0 %v4807_v19  ;;  %2752 = vmatprep.mubr.f32.mxu0 %v5923_v29 }
0x21ea   :  { %4095 = vmatprep.subr.bf16.mxu0 %v4822_v24 }
0x21ed   :  { %4097 = vmatpush1.bf16.msra.mxu0 %v4837_v28 }
0x21ee   :  { %4099 = vmatprep.subr.bf16.mxu0 %v4847_v31 }
0x21f1   :  { %4101 = vmatpush1.bf16.msra.mxu0 %v4862_v35 }
0x21f2   :  { %4103 = vmatprep.subr.bf16.mxu0 %v4872_v38 }
0x21f5   :  { %4105 = vmatpush1.bf16.msra.mxu0 %v4887_v42 }
0x21f6   :  { %4107 = vmatprep.subr.bf16.mxu0 %v4897_v45 }
0x21f9   :  { %4109 = vmatpush1.bf16.msra.mxu0 %v4912_v49 }
0x21fa   :  { %4111 = vmatprep.subr.bf16.mxu0 %v4922_v52 }
0x21fd   :  { %4113 = vmatpush1.bf16.msra.mxu0 %v4937_v56 }
0x21fe   :  { %4115 = vmatprep.subr.bf16.mxu0 %v4947_v59 }
0x2201   :  { %4117 = vmatpush1.bf16.msra.mxu0 %v4962_v63 }
0x2202   :  { %4119 = vmatprep.subr.bf16.mxu0 %v4972_v2 }
0x2205   :  { %4121 = vmatpush1.bf16.msra.mxu0 %v4981_v4 }
0x2206   :  { %4123 = vmatprep.subr.bf16.mxu0 %v4797_v16 }
0x22bb   :  { %v2660_v13 = vpop.f32.mrb[22].mxu0 }
0x22bc   :  { %v2665_v11 = vadd.f32 %v2660_v13, %v369_v21  ;;  %v2662_v14 = vpop.f32.mrb[23].mxu0  ;;  %v381_v13 = vadd.f32 %v5167_v6, %v5182_v18 }
0x22bd   :  { %v2666_v9 = vadd.f32 %v2662_v14, %v371_v5 }
0x22be   :  { %v3249_v25 = vmul.f32 -1.442695, %v2665_v11  ;;  %v383_v11 = vadd.f32 %v5169_v8, %v5184_v20 }
0x22bf   :  { %v3250_v57 = vmul.f32 -1.442695, %v2666_v9 }
0x22c0   :  { %4636 = vpow2.f32 %v3249_v25 }
0x22c1   :  { %4638 = vpow2.f32 %v3250_v57 }
0x22c2   :  { %4640 = vtanh.f32 %v2666_v9 }
0x22ca   :  { %v4637_v58 = vpop.eup %4636 }
0x22cb   :  { %v4639_v48 = vpop.eup %4638  ;;  %v2670_v50 = vadd.f32 1.0, %v4637_v58 }
0x22cc   :  { %v2677_v22 = vadd.f32 1.0, %v4639_v48  ;;  %v4641_v15 = vpop.eup %4640 }
0x22cd   :  { %4642 = vrcp.f32 %v2670_v50  ;;  %v2681_v0 = vsel %vm431_vm4, %v4641_v15, %v2591_v51 }
0x22ce   :  { %4644 = vrcp.f32 %v2677_v22 }
0x22d7   :  { %v4643_v62 = vpop.eup %4642 }
0x22d8   :  { %v4645_v17 = vpop.eup %4644  ;;  %v2682_v27 = vmul.f32 %v4643_v62, %v2681_v0 }
0x22d9   :  { %v2680_v26 = vsel %vm431_vm4, %v4641_v15, %v4645_v17 }
0x22da   :  { %2683 = vrot.lane.b32.xlu1 %v2682_v27, %s4722_s3 }
0x234c   :  { %v2684_v10 = vpop.permute.xlu1 %2683 }
0x234d   :  { %v2685_v46 = vadd.f32 %v2684_v10, %v2682_v27 }
0x234f   :  { %4646 = vtanh.f32 %v2685_v46 }
0x2359   :  { %v4647_v47 = vpop.eup %4646 }
0x235a   :  { %v2687_v32 = vmul.f32 %v4647_v47, %v2680_v26 }
0x235c   :  { %2753 = vmatmul.mubr.f32.vlgmr.msra.gmra.mrb[24].mxu0 %v2687_v32 }
0x235d   :  { %4125 = vmatpush1.bf16.msra.mxu0 %v4807_v19  ;;  %2846 = vmatprep.mubr.f32.mxu0 %v5923_v29 }
0x235e   :  { %4127 = vmatprep.subr.bf16.mxu0 %v4822_v24 }
0x2361   :  { %4129 = vmatpush1.bf16.msra.mxu0 %v4837_v28 }
0x2362   :  { %4131 = vmatprep.subr.bf16.mxu0 %v4847_v31 }
0x2365   :  { %4133 = vmatpush1.bf16.msra.mxu0 %v4862_v35 }
0x2366   :  { %4135 = vmatprep.subr.bf16.mxu0 %v4872_v38 }
0x2369   :  { %4137 = vmatpush1.bf16.msra.mxu0 %v4887_v42 }
0x236a   :  { %4139 = vmatprep.subr.bf16.mxu0 %v4897_v45 }
0x236d   :  { %4141 = vmatpush1.bf16.msra.mxu0 %v4912_v49 }
0x236e   :  { %4143 = vmatprep.subr.bf16.mxu0 %v4922_v52 }
0x2371   :  { %4145 = vmatpush1.bf16.msra.mxu0 %v4937_v56 }
0x2372   :  { %4147 = vmatprep.subr.bf16.mxu0 %v4947_v59 }
0x2375   :  { %4149 = vmatpush1.bf16.msra.mxu0 %v4962_v63 }
0x2376   :  { %4151 = vmatprep.subr.bf16.mxu0 %v4972_v2 }
0x2379   :  { %4153 = vmatpush1.bf16.msra.mxu0 %v4981_v4 }
0x237a   :  { %4155 = vmatprep.subr.bf16.mxu0 %v4797_v16 }
0x242f   :  { %v2754_v55 = vpop.f32.mrb[24].mxu0 }
0x2430   :  { %v2759_v7 = vadd.f32 %v2754_v55, %v375_v33  ;;  %v2756_v30 = vpop.f32.mrb[25].mxu0 }
0x2431   :  { %v2760_v43 = vadd.f32 %v2756_v30, %v377_v54 }
0x2432   :  { %v3251_v44 = vmul.f32 -1.442695, %v2759_v7 }
0x2433   :  { %v3252_v34 = vmul.f32 -1.442695, %v2760_v43 }
0x2434   :  { %4648 = vpow2.f32 %v3251_v44 }
0x2435   :  { %4650 = vpow2.f32 %v3252_v34 }
0x2436   :  { %4652 = vtanh.f32 %v2760_v43 }
0x243e   :  { %v4649_v36 = vpop.eup %4648 }
0x243f   :  { %v4651_v60 = vpop.eup %4650  ;;  %v2764_v61 = vadd.f32 1.0, %v4649_v36  ;;  %v3064_v36 = vld [vmem:[%s5912_s4] sm:$0xff] }
0x2440   :  { %v2771_v40 = vadd.f32 1.0, %v4651_v60  ;;  %v4653_v41 = vpop.eup %4652  ;;  %v3065_v60 = vld [vmem:[%s5912_s4 + $0x8] sm:$0xff] }
0x2441   :  { %4654 = vrcp.f32 %v2764_v61  ;;  %v2775_v3 = vsel %vm431_vm4, %v4653_v41, %v2685_v46  ;;  %v3066_v61 = vld [vmem:[%s5912_s4 + $0x10] sm:$0xff] }
0x2442   :  { %4656 = vrcp.f32 %v2771_v40  ;;  %v4723_v40 = vmov 0.0|0.0  }
0x2443   :  { %4218 = vmatprep.subr.bf16.mxu1 %v4723_v40 }
0x244b   :  { %v4655_v1 = vpop.eup %4654 }
0x244c   :  { %v4657_v37 = vpop.eup %4656  ;;  %v2776_v39 = vmul.f32 %v4655_v1, %v2775_v3  ;;  %v3067_v1 = vld [vmem:[%s5912_s4 + $0x18] sm:$0xff] }
0x244d   :  { %v2774_v51 = vsel %vm431_vm4, %v4653_v41, %v4657_v37  ;;  %v4219_v41 = vpack.c.bf16 %v3065_v60, %v3064_v36  ;;  %v4222_v3 = vpack.c.bf16 %v3067_v1, %v3066_v61  ;;  %v3068_v37 = vld [vmem:[%s5912_s4 + $0x20] sm:$0xff] }
0x244e   :  { %2777 = vrot.lane.b32.xlu0 %v2776_v39, %s4722_s3 }
0x244f   :  { %4220 = vmatpush3.bf16.msra.mxu1 %v4219_v41 }
0x2450   :  { %4221 = vmatprep.subr.bf16.mxu1 %v4723_v40 }
0x2453   :  { %4223 = vmatpush3.bf16.msra.mxu1 %v4222_v3 }
0x2454   :  { %4224 = vmatprep.subr.bf16.mxu1 %v4723_v40 }
0x24c0   :  { %v2778_v53 = vpop.permute.xlu0 %2777 }
0x24c1   :  { %v2779_v23 = vadd.f32 %v2778_v53, %v2776_v39  ;;  %v3069_v39 = vld [vmem:[%s5912_s4 + $0x28] sm:$0xff]  ;;  %v3070_v53 = vld [vmem:[%s5912_s4 + $0x30] sm:$0xff] }
0x24c3   :  { %4658 = vtanh.f32 %v2779_v23 }
0x24cd   :  { %v4659_v21 = vpop.eup %4658 }
0x24ce   :  { %v2781_v5 = vmul.f32 %v4659_v21, %v2774_v51  ;;  %v4225_v51 = vpack.c.bf16 %v3069_v39, %v3068_v37 }
0x24d0   :  { %2847 = vmatmul.mubr.f32.vlgmr.msra.gmra.mrb[26].mxu0 %v2781_v5  ;;  %4226 = vmatpush3.bf16.msra.mxu1 %v4225_v51  ;;  %v5926_v5 = vld [vmem:[#allocation7_spill] sm:$0xff] }
0x24d1   :  { %4157 = vmatpush1.bf16.msra.mxu0 %v4807_v19  ;;  %2940 = vmatprep.mubr.f32.mxu0 %v5923_v29 }
0x24d2   :  { %4159 = vmatprep.subr.bf16.mxu0 %v4822_v24  ;;  %4227 = vmatprep.subr.bf16.mxu1 %v4723_v40 }
0x24d5   :  { %4161 = vmatpush1.bf16.msra.mxu0 %v4837_v28 }
0x24d6   :  { %4163 = vmatprep.subr.bf16.mxu0 %v4847_v31 }
0x24d9   :  { %4165 = vmatpush1.bf16.msra.mxu0 %v4862_v35 }
0x24da   :  { %4167 = vmatprep.subr.bf16.mxu0 %v4872_v38 }
0x24dd   :  { %4169 = vmatpush1.bf16.msra.mxu0 %v4887_v42 }
0x24de   :  { %4171 = vmatprep.subr.bf16.mxu0 %v4897_v45 }
0x24e1   :  { %4173 = vmatpush1.bf16.msra.mxu0 %v4912_v49 }
0x24e2   :  { %4175 = vmatprep.subr.bf16.mxu0 %v4922_v52 }
0x24e5   :  { %4177 = vmatpush1.bf16.msra.mxu0 %v4937_v56 }
0x24e6   :  { %4179 = vmatprep.subr.bf16.mxu0 %v4947_v59 }
0x24e9   :  { %4181 = vmatpush1.bf16.msra.mxu0 %v4962_v63 }
0x24ea   :  { %4183 = vmatprep.subr.bf16.mxu0 %v4972_v2 }
0x24ed   :  { %4185 = vmatpush1.bf16.msra.mxu0 %v4981_v4 }
0x24ee   :  { %4187 = vmatprep.subr.bf16.mxu0 %v4797_v16 }
0x25a3   :  { %v2848_v14 = vpop.f32.mrb[26].mxu0 }
0x25a4   :  { %v2853_v9 = vadd.f32 %v2848_v14, %v381_v13  ;;  %v2850_v25 = vpop.f32.mrb[27].mxu0  ;;  %v393_v13 = vadd.f32 %v5926_v5, %v5182_v18 }
0x25a5   :  { %v2854_v57 = vadd.f32 %v2850_v25, %v383_v11  ;;  %v5927_v11 = vld [vmem:[#allocation8_spill] sm:$0xff] }
0x25a6   :  { %v3253_v58 = vmul.f32 -1.442695, %v2853_v9  ;;  %v395_v14 = vadd.f32 %v5927_v11, %v5184_v20 }
0x25a7   :  { %v3254_v48 = vmul.f32 -1.442695, %v2854_v57 }
0x25a8   :  { %4660 = vpow2.f32 %v3253_v58 }
0x25a9   :  { %4662 = vpow2.f32 %v3254_v48 }
0x25aa   :  { %4664 = vtanh.f32 %v2854_v57 }
0x25b2   :  { %v4661_v50 = vpop.eup %4660 }
0x25b3   :  { %v4663_v22 = vpop.eup %4662  ;;  %v2858_v15 = vadd.f32 1.0, %v4661_v50 }
0x25b4   :  { %v2865_v62 = vadd.f32 1.0, %v4663_v22  ;;  %v4665_v16 = vpop.eup %4664 }
0x25b5   :  { %4666 = vrcp.f32 %v2858_v15  ;;  %v2869_v8 = vsel %vm431_vm4, %v4665_v16, %v2779_v23  ;;  %v3071_v23 = vld [vmem:[%s5912_s4 + $0x38] sm:$0xff]  ;;  %v3072_v15 = vld [vmem:[%s5912_s4 + $0x40] sm:$0xff] }
0x25b6   :  { %4668 = vrcp.f32 %v2865_v62  ;;  %v4228_v21 = vpack.c.bf16 %v3071_v23, %v3070_v53 }
0x25b8   :  { %4229 = vmatpush3.bf16.msra.mxu1 %v4228_v21 }
0x25b9   :  { %4230 = vmatprep.subr.bf16.mxu1 %v4723_v40 }
0x25bf   :  { %v4667_v6 = vpop.eup %4666 }
0x25c0   :  { %v4669_v0 = vpop.eup %4668  ;;  %v2870_v17 = vmul.f32 %v4667_v6, %v2869_v8  ;;  %v3074_v8 = vld [vmem:[%s5912_s4 + $0x50] sm:$0xff] }
0x25c1   :  { %v2868_v27 = vsel %vm431_vm4, %v4665_v16, %v4669_v0  ;;  %v3075_v0 = vld [vmem:[%s5912_s4 + $0x58] sm:$0xff] }
0x25c2   :  { %2871 = vrot.lane.b32.xlu1 %v2870_v17, %s4722_s3 }
0x2634   :  { %v2872_v26 = vpop.permute.xlu1 %2871 }
0x2635   :  { %v2873_v10 = vadd.f32 %v2872_v26, %v2870_v17  ;;  %v4234_v17 = vpack.c.bf16 %v3075_v0, %v3074_v8  ;;  %v3077_v26 = vld [vmem:[%s5912_s4 + $0x68] sm:$0xff] }
0x2637   :  { %4670 = vtanh.f32 %v2873_v10 }
0x2641   :  { %v4671_v46 = vpop.eup %4670 }
0x2642   :  { %v2875_v47 = vmul.f32 %v4671_v46, %v2868_v27  ;;  %v3076_v27 = vld [vmem:[%s5912_s4 + $0x60] sm:$0xff]  ;;  %v3078_v46 = vld [vmem:[%s5912_s4 + $0x70] sm:$0xff] }
0x2644   :  { %2941 = vmatmul.mubr.f32.vlgmr.msra.gmra.mrb[28].mxu0 %v2875_v47  ;;  %v3079_v47 = vld [vmem:[%s5912_s4 + $0x78] sm:$0xff] }
0x2645   :  { %4189 = vmatpush1.bf16.msra.mxu0 %v4807_v19  ;;  %3034 = vmatprep.mubr.f32.mxu0 %v5923_v29  ;;  %v5924_v19 = vld [vmem:[#allocation5_spill] sm:$0xff] }
0x2646   :  { %4191 = vmatprep.subr.bf16.mxu0 %v4822_v24  ;;  %v387_v24 = vadd.f32 %v5924_v19, %v5182_v18  ;;  %v3073_v18 = vld [vmem:[%s5912_s4 + $0x48] sm:$0xff] }
0x2647   :  { %v4231_v16 = vpack.c.bf16 %v3073_v18, %v3072_v15 }
0x2649   :  { %4193 = vmatpush1.bf16.msra.mxu0 %v4837_v28  ;;  %v5925_v28 = vld [vmem:[#allocation6_spill] sm:$0xff]  ;;  %4232 = vmatpush3.bf16.msra.mxu1 %v4231_v16 }
0x264a   :  { %4195 = vmatprep.subr.bf16.mxu0 %v4847_v31  ;;  %v389_v31 = vadd.f32 %v5925_v28, %v5184_v20  ;;  %4233 = vmatprep.subr.bf16.mxu1 %v4723_v40 }
0x264d   :  { %4197 = vmatpush1.bf16.msra.mxu0 %v4862_v35  ;;  %4235 = vmatpush3.bf16.msra.mxu1 %v4234_v17 }
0x264e   :  { %4199 = vmatprep.subr.bf16.mxu0 %v4872_v38  ;;  %4236 = vmatprep.subr.bf16.mxu1 %v4723_v40 }
0x2651   :  { %4201 = vmatpush1.bf16.msra.mxu0 %v4887_v42 }
0x2652   :  { %4203 = vmatprep.subr.bf16.mxu0 %v4897_v45 }
0x2655   :  { %4205 = vmatpush1.bf16.msra.mxu0 %v4912_v49 }
0x2656   :  { %4207 = vmatprep.subr.bf16.mxu0 %v4922_v52 }
0x2659   :  { %4209 = vmatpush1.bf16.msra.mxu0 %v4937_v56 }
0x265a   :  { %4211 = vmatprep.subr.bf16.mxu0 %v4947_v59 }
0x265d   :  { %4213 = vmatpush1.bf16.msra.mxu0 %v4962_v63 }
0x265e   :  { %4215 = vmatprep.subr.bf16.mxu0 %v4972_v2 }
0x2661   :  { %4217 = vmatpush1.bf16.msra.mxu0 %v4981_v4 }
0x2717   :  { %v2942_v35 = vpop.f32.mrb[28].mxu0 }
0x2718   :  { %v2947_v38 = vadd.f32 %v2942_v35, %v387_v24  ;;  %v2944_v42 = vpop.f32.mrb[29].mxu0  ;;  %v4240_v24 = vpack.c.bf16 %v3079_v47, %v3078_v46 }
0x2719   :  { %v2948_v45 = vadd.f32 %v2944_v42, %v389_v31 }
0x271a   :  { %v3255_v49 = vmul.f32 -1.442695, %v2947_v38 }
0x271b   :  { %v3256_v52 = vmul.f32 -1.442695, %v2948_v45 }
0x271c   :  { %4672 = vpow2.f32 %v3255_v49 }
0x271d   :  { %4674 = vpow2.f32 %v3256_v52 }
0x271e   :  { %4676 = vtanh.f32 %v2948_v45 }
0x2726   :  { %v4673_v56 = vpop.eup %4672 }
0x2727   :  { %v4675_v59 = vpop.eup %4674  ;;  %v2952_v63 = vadd.f32 1.0, %v4673_v56  ;;  %v3259_v56 = vld [vmem:[%s5913_s5] ss:$0 sm:$0xff] }
0x2728   :  { %v2959_v2 = vadd.f32 1.0, %v4675_v59  ;;  %v4677_v4 = vpop.eup %4676 }
0x2729   :  { %4678 = vrcp.f32 %v2952_v63  ;;  %v2963_v33 = vsel %vm431_vm4, %v4677_v4, %v2873_v10  ;;  %v4237_v10 = vpack.c.bf16 %v3077_v26, %v3076_v27 }
0x272a   :  { %4680 = vrcp.f32 %v2959_v2 }
0x272b   :  { %4238 = vmatpush3.bf16.msra.mxu1 %v4237_v10 }
0x272c   :  { %4239 = vmatprep.subr.bf16.mxu1 %v4723_v40 }
0x272f   :  { %4241 = vmatpush3.bf16.msra.mxu1 %v4240_v24 }
0x2733   :  { %v4679_v32 = vpop.eup %4678 }
0x2734   :  { %v4681_v54 = vpop.eup %4680  ;;  %v2964_v55 = vmul.f32 %v4679_v32, %v2963_v33 }
0x2735   :  { %v2962_v7 = vsel %vm431_vm4, %v4677_v4, %v4681_v54 }
0x2736   :  { %2965 = vrot.lane.b32.xlu0 %v2964_v55, %s4722_s3 }
0x27a8   :  { %v2966_v30 = vpop.permute.xlu0 %2965 }
0x27a9   :  { %v5831_v43 = vadd.f32 %v2966_v30, %v2964_v55 }
0x27ab   :  { %4682 = vtanh.f32 %v5831_v43 }
0x27b5   :  { %v4683_v44 = vpop.eup %4682 }
0x27b6   :  { %v2969_v34 = vmul.f32 %v4683_v44, %v2962_v7 }
0x27b8   :  { %3035 = vmatmul.mubr.f32.vlgmr.msra.gmra.mrb[30].mxu0 %v2969_v34 }
0x288b   :  { %v3036_v9 = vpop.f32.mrb[30].mxu0 }
0x288c   :  { %v3041_v25 = vadd.f32 %v3036_v9, %v393_v13  ;;  %v3038_v57 = vpop.f32.mrb[31].mxu0 }
0x288d   :  { %v3042_v58 = vadd.f32 %v3038_v57, %v395_v14 }
0x288e   :  { %v3257_v48 = vmul.f32 -1.442695, %v3041_v25 }
0x288f   :  { %v3258_v50 = vmul.f32 -1.442695, %v3042_v58 }
0x2890   :  { %4684 = vpow2.f32 %v3257_v48 }
0x2891   :  { %4686 = vpow2.f32 %v3258_v50 }
0x2892   :  { %4688 = vtanh.f32 %v3042_v58 }
0x289a   :  { %v4685_v22 = vpop.eup %4684 }
0x289b   :  { %v4687_v62 = vpop.eup %4686  ;;  %v3046_v20 = vadd.f32 1.0, %v4685_v22 }
0x289c   :  { %v3053_v6 = vadd.f32 1.0, %v4687_v62  ;;  %v4689_v19 = vpop.eup %4688 }
0x289d   :  { %4690 = vrcp.f32 %v3046_v20  ;;  %v3057_v29 = vsel %vm431_vm4, %v4689_v19, %v5831_v43 }
0x289e   :  { %4692 = vrcp.f32 %v3053_v6 }
0x28a7   :  { %v4691_v28 = vpop.eup %4690 }
0x28a8   :  { %v4693_v31 = vpop.eup %4692  ;;  %v3058_v35 = vmul.f32 %v4691_v28, %v3057_v29 }
0x28a9   :  { %v3056_v38 = vsel %vm431_vm4, %v4689_v19, %v4693_v31 }
0x28aa   :  { %3059 = vrot.lane.b32.xlu1 %v3058_v35, %s4722_s3 }
0x291c   :  { %v3060_v42 = vpop.permute.xlu1 %3059 }
0x291d   :  { %v3061_v45 = vadd.f32 %v3060_v42, %v3058_v35 }
0x291f   :  { %4694 = vtanh.f32 %v3061_v45 }
0x2929   :  { %v4695_v49 = vpop.eup %4694 }
0x292a   :  { %v3063_v52 = vmul.f32 %v4695_v49, %v3056_v38 }
0x292c   :  { %3310 = vmatmul.mubr.f32.vlgmr.msra.gmra.mrb[56].mxu1 %v3063_v52 }
0x29ff   :  { %v3153_v59 = vpop.f32.mrb[56].mxu1 }
0x2a00   :  { %v3154_v63 = vadd.f32 %v3259_v56, %v3153_v59  ;;  %v3311_v2 = vpop.f32.mrb[57].mxu1 }
0x2a02   :  { %3158 = vst.msk [vmem:[#allocation2] sm:$0xff] %vm3157_vm6, %v3154_v63 }
0x2a03   :  { %4707 = shalt.err (!%p4704_p4)
}
0x2a04   :  { %s4708_s16 = scalar_lea.hbm %s5914_s6, 128 }
0x2a05   :  { %p4709_p5 = scmp.ne.s32.totalorder %s5914_s6, %s4708_s16  ;;  %p4712_p6 = scmp.lt.u32.totalorder %s4708_s16, %s5914_s6 }
0x2a07   :  { %p4714_p7 = pnand %p4712_p6, %p4709_p5 }
0x2a09   :  { %4717 = shalt.err (!%p4714_p7)
}
0x2a0a   :  { %3168 = dma.vmem_to_hbm [thread:$0]  %s3166_s14, 128, %s5914_s6, [#allocation3]  }
0x2a0b   :  { %4718 = dma.done.wait [#allocation3], 128  }
0x2a0c   :  { %4719 = vsyncadd [#allocation3], 4294967168 }
0x2a0d   :  { %3172 = vsyncpa [#allocation3], 1 }

</bundles_post_ra>
